<compile_context>
chip_gen: v7x
topology: tpu7x:2x2x1
jax: 0.10.0
libtpu: 0.0.40
codegen_flags: <defaults>
</compile_context>

<pallas_src>
import functools
import math

import jax
import jax.numpy as jnp
from jax.experimental import pallas as pl
from jax.experimental.pallas import tpu as pltpu


# ---------------------------------------------------------------------------
# Model configuration (deterministic synthetic init)
# ---------------------------------------------------------------------------

BACKBONE_OUT_CHANNELS = 32
NUM_ANCHORS = 3
ANCHOR_SIZES = (4.0, 8.0, 16.0)
FEATURE_STRIDE = 1.0
PRE_NMS_TOP_N = 32
BBOX_XFORM_CLIP = math.log(1000.0 / 16.0)   # torchvision-style exp clamp


def init_params(key, in_channels):
    ks = jax.random.split(key, 8)
    c = BACKBONE_OUT_CHANNELS
    a = NUM_ANCHORS
    return {
        # backbone: single 3x3 conv "stem", Cin -> C
        "bb_w": 0.05 * jax.random.normal(ks[0], (3, 3, in_channels, c), jnp.float32),
        "bb_b": 0.01 * jax.random.normal(ks[1], (c,), jnp.float32),
        # RPN head: shared 3x3 conv, then 1x1 objectness (A) and 1x1 bbox (4A)
        "rpn_conv_w": 0.05 * jax.random.normal(ks[2], (3, 3, c, c), jnp.float32),
        "rpn_conv_b": 0.01 * jax.random.normal(ks[3], (c,), jnp.float32),
        "rpn_cls_w": 0.05 * jax.random.normal(ks[4], (c, a), jnp.float32),
        "rpn_cls_b": 0.01 * jax.random.normal(ks[5], (a,), jnp.float32),
        "rpn_bbox_w": 0.05 * jax.random.normal(ks[6], (c, 4 * a), jnp.float32),
        "rpn_bbox_b": 0.01 * jax.random.normal(ks[7], (4 * a,), jnp.float32),
    }


# ---------------------------------------------------------------------------
# Fused backbone + RPN Pallas kernel
# ---------------------------------------------------------------------------

def _fused_rcnn_kernel(x_ref, w1_ref, b1_ref, w2_ref, b2_ref, w3_ref, b3_ref,
                       o_ref, xpad_ref, fpad_ref, p1_ref, p2_ref):
    """One image per grid step: backbone conv -> RPN conv -> fused 1x1 head.

    x_ref  : (1, H, W, Cin)        raw image tile (NHWC)
    w1_ref : (9*Cin, C)   bf16     backbone 3x3 conv weight (im2col layout)
    b1_ref : (1, C)       f32
    w2_ref : (9*C, C)     bf16     RPN shared 3x3 conv weight
    b2_ref : (1, C)       f32
    w3_ref : (C, 5*A)     bf16     fused [objectness | bbox] 1x1 head weight
    b3_ref : (1, 5*A)     f32
    o_ref  : (1, H*W, 5*A) f32     lane-dense output slab
    scratch: xpad (H+2,W+2,Cin), fpad (H+2,W+2,C), p1 (H*W,9*Cin), p2 (H*W,9*C)
    """
    H = x_ref.shape[1]
    W = x_ref.shape[2]
    Cin = x_ref.shape[3]
    C = b1_ref.shape[1]

    # ---- stage 1: backbone 3x3 conv + ReLU (im2col -> single MXU matmul) ----
    xpad_ref[...] = jnp.zeros_like(xpad_ref)          # zero halo
    xpad_ref[1:H + 1, 1:W + 1, :] = x_ref[0]
    for dh in range(3):
        for dw in range(3):
            j = dh * 3 + dw
            p1_ref[:, j * Cin:(j + 1) * Cin] = (
                xpad_ref[dh:dh + H, dw:dw + W, :].reshape(H * W, Cin))
    f = jnp.dot(p1_ref[...].astype(jnp.bfloat16), w1_ref[...],
                preferred_element_type=jnp.float32)
    f = jnp.maximum(f + b1_ref[...], 0.0)             # (H*W, C), f32 epilogue

    # ---- stage 2: RPN shared 3x3 conv + ReLU (features stay in VMEM) ----
    fpad_ref[...] = jnp.zeros_like(fpad_ref)
    fpad_ref[1:H + 1, 1:W + 1, :] = f.reshape(H, W, C)
    for dh in range(3):
        for dw in range(3):
            j = dh * 3 + dw
            p2_ref[:, j * C:(j + 1) * C] = (
                fpad_ref[dh:dh + H, dw:dw + W, :].reshape(H * W, C))
    t = jnp.dot(p2_ref[...].astype(jnp.bfloat16), w2_ref[...],
                preferred_element_type=jnp.float32)
    t = jnp.maximum(t + b2_ref[...], 0.0)             # (H*W, C)

    # ---- stage 3: fused 1x1 objectness + bbox-regression head ----
    head = jnp.dot(t.astype(jnp.bfloat16), w3_ref[...],
                   preferred_element_type=jnp.float32) + b3_ref[...]
    o_ref[0] = head.astype(o_ref.dtype)               # (H*W, 5*A)


def fused_backbone_rpn(params, x_nhwc):
    """x_nhwc: (N2, H, W, Cin) stacked left+right batch. Returns (N2, H*W, 5A)."""
    N2, H, W, Cin = x_nhwc.shape
    C = BACKBONE_OUT_CHANNELS
    A = NUM_ANCHORS
    c_head = 5 * A  # objectness (A) + bbox deltas (4A) fused

    # Weight prep (constant-folded under jit): im2col layout + bf16 MXU operands.
    w1 = params["bb_w"].reshape(9 * Cin, C).astype(jnp.bfloat16)
    b1 = params["bb_b"].reshape(1, C)
    w2 = params["rpn_conv_w"].reshape(9 * C, C).astype(jnp.bfloat16)
    b2 = params["rpn_conv_b"].reshape(1, C)
    w3 = jnp.concatenate([params["rpn_cls_w"], params["rpn_bbox_w"]],
                         axis=1).astype(jnp.bfloat16)          # (C, 5A)
    b3 = jnp.concatenate([params["rpn_cls_b"], params["rpn_bbox_b"]]).reshape(1, c_head)

    return pl.pallas_call(
        _fused_rcnn_kernel,
        out_shape=jax.ShapeDtypeStruct((N2, H * W, c_head), jnp.float32),
        grid=(N2,),
        in_specs=[
            pl.BlockSpec((1, H, W, Cin), lambda n: (n, 0, 0, 0)),
            pl.BlockSpec((9 * Cin, C), lambda n: (0, 0)),
            pl.BlockSpec((1, C), lambda n: (0, 0)),
            pl.BlockSpec((9 * C, C), lambda n: (0, 0)),
            pl.BlockSpec((1, C), lambda n: (0, 0)),
            pl.BlockSpec((C, c_head), lambda n: (0, 0)),
            pl.BlockSpec((1, c_head), lambda n: (0, 0)),
        ],
        out_specs=pl.BlockSpec((1, H * W, c_head), lambda n: (n, 0, 0)),
        scratch_shapes=[
            pltpu.VMEM((H + 2, W + 2, Cin), jnp.float32),   # padded input halo
            pltpu.VMEM((H + 2, W + 2, C), jnp.float32),     # padded feature halo
            pltpu.VMEM((H * W, 9 * Cin), jnp.float32),      # im2col patches (stage 1)
            pltpu.VMEM((H * W, 9 * C), jnp.float32),        # im2col patches (stage 2)
        ],
        compiler_params=pltpu.CompilerParams(
            dimension_semantics=("parallel",),
            vmem_limit_bytes=48 * 1024 * 1024,
        ),
    )(x_nhwc, w1, b1, w2, b2, w3, b3)


# ---------------------------------------------------------------------------
# RPN glue: anchors, box decoding, batched top-k proposal selection
# ---------------------------------------------------------------------------

def generate_anchors(H, W):
    ys = (jnp.arange(H, dtype=jnp.float32) + 0.5) * FEATURE_STRIDE
    xs = (jnp.arange(W, dtype=jnp.float32) + 0.5) * FEATURE_STRIDE
    cx, cy = jnp.meshgrid(xs, ys)                          # (H, W)
    per_size = []
    for s in ANCHOR_SIZES:
        half = s / 2.0
        per_size.append(jnp.stack([cx - half, cy - half, cx + half, cy + half],
                                  axis=-1))                 # (H, W, 4)
    return jnp.stack(per_size, axis=2).reshape(H * W, len(ANCHOR_SIZES), 4)


def decode_boxes(anchors, deltas):
    wa = anchors[..., 2] - anchors[..., 0]
    ha = anchors[..., 3] - anchors[..., 1]
    xa = anchors[..., 0] + 0.5 * wa
    ya = anchors[..., 1] + 0.5 * ha
    dx, dy = deltas[..., 0], deltas[..., 1]
    dw = jnp.minimum(deltas[..., 2], BBOX_XFORM_CLIP)      # clamp before exp
    dh = jnp.minimum(deltas[..., 3], BBOX_XFORM_CLIP)
    x = dx * wa + xa
    y = dy * ha + ya
    w = jnp.exp(dw) * wa
    h = jnp.exp(dh) * ha
    return jnp.stack([x - 0.5 * w, y - 0.5 * h, x + 0.5 * w, y + 0.5 * h],
                     axis=-1)


def rpn_select_proposals(objectness, bbox_deltas, H, W, img_h, img_w):
    """objectness: (N2, H*W, A); bbox_deltas: (N2, H*W, 4A)."""
    N2, HW, A = objectness.shape
    anchors = jnp.broadcast_to(generate_anchors(H, W), (N2, HW, A, 4))
    deltas = bbox_deltas.reshape(N2, HW, A, 4)
    boxes = decode_boxes(anchors, deltas)                  # (N2, HW, A, 4)
    scores = jax.nn.sigmoid(objectness)                    # (N2, HW, A)

    flat_scores = scores.reshape(N2, -1)
    flat_boxes = boxes.reshape(N2, -1, 4)
    k = min(PRE_NMS_TOP_N, flat_scores.shape[1])
    top_scores, top_idx = jax.lax.top_k(flat_scores, k)    # (N2, k)
    top_boxes = jnp.take_along_axis(flat_boxes, top_idx[..., None], axis=1)

    # clip to image
    x1 = jnp.clip(top_boxes[..., 0], 0.0, img_w)
    y1 = jnp.clip(top_boxes[..., 1], 0.0, img_h)
    x2 = jnp.clip(top_boxes[..., 2], 0.0, img_w)
    y2 = jnp.clip(top_boxes[..., 3], 0.0, img_h)
    top_boxes = jnp.stack([x1, y1, x2, y2], axis=-1)
    # TODO(synk): per-image NMS has no clean Pallas/TPU equivalent here; proposals
    # are pre-NMS top-k only.
    return top_boxes, top_scores


# ---------------------------------------------------------------------------
# GeneralizedRCNN forward (eval mode, RPN-only roi_heads)
# ---------------------------------------------------------------------------

def generalized_rcnn_forward(params, images_left, images_right):
    """images_*: NCHW float32 (PyTorch convention). Returns (result_left,
    result_right), each a (boxes (N,k,4), scores (N,k)) tuple — the eval-mode
    RPN-only output."""
    N = images_left.shape[0]
    # to_image_list + NCHW -> NHWC layout change, then stack left/right so the
    # fused kernel sees one long (2N,) grid.
    il = jnp.transpose(images_left, (0, 2, 3, 1))
    ir = jnp.transpose(images_right, (0, 2, 3, 1))
    x = jnp.concatenate([il, ir], axis=0)                  # (2N, H, W, Cin)
    H, W = x.shape[1], x.shape[2]
    img_h, img_w = float(H), float(W)

    head = fused_backbone_rpn(params, x)                   # (2N, H*W, 5A)
    A = NUM_ANCHORS
    objectness = head[..., :A]                             # (2N, H*W, A)
    bbox_deltas = head[..., A:]                            # (2N, H*W, 4A)

    boxes, scores = rpn_select_proposals(objectness, bbox_deltas, H, W,
                                         img_h, img_w)

    # TODO(synk): roi_heads (ROIAlign + box/mask heads) and training losses are
    # not implemented; this mirrors the `if not self.roi_heads` eval branch
    # where result_{left,right} = proposals_{left,right}.
    result_left = (boxes[:N], scores[:N])
    result_right = (boxes[N:], scores[N:])
    return result_left, result_right


# ---------------------------------------------------------------------------
# Main
# ---------------------------------------------------------------------------

if __name__ == "__main__":
    key = jax.random.PRNGKey(0)
    k_params, k_il, k_ir = jax.random.split(key, 3)

    N, C, H, W = 2, 4, 16, 16          # small synthetic shapes (NCHW inputs)
    params = init_params(k_params, C)
    images_left = jax.random.normal(k_il, (N, C, H, W), jnp.float32)
    images_right = jax.random.normal(k_ir, (N, C, H, W), jnp.float32)

    fwd = jax.jit(functools.partial(generalized_rcnn_forward, params))
    (boxes_l, scores_l), (boxes_r, scores_r) = fwd(images_left, images_right)
    jax.block_until_ready((boxes_l, scores_l, boxes_r, scores_r))

    assert boxes_l.shape == (N, PRE_NMS_TOP_N, 4)
    assert scores_l.shape == (N, PRE_NMS_TOP_N)
    assert boxes_r.shape == (N, PRE_NMS_TOP_N, 4)
    assert scores_r.shape == (N, PRE_NMS_TOP_N)
    assert bool(jnp.all(jnp.isfinite(boxes_l))) and bool(jnp.all(jnp.isfinite(scores_l)))
    assert bool(jnp.all(jnp.isfinite(boxes_r))) and bool(jnp.all(jnp.isfinite(scores_r)))

    print("KERNEL_OK")
</pallas_src>

<mosaic_0001>
module attributes {stable_mosaic.version = 11 : i64} {
  func.func @_fused_rcnn_kernel(%arg0: i32, %arg1: memref<1x16x16x4xf32, #tpu.memory_space<vmem>>, %arg2: memref<36x32xbf16, #tpu.memory_space<vmem>>, %arg3: memref<1x32xf32, #tpu.memory_space<vmem>>, %arg4: memref<288x32xbf16, #tpu.memory_space<vmem>>, %arg5: memref<1x32xf32, #tpu.memory_space<vmem>>, %arg6: memref<32x15xbf16, #tpu.memory_space<vmem>>, %arg7: memref<1x15xf32, #tpu.memory_space<vmem>>, %arg8: memref<1x256x15xf32, #tpu.memory_space<vmem>>, %arg9: memref<18x18x4xf32, #tpu.memory_space<vmem>>, %arg10: memref<18x18x32xf32, #tpu.memory_space<vmem>>, %arg11: memref<256x36xf32, #tpu.memory_space<vmem>>, %arg12: memref<256x288xf32, #tpu.memory_space<vmem>>) attributes {dimension_semantics = [#tpu.dimension_semantics<parallel>], iteration_bounds = array<i64: 4>, scalar_prefetch = 0 : i64, scratch_operands = 4 : i64, tpu.core_type = #tpu.core_type<tc>, window_params = [{transform_indices = @transform_0, window_bounds = array<i64: 1, 16, 16, 4>}, {pipeline_mode = #tpu.pipeline_mode<synchronous>, transform_indices = @transform_1, window_bounds = array<i64: 36, 32>}, {pipeline_mode = #tpu.pipeline_mode<synchronous>, transform_indices = @transform_2, window_bounds = array<i64: 1, 32>}, {pipeline_mode = #tpu.pipeline_mode<synchronous>, transform_indices = @transform_3, window_bounds = array<i64: 288, 32>}, {pipeline_mode = #tpu.pipeline_mode<synchronous>, transform_indices = @transform_4, window_bounds = array<i64: 1, 32>}, {pipeline_mode = #tpu.pipeline_mode<synchronous>, transform_indices = @transform_5, window_bounds = array<i64: 32, 15>}, {pipeline_mode = #tpu.pipeline_mode<synchronous>, transform_indices = @transform_6, window_bounds = array<i64: 1, 15>}, {transform_indices = @transform_7, window_bounds = array<i64: 1, 256, 15>}]} {
    %cst = arith.constant 0.000000e+00 : f32
    %0 = vector.broadcast %cst : f32 to vector<18x18x4xf32>
    %c0 = arith.constant 0 : index
    %c0_0 = arith.constant 0 : index
    %c0_1 = arith.constant 0 : index
    %1 = vector.load %arg9[%c0, %c0_0, %c0_1] : memref<18x18x4xf32, #tpu.memory_space<vmem>>, vector<18x18x4xf32>
    tpu.vector_store %arg9[%c0, %c0_0, %c0_1], %0 {strides = array<i32>} : memref<18x18x4xf32, #tpu.memory_space<vmem>>, vector<18x18x4xf32>,
    %c0_2 = arith.constant 0 : index
    %c0_3 = arith.constant 0 : index
    %c0_4 = arith.constant 0 : index
    %c0_5 = arith.constant 0 : index
    %2 = vector.load %arg1[%c0_2, %c0_3, %c0_4, %c0_5] : memref<1x16x16x4xf32, #tpu.memory_space<vmem>>, vector<1x16x16x4xf32>
    %3 = vector.shape_cast %2 : vector<1x16x16x4xf32> to vector<16x16x4xf32>
    %c1 = arith.constant 1 : index
    %c1_6 = arith.constant 1 : index
    %c0_7 = arith.constant 0 : index
    %4 = vector.load %arg9[%c1, %c1_6, %c0_7] : memref<18x18x4xf32, #tpu.memory_space<vmem>>, vector<16x16x4xf32>
    tpu.vector_store %arg9[%c1, %c1_6, %c0_7], %3 {strides = array<i32>} : memref<18x18x4xf32, #tpu.memory_space<vmem>>, vector<16x16x4xf32>,
    %c0_8 = arith.constant 0 : index
    %c0_9 = arith.constant 0 : index
    %c0_10 = arith.constant 0 : index
    %5 = vector.load %arg9[%c0_8, %c0_9, %c0_10] : memref<18x18x4xf32, #tpu.memory_space<vmem>>, vector<16x16x4xf32>
    %6 = vector.shape_cast %5 : vector<16x16x4xf32> to vector<256x4xf32>
    %c0_11 = arith.constant 0 : index
    %c0_12 = arith.constant 0 : index
    %7 = vector.load %arg11[%c0_11, %c0_12] : memref<256x36xf32, #tpu.memory_space<vmem>>, vector<256x4xf32>
    tpu.vector_store %arg11[%c0_11, %c0_12], %6 {strides = array<i32>} : memref<256x36xf32, #tpu.memory_space<vmem>>, vector<256x4xf32>,
    %c0_13 = arith.constant 0 : index
    %c1_14 = arith.constant 1 : index
    %c0_15 = arith.constant 0 : index
    %8 = vector.load %arg9[%c0_13, %c1_14, %c0_15] : memref<18x18x4xf32, #tpu.memory_space<vmem>>, vector<16x16x4xf32>
    %9 = vector.shape_cast %8 : vector<16x16x4xf32> to vector<256x4xf32>
    %c0_16 = arith.constant 0 : index
    %c4 = arith.constant 4 : index
    %10 = vector.load %arg11[%c0_16, %c4] : memref<256x36xf32, #tpu.memory_space<vmem>>, vector<256x4xf32>
    tpu.vector_store %arg11[%c0_16, %c4], %9 {strides = array<i32>} : memref<256x36xf32, #tpu.memory_space<vmem>>, vector<256x4xf32>,
    %c0_17 = arith.constant 0 : index
    %c2 = arith.constant 2 : index
    %c0_18 = arith.constant 0 : index
    %11 = vector.load %arg9[%c0_17, %c2, %c0_18] : memref<18x18x4xf32, #tpu.memory_space<vmem>>, vector<16x16x4xf32>
    %12 = vector.shape_cast %11 : vector<16x16x4xf32> to vector<256x4xf32>
    %c0_19 = arith.constant 0 : index
    %c8 = arith.constant 8 : index
    %13 = vector.load %arg11[%c0_19, %c8] : memref<256x36xf32, #tpu.memory_space<vmem>>, vector<256x4xf32>
    tpu.vector_store %arg11[%c0_19, %c8], %12 {strides = array<i32>} : memref<256x36xf32, #tpu.memory_space<vmem>>, vector<256x4xf32>,
    %c1_20 = arith.constant 1 : index
    %c0_21 = arith.constant 0 : index
    %c0_22 = arith.constant 0 : index
    %14 = vector.load %arg9[%c1_20, %c0_21, %c0_22] : memref<18x18x4xf32, #tpu.memory_space<vmem>>, vector<16x16x4xf32>
    %15 = vector.shape_cast %14 : vector<16x16x4xf32> to vector<256x4xf32>
    %c0_23 = arith.constant 0 : index
    %c12 = arith.constant 12 : index
    %16 = vector.load %arg11[%c0_23, %c12] : memref<256x36xf32, #tpu.memory_space<vmem>>, vector<256x4xf32>
    tpu.vector_store %arg11[%c0_23, %c12], %15 {strides = array<i32>} : memref<256x36xf32, #tpu.memory_space<vmem>>, vector<256x4xf32>,
    %c1_24 = arith.constant 1 : index
    %c1_25 = arith.constant 1 : index
    %c0_26 = arith.constant 0 : index
    %17 = vector.load %arg9[%c1_24, %c1_25, %c0_26] : memref<18x18x4xf32, #tpu.memory_space<vmem>>, vector<16x16x4xf32>
    %18 = vector.shape_cast %17 : vector<16x16x4xf32> to vector<256x4xf32>
    %c0_27 = arith.constant 0 : index
    %c16 = arith.constant 16 : index
    %19 = vector.load %arg11[%c0_27, %c16] : memref<256x36xf32, #tpu.memory_space<vmem>>, vector<256x4xf32>
    tpu.vector_store %arg11[%c0_27, %c16], %18 {strides = array<i32>} : memref<256x36xf32, #tpu.memory_space<vmem>>, vector<256x4xf32>,
    %c1_28 = arith.constant 1 : index
    %c2_29 = arith.constant 2 : index
    %c0_30 = arith.constant 0 : index
    %20 = vector.load %arg9[%c1_28, %c2_29, %c0_30] : memref<18x18x4xf32, #tpu.memory_space<vmem>>, vector<16x16x4xf32>
    %21 = vector.shape_cast %20 : vector<16x16x4xf32> to vector<256x4xf32>
    %c0_31 = arith.constant 0 : index
    %c20 = arith.constant 20 : index
    %22 = vector.load %arg11[%c0_31, %c20] : memref<256x36xf32, #tpu.memory_space<vmem>>, vector<256x4xf32>
    tpu.vector_store %arg11[%c0_31, %c20], %21 {strides = array<i32>} : memref<256x36xf32, #tpu.memory_space<vmem>>, vector<256x4xf32>,
    %c2_32 = arith.constant 2 : index
    %c0_33 = arith.constant 0 : index
    %c0_34 = arith.constant 0 : index
    %23 = vector.load %arg9[%c2_32, %c0_33, %c0_34] : memref<18x18x4xf32, #tpu.memory_space<vmem>>, vector<16x16x4xf32>
    %24 = vector.shape_cast %23 : vector<16x16x4xf32> to vector<256x4xf32>
    %c0_35 = arith.constant 0 : index
    %c24 = arith.constant 24 : index
    %25 = vector.load %arg11[%c0_35, %c24] : memref<256x36xf32, #tpu.memory_space<vmem>>, vector<256x4xf32>
    tpu.vector_store %arg11[%c0_35, %c24], %24 {strides = array<i32>} : memref<256x36xf32, #tpu.memory_space<vmem>>, vector<256x4xf32>,
    %c2_36 = arith.constant 2 : index
    %c1_37 = arith.constant 1 : index
    %c0_38 = arith.constant 0 : index
    %26 = vector.load %arg9[%c2_36, %c1_37, %c0_38] : memref<18x18x4xf32, #tpu.memory_space<vmem>>, vector<16x16x4xf32>
    %27 = vector.shape_cast %26 : vector<16x16x4xf32> to vector<256x4xf32>
    %c0_39 = arith.constant 0 : index
    %c28 = arith.constant 28 : index
    %28 = vector.load %arg11[%c0_39, %c28] : memref<256x36xf32, #tpu.memory_space<vmem>>, vector<256x4xf32>
    tpu.vector_store %arg11[%c0_39, %c28], %27 {strides = array<i32>} : memref<256x36xf32, #tpu.memory_space<vmem>>, vector<256x4xf32>,
    %c2_40 = arith.constant 2 : index
    %c2_41 = arith.constant 2 : index
    %c0_42 = arith.constant 0 : index
    %29 = vector.load %arg9[%c2_40, %c2_41, %c0_42] : memref<18x18x4xf32, #tpu.memory_space<vmem>>, vector<16x16x4xf32>
    %30 = vector.shape_cast %29 : vector<16x16x4xf32> to vector<256x4xf32>
    %c0_43 = arith.constant 0 : index
    %c32 = arith.constant 32 : index
    %31 = vector.load %arg11[%c0_43, %c32] : memref<256x36xf32, #tpu.memory_space<vmem>>, vector<256x4xf32>
    tpu.vector_store %arg11[%c0_43, %c32], %30 {strides = array<i32>} : memref<256x36xf32, #tpu.memory_space<vmem>>, vector<256x4xf32>,
    %c0_44 = arith.constant 0 : index
    %c0_45 = arith.constant 0 : index
    %32 = vector.load %arg11[%c0_44, %c0_45] : memref<256x36xf32, #tpu.memory_space<vmem>>, vector<256x36xf32>
    %33 = arith.truncf %32 : vector<256x36xf32> to vector<256x36xbf16>
    %c0_46 = arith.constant 0 : index
    %c0_47 = arith.constant 0 : index
    %34 = vector.load %arg2[%c0_46, %c0_47] : memref<36x32xbf16, #tpu.memory_space<vmem>>, vector<36x32xbf16>
    %cst_48 = arith.constant dense<0.000000e+00> : vector<256x32xf32>
    %35 = tpu.matmul %33, %34, %cst_48 {dimension_numbers = #tpu.dot_dimension_numbers<[1], [0], [0], [1], [0, 0, 1, 1], [], []>} : vector<256x36xbf16>, vector<36x32xbf16>, vector<256x32xf32> -> vector<256x32xf32>
    %c0_49 = arith.constant 0 : index
    %c0_50 = arith.constant 0 : index
    %36 = vector.load %arg3[%c0_49, %c0_50] : memref<1x32xf32, #tpu.memory_space<vmem>>, vector<1x32xf32>
    %37 = vector.broadcast %36 : vector<1x32xf32> to vector<256x32xf32>
    %38 = arith.addf %35, %37 : vector<256x32xf32>
    %cst_51 = arith.constant 0.000000e+00 : f32
    %39 = vector.broadcast %cst_51 : f32 to vector<256x32xf32>
    %40 = arith.maximumf %38, %39 : vector<256x32xf32>
    %cst_52 = arith.constant 0.000000e+00 : f32
    %41 = vector.broadcast %cst_52 : f32 to vector<18x18x32xf32>
    %c0_53 = arith.constant 0 : index
    %c0_54 = arith.constant 0 : index
    %c0_55 = arith.constant 0 : index
    %42 = vector.load %arg10[%c0_53, %c0_54, %c0_55] : memref<18x18x32xf32, #tpu.memory_space<vmem>>, vector<18x18x32xf32>
    tpu.vector_store %arg10[%c0_53, %c0_54, %c0_55], %41 {strides = array<i32>} : memref<18x18x32xf32, #tpu.memory_space<vmem>>, vector<18x18x32xf32>,
    %43 = vector.shape_cast %40 : vector<256x32xf32> to vector<16x16x32xf32>
    %c1_56 = arith.constant 1 : index
    %c1_57 = arith.constant 1 : index
    %c0_58 = arith.constant 0 : index
    %44 = vector.load %arg10[%c1_56, %c1_57, %c0_58] : memref<18x18x32xf32, #tpu.memory_space<vmem>>, vector<16x16x32xf32>
    tpu.vector_store %arg10[%c1_56, %c1_57, %c0_58], %43 {strides = array<i32>} : memref<18x18x32xf32, #tpu.memory_space<vmem>>, vector<16x16x32xf32>,
    %c0_59 = arith.constant 0 : index
    %c0_60 = arith.constant 0 : index
    %c0_61 = arith.constant 0 : index
    %45 = vector.load %arg10[%c0_59, %c0_60, %c0_61] : memref<18x18x32xf32, #tpu.memory_space<vmem>>, vector<16x16x32xf32>
    %46 = vector.shape_cast %45 : vector<16x16x32xf32> to vector<256x32xf32>
    %c0_62 = arith.constant 0 : index
    %c0_63 = arith.constant 0 : index
    %47 = vector.load %arg12[%c0_62, %c0_63] : memref<256x288xf32, #tpu.memory_space<vmem>>, vector<256x32xf32>
    tpu.vector_store %arg12[%c0_62, %c0_63], %46 {strides = array<i32>} : memref<256x288xf32, #tpu.memory_space<vmem>>, vector<256x32xf32>,
    %c0_64 = arith.constant 0 : index
    %c1_65 = arith.constant 1 : index
    %c0_66 = arith.constant 0 : index
    %48 = vector.load %arg10[%c0_64, %c1_65, %c0_66] : memref<18x18x32xf32, #tpu.memory_space<vmem>>, vector<16x16x32xf32>
    %49 = vector.shape_cast %48 : vector<16x16x32xf32> to vector<256x32xf32>
    %c0_67 = arith.constant 0 : index
    %c32_68 = arith.constant 32 : index
    %50 = vector.load %arg12[%c0_67, %c32_68] : memref<256x288xf32, #tpu.memory_space<vmem>>, vector<256x32xf32>
    tpu.vector_store %arg12[%c0_67, %c32_68], %49 {strides = array<i32>} : memref<256x288xf32, #tpu.memory_space<vmem>>, vector<256x32xf32>,
    %c0_69 = arith.constant 0 : index
    %c2_70 = arith.constant 2 : index
    %c0_71 = arith.constant 0 : index
    %51 = vector.load %arg10[%c0_69, %c2_70, %c0_71] : memref<18x18x32xf32, #tpu.memory_space<vmem>>, vector<16x16x32xf32>
    %52 = vector.shape_cast %51 : vector<16x16x32xf32> to vector<256x32xf32>
    %c0_72 = arith.constant 0 : index
    %c64 = arith.constant 64 : index
    %53 = vector.load %arg12[%c0_72, %c64] : memref<256x288xf32, #tpu.memory_space<vmem>>, vector<256x32xf32>
    tpu.vector_store %arg12[%c0_72, %c64], %52 {strides = array<i32>} : memref<256x288xf32, #tpu.memory_space<vmem>>, vector<256x32xf32>,
    %c1_73 = arith.constant 1 : index
    %c0_74 = arith.constant 0 : index
    %c0_75 = arith.constant 0 : index
    %54 = vector.load %arg10[%c1_73, %c0_74, %c0_75] : memref<18x18x32xf32, #tpu.memory_space<vmem>>, vector<16x16x32xf32>
    %55 = vector.shape_cast %54 : vector<16x16x32xf32> to vector<256x32xf32>
    %c0_76 = arith.constant 0 : index
    %c96 = arith.constant 96 : index
    %56 = vector.load %arg12[%c0_76, %c96] : memref<256x288xf32, #tpu.memory_space<vmem>>, vector<256x32xf32>
    tpu.vector_store %arg12[%c0_76, %c96], %55 {strides = array<i32>} : memref<256x288xf32, #tpu.memory_space<vmem>>, vector<256x32xf32>,
    %c1_77 = arith.constant 1 : index
    %c1_78 = arith.constant 1 : index
    %c0_79 = arith.constant 0 : index
    %57 = vector.load %arg10[%c1_77, %c1_78, %c0_79] : memref<18x18x32xf32, #tpu.memory_space<vmem>>, vector<16x16x32xf32>
    %58 = vector.shape_cast %57 : vector<16x16x32xf32> to vector<256x32xf32>
    %c0_80 = arith.constant 0 : index
    %c128 = arith.constant 128 : index
    %59 = vector.load %arg12[%c0_80, %c128] : memref<256x288xf32, #tpu.memory_space<vmem>>, vector<256x32xf32>
    tpu.vector_store %arg12[%c0_80, %c128], %58 {strides = array<i32>} : memref<256x288xf32, #tpu.memory_space<vmem>>, vector<256x32xf32>,
    %c1_81 = arith.constant 1 : index
    %c2_82 = arith.constant 2 : index
    %c0_83 = arith.constant 0 : index
    %60 = vector.load %arg10[%c1_81, %c2_82, %c0_83] : memref<18x18x32xf32, #tpu.memory_space<vmem>>, vector<16x16x32xf32>
    %61 = vector.shape_cast %60 : vector<16x16x32xf32> to vector<256x32xf32>
    %c0_84 = arith.constant 0 : index
    %c160 = arith.constant 160 : index
    %62 = vector.load %arg12[%c0_84, %c160] : memref<256x288xf32, #tpu.memory_space<vmem>>, vector<256x32xf32>
    tpu.vector_store %arg12[%c0_84, %c160], %61 {strides = array<i32>} : memref<256x288xf32, #tpu.memory_space<vmem>>, vector<256x32xf32>,
    %c2_85 = arith.constant 2 : index
    %c0_86 = arith.constant 0 : index
    %c0_87 = arith.constant 0 : index
    %63 = vector.load %arg10[%c2_85, %c0_86, %c0_87] : memref<18x18x32xf32, #tpu.memory_space<vmem>>, vector<16x16x32xf32>
    %64 = vector.shape_cast %63 : vector<16x16x32xf32> to vector<256x32xf32>
    %c0_88 = arith.constant 0 : index
    %c192 = arith.constant 192 : index
    %65 = vector.load %arg12[%c0_88, %c192] : memref<256x288xf32, #tpu.memory_space<vmem>>, vector<256x32xf32>
    tpu.vector_store %arg12[%c0_88, %c192], %64 {strides = array<i32>} : memref<256x288xf32, #tpu.memory_space<vmem>>, vector<256x32xf32>,
    %c2_89 = arith.constant 2 : index
    %c1_90 = arith.constant 1 : index
    %c0_91 = arith.constant 0 : index
    %66 = vector.load %arg10[%c2_89, %c1_90, %c0_91] : memref<18x18x32xf32, #tpu.memory_space<vmem>>, vector<16x16x32xf32>
    %67 = vector.shape_cast %66 : vector<16x16x32xf32> to vector<256x32xf32>
    %c0_92 = arith.constant 0 : index
    %c224 = arith.constant 224 : index
    %68 = vector.load %arg12[%c0_92, %c224] : memref<256x288xf32, #tpu.memory_space<vmem>>, vector<256x32xf32>
    tpu.vector_store %arg12[%c0_92, %c224], %67 {strides = array<i32>} : memref<256x288xf32, #tpu.memory_space<vmem>>, vector<256x32xf32>,
    %c2_93 = arith.constant 2 : index
    %c2_94 = arith.constant 2 : index
    %c0_95 = arith.constant 0 : index
    %69 = vector.load %arg10[%c2_93, %c2_94, %c0_95] : memref<18x18x32xf32, #tpu.memory_space<vmem>>, vector<16x16x32xf32>
    %70 = vector.shape_cast %69 : vector<16x16x32xf32> to vector<256x32xf32>
    %c0_96 = arith.constant 0 : index
    %c256 = arith.constant 256 : index
    %71 = vector.load %arg12[%c0_96, %c256] : memref<256x288xf32, #tpu.memory_space<vmem>>, vector<256x32xf32>
    tpu.vector_store %arg12[%c0_96, %c256], %70 {strides = array<i32>} : memref<256x288xf32, #tpu.memory_space<vmem>>, vector<256x32xf32>,
    %c0_97 = arith.constant 0 : index
    %c0_98 = arith.constant 0 : index
    %72 = vector.load %arg12[%c0_97, %c0_98] : memref<256x288xf32, #tpu.memory_space<vmem>>, vector<256x288xf32>
    %73 = arith.truncf %72 : vector<256x288xf32> to vector<256x288xbf16>
    %c0_99 = arith.constant 0 : index
    %c0_100 = arith.constant 0 : index
    %74 = vector.load %arg4[%c0_99, %c0_100] : memref<288x32xbf16, #tpu.memory_space<vmem>>, vector<288x32xbf16>
    %cst_101 = arith.constant dense<0.000000e+00> : vector<256x32xf32>
    %75 = tpu.matmul %73, %74, %cst_101 {dimension_numbers = #tpu.dot_dimension_numbers<[1], [0], [0], [1], [0, 0, 1, 1], [], []>} : vector<256x288xbf16>, vector<288x32xbf16>, vector<256x32xf32> -> vector<256x32xf32>
    %c0_102 = arith.constant 0 : index
    %c0_103 = arith.constant 0 : index
    %76 = vector.load %arg5[%c0_102, %c0_103] : memref<1x32xf32, #tpu.memory_space<vmem>>, vector<1x32xf32>
    %77 = vector.broadcast %76 : vector<1x32xf32> to vector<256x32xf32>
    %78 = arith.addf %75, %77 : vector<256x32xf32>
    %cst_104 = arith.constant 0.000000e+00 : f32
    %79 = vector.broadcast %cst_104 : f32 to vector<256x32xf32>
    %80 = arith.maximumf %78, %79 : vector<256x32xf32>
    %81 = arith.truncf %80 : vector<256x32xf32> to vector<256x32xbf16>
    %c0_105 = arith.constant 0 : index
    %c0_106 = arith.constant 0 : index
    %82 = vector.load %arg6[%c0_105, %c0_106] : memref<32x15xbf16, #tpu.memory_space<vmem>>, vector<32x15xbf16>
    %cst_107 = arith.constant dense<0.000000e+00> : vector<256x15xf32>
    %83 = tpu.matmul %81, %82, %cst_107 {dimension_numbers = #tpu.dot_dimension_numbers<[1], [0], [0], [1], [0, 0, 1, 1], [], []>} : vector<256x32xbf16>, vector<32x15xbf16>, vector<256x15xf32> -> vector<256x15xf32>
    %c0_108 = arith.constant 0 : index
    %c0_109 = arith.constant 0 : index
    %84 = vector.load %arg7[%c0_108, %c0_109] : memref<1x15xf32, #tpu.memory_space<vmem>>, vector<1x15xf32>
    %85 = vector.broadcast %84 : vector<1x15xf32> to vector<256x15xf32>
    %86 = arith.addf %83, %85 : vector<256x15xf32>
    %c0_110 = arith.constant 0 : index
    %c0_111 = arith.constant 0 : index
    %c0_112 = arith.constant 0 : index
    %87 = vector.load %arg8[%c0_110, %c0_111, %c0_112] : memref<1x256x15xf32, #tpu.memory_space<vmem>>, vector<1x256x15xf32>
    %88 = vector.shape_cast %87 : vector<1x256x15xf32> to vector<256x15xf32>
    %89 = vector.shape_cast %86 : vector<256x15xf32> to vector<1x256x15xf32>
    tpu.vector_store %arg8[%c0_110, %c0_111, %c0_112], %89 {strides = array<i32>} : memref<1x256x15xf32, #tpu.memory_space<vmem>>, vector<1x256x15xf32>,
    return
  }
  func.func @transform_0(%arg0: i32) -> (i32, i32, i32, i32) {
    %c0_i32 = arith.constant 0 : i32
    %c0_i32_0 = arith.constant 0 : i32
    %c0_i32_1 = arith.constant 0 : i32
    %c0_i32_2 = arith.constant 0 : i32
    return %arg0, %c0_i32, %c0_i32_0, %c0_i32_1 : i32, i32, i32, i32
  }
  func.func @transform_1(%arg0: i32) -> (i32, i32) {
    %c0_i32 = arith.constant 0 : i32
    %c0_i32_0 = arith.constant 0 : i32
    %c0_i32_1 = arith.constant 0 : i32
    return %c0_i32, %c0_i32_0 : i32, i32
  }
  func.func @transform_2(%arg0: i32) -> (i32, i32) {
    %c0_i32 = arith.constant 0 : i32
    %c0_i32_0 = arith.constant 0 : i32
    %c0_i32_1 = arith.constant 0 : i32
    return %c0_i32, %c0_i32_0 : i32, i32
  }
  func.func @transform_3(%arg0: i32) -> (i32, i32) {
    %c0_i32 = arith.constant 0 : i32
    %c0_i32_0 = arith.constant 0 : i32
    %c0_i32_1 = arith.constant 0 : i32
    return %c0_i32, %c0_i32_0 : i32, i32
  }
  func.func @transform_4(%arg0: i32) -> (i32, i32) {
    %c0_i32 = arith.constant 0 : i32
    %c0_i32_0 = arith.constant 0 : i32
    %c0_i32_1 = arith.constant 0 : i32
    return %c0_i32, %c0_i32_0 : i32, i32
  }
  func.func @transform_5(%arg0: i32) -> (i32, i32) {
    %c0_i32 = arith.constant 0 : i32
    %c0_i32_0 = arith.constant 0 : i32
    %c0_i32_1 = arith.constant 0 : i32
    return %c0_i32, %c0_i32_0 : i32, i32
  }
  func.func @transform_6(%arg0: i32) -> (i32, i32) {
    %c0_i32 = arith.constant 0 : i32
    %c0_i32_0 = arith.constant 0 : i32
    %c0_i32_1 = arith.constant 0 : i32
    return %c0_i32, %c0_i32_0 : i32, i32
  }
  func.func @transform_7(%arg0: i32) -> (i32, i32, i32) {
    %c0_i32 = arith.constant 0 : i32
    %c0_i32_0 = arith.constant 0 : i32
    %c0_i32_1 = arith.constant 0 : i32
    return %arg0, %c0_i32, %c0_i32_0 : i32, i32, i32
  }
}

</mosaic_0001>

<bundles_post_ra>
// kernel: generalized_rcnn_forward.1
= control target key start
LH: loop header
LB: loop body
LE: loop exit
PB: predicated region body
PF: predicated region fallthrough
CT: control target
= control target key end

     0   :  { %12 = vsyncpa [#allocation7], 0  ;;  %s8370_s0 = inlined_call_operand.vmem [shape: f32[4,16,16,4], index: 0, kind: input, shape index: {}]   ;;  %s8371_s1 = inlined_call_operand.hbm [shape: bf16[36,32], index: 1, kind: input, shape index: {}]   ;;  %s8372_s2 = inlined_call_operand.hbm [shape: f32[1,32], index: 2, kind: input, shape index: {}]   ;;  %s8373_s3 = inlined_call_operand.hbm [shape: bf16[288,32], index: 3, kind: input, shape index: {}]   ;;  %s8374_s4 = inlined_call_operand.hbm [shape: f32[1,32], index: 4, kind: input, shape index: {}]   ;;  %s8375_s5 = inlined_call_operand.hbm [shape: bf16[32,15], index: 5, kind: input, shape index: {}]   ;;  %s8376_s6 = inlined_call_operand.hbm [shape: f32[1,15], index: 6, kind: input, shape index: {}]   ;;  %s8377_s7 = inlined_call_operand.vmem [shape: f32[4,256,15], index: 7, kind: output, shape index: {}]  }
   0x1   :  { %13 = vsyncpa [#allocation9], 0 }
   0x2   :  { %14 = vsyncpa [#allocation12], 0 }
   0x3   :  { %15 = vsyncpa [#allocation15], 0  ;;  %s5685_s24 = smov 0  }
   0x4 LB: > { %s5626_s25 = smov [#allocation8]   ;;  %s5691_s27 = sadd.s32 4294967295, %s5624_s24   ;;  %s5624_s24 = sphi %s5685_s24, %s21_s24  }
   0x5   : > { %s230_s26 = sshll.u32 %s5626_s25, 4  ;;  %p4945_p0 = scmp.ge.s32.totalorder %s5624_s24, 1  ;;  %s5696_s26 = int_to_ptr.vmem [resolvable:$true] %s230_s26 }
   0x6   : > { %p204_p1 = scmp.lt.s32.totalorder %s5624_s24, 5  ;;  %p8378_p2 = scmp.eq.s32.totalorder %s5691_s27, 0 }
   0x7   : > { %s5627_s29 = smov [#allocation11]   ;;  %s5628_s8 = smov [#allocation6]  }
   0x8   : > { %p5698_p3 = pnand %p4945_p0, %p204_p1  ;;  %s254_s30 = sshll.u32 %s5627_s29, 4  ;;  %s5704_s30 = int_to_ptr.vmem [resolvable:$true] %s254_s30 }
   0x9   : > { %s216_s9 = sshll.u32 %s5628_s8, 4  ;;  %s5629_s11 = smov [#allocation10]   ;;  %s5712_s9 = int_to_ptr.vmem [resolvable:$true] %s216_s9 }
   0xa   : > { %s8380_s28 = scalar_select %p5698_p3, 1, 0 }
   0xb   : > { %p5351_p4 = pneg %p5698_p3  ;;  %s5714_s12 = sshll.u32 %s5629_s11, 4  ;;  %s241_s12 = int_to_ptr.vmem [resolvable:$true] %s5714_s12 }
   0xc   : > { %s5434_s15 = scalar_lea.hbm %s8372_s2, 16 }
   0xd   : > { %p5708_p5 = pnand %p8378_p2, %p5351_p4  ;;  %p5435_p6 = scmp.ne.s32.totalorder %s8372_s2, %s5434_s15 }
   0xe   : > { %p5441_p10 = scmp.lt.u32.totalorder %s5434_s15, %s8372_s2 }
   0xf   : > { %p5724_p7 = pneg %p5708_p5 }
  0x11   : > { %p5437_p8 = pnand %p5724_p7, %p5435_p6 }
  0x13   : > { %p5438_p9 = pneg %p5437_p8 }
  0x15   : > { %p5443_p11 = pnand %p5441_p10, %p5438_p9 }
  0x17   : > { %5446 = shalt.err (!%p5443_p11)
}
  0x18   : > { %s5447_s21 = scalar_lea.vmem %s5696_s26, 16  ;;  %s5454_s22 = scalar_lea.vmem %s5696_s26, 32 }
  0x19   : > { %p5448_p12 = scmp.ne.s32.totalorder %s5696_s26, %s5447_s21  ;;  %p5455_p1 = scmp.lt.s32.totalorder %s5696_s26, %s5696_s26 }
  0x1a   : > { %p5456_p4 = scmp.lt.s32.totalorder %s5454_s22, %s5447_s21 }
  0x1b   : > { %p5450_p13 = pnand %p5448_p12, %p5724_p7 }
  0x1c   : > { %p5457_p6 = por %p5456_p4, %p5455_p1 }
  0x1d   : > { %p5451_p0 = pneg %p5450_p13 }
  0x1f   : > { %p5458_p8 = pnand %p5457_p6, %p5451_p0 }
  0x21   : > { %5461 = shalt.err (!%p5458_p8)
}
  0x22   : > { %5357 = dma.hbm_to_vmem [thread:$0]  (!%p5708_p5), %s8372_s2, 16, %s5696_s26, [#allocation9]  }
  0x23   : > { %s5462_s11 = scalar_lea.hbm %s8374_s4, 16 }
  0x24   : > { %p5463_p9 = scmp.ne.s32.totalorder %s8374_s4, %s5462_s11  ;;  %p5469_p12 = scmp.lt.u32.totalorder %s5462_s11, %s8374_s4 }
  0x26   : > { %p5465_p10 = pnand %p5463_p9, %p5724_p7 }
  0x28   : > { %p5466_p11 = pneg %p5465_p10 }
  0x2a   : > { %p5471_p13 = pnand %p5469_p12, %p5466_p11 }
  0x2c   : > { %5474 = shalt.err (!%p5471_p13)
}
  0x2d   : > { %s5475_s26 = scalar_lea.vmem %s5704_s30, 16  ;;  %s5482_s17 = scalar_lea.vmem %s5704_s30, 32 }
  0x2e   : > { %p5476_p0 = scmp.ne.s32.totalorder %s5704_s30, %s5475_s26  ;;  %p5483_p6 = scmp.lt.s32.totalorder %s5704_s30, %s5704_s30 }
  0x2f   : > { %p5484_p8 = scmp.lt.s32.totalorder %s5482_s17, %s5475_s26 }
  0x30   : > { %p5478_p1 = pnand %p5476_p0, %p5724_p7 }
  0x31   : > { %p5485_p9 = por %p5484_p8, %p5483_p6 }
  0x32   : > { %p5479_p4 = pneg %p5478_p1 }
  0x34   : > { %p5486_p10 = pnand %p5485_p9, %p5479_p4 }
  0x36   : > { %5489 = shalt.err (!%p5486_p10)
}
  0x37   : > { %5363 = dma.hbm_to_vmem [thread:$0]  (!%p5708_p5), %s8374_s4, 16, %s5704_s30, [#allocation12]  }
  0x38   : > { %s5490_s23 = scalar_lea.hbm %s8371_s1, 320 }
  0x39   : > { %p5491_p11 = scmp.ne.s32.totalorder %s8371_s1, %s5490_s23  ;;  %p5497_p0 = scmp.lt.u32.totalorder %s5490_s23, %s8371_s1 }
  0x3b   : > { %p5493_p12 = pnand %p5491_p11, %p5724_p7 }
  0x3d   : > { %p5494_p13 = pneg %p5493_p12 }
  0x3f   : > { %p5499_p1 = pnand %p5497_p0, %p5494_p13 }
  0x41   : > { %5502 = shalt.err (!%p5499_p1)
}
  0x42   : > { %s5503_s30 = scalar_lea.vmem %s5712_s9, 320  ;;  %p5511_p9 = scmp.lt.s32.totalorder %s5712_s9, %s5712_s9 }
  0x43   : > { %p5504_p4 = scmp.ne.s32.totalorder %s5712_s9, %s5503_s30  ;;  %p5512_p10 = scmp.lt.s32.totalorder %s5503_s30, %s5503_s30 }
  0x45   : > { %p5506_p6 = pnand %p5504_p4, %p5724_p7  ;;  %p5513_p11 = por %p5512_p10, %p5511_p9 }
  0x47   : > { %p5507_p8 = pneg %p5506_p6 }
  0x49   : > { %p5514_p12 = pnand %p5513_p11, %p5507_p8 }
  0x4b   : > { %5517 = shalt.err (!%p5514_p12)
}
  0x4c   : > { %s5630_s13 = smov 64   ;;  %s5631_s14 = smov 4  }
  0x4d   : > { %5354 = dma.hbm_to_vmem [thread:$0]  (!%p5708_p5), %s8371_s1, 320, %s5712_s9, [#allocation7], %s5630_s13, %s5630_s13, %s5631_s14  }
  0x4e   : > { %s5518_s19 = scalar_lea.hbm %s8373_s3, 2304 }
  0x4f   : > { %p5519_p13 = scmp.ne.s32.totalorder %s8373_s3, %s5518_s19  ;;  %p5525_p4 = scmp.lt.u32.totalorder %s5518_s19, %s8373_s3 }
  0x51   : > { %p5521_p0 = pnand %p5519_p13, %p5724_p7 }
  0x53   : > { %p5522_p1 = pneg %p5521_p0 }
  0x55   : > { %p5527_p6 = pnand %p5525_p4, %p5522_p1 }
  0x57   : > { %5530 = shalt.err (!%p5527_p6)
}
  0x58   : > { %s5531_s25 = scalar_lea.vmem %s241_s12, 2304  ;;  %p5539_p11 = scmp.lt.s32.totalorder %s241_s12, %s241_s12 }
  0x59   : > { %p5532_p8 = scmp.ne.s32.totalorder %s241_s12, %s5531_s25  ;;  %p5540_p12 = scmp.lt.s32.totalorder %s5531_s25, %s5531_s25 }
  0x5b   : > { %p5534_p9 = pnand %p5532_p8, %p5724_p7  ;;  %p5541_p2 = por %p5540_p12, %p5539_p11 }
  0x5d   : > { %p5535_p10 = pneg %p5534_p9 }
  0x5f   : > { %p5542_p3 = pnand %p5541_p2, %p5535_p10 }
  0x61   : > { %5545 = shalt.err (!%p5542_p3)
}
  0x62   : > { %5360 = dma.hbm_to_vmem [thread:$0]  (!%p5708_p5), %s8373_s3, 2304, %s241_s12, [#allocation9], %s5630_s13, %s5630_s13, %s5631_s14  }
  0x63   : > { %s5632_s8 = smov [#allocation13]   ;;  %s5633_s30 = smov [#allocation14]  }
  0x64   : > { %s264_s11 = sshll.u32 %s5632_s8, 4  ;;  %s278_s15 = sshll.u32 %s5633_s30, 4  ;;  %s265_s11 = int_to_ptr.vmem [resolvable:$true] %s264_s11  ;;  %s279_s15 = int_to_ptr.vmem [resolvable:$true] %s278_s15 }
  0x65   : > { %s5546_s17 = scalar_lea.hbm %s8375_s5, 256 }
  0x66   : > { %p5547_p2 = scmp.ne.s32.totalorder %s8375_s5, %s5546_s17  ;;  %p5553_p0 = scmp.lt.u32.totalorder %s5546_s17, %s8375_s5 }
  0x68   : > { %p5549_p3 = pnand %p5547_p2, %p5724_p7 }
  0x6a   : > { %p5550_p13 = pneg %p5549_p3 }
  0x6c   : > { %p5555_p1 = pnand %p5553_p0, %p5550_p13 }
  0x6e   : > { %5558 = shalt.err (!%p5555_p1)
}
  0x6f   : > { %s5559_s12 = scalar_lea.vmem %s265_s11, 256  ;;  %p5567_p9 = scmp.lt.s32.totalorder %s265_s11, %s265_s11 }
  0x70   : > { %p5560_p4 = scmp.ne.s32.totalorder %s265_s11, %s5559_s12  ;;  %p5568_p10 = scmp.lt.s32.totalorder %s5559_s12, %s5559_s12 }
  0x72   : > { %p5562_p6 = pnand %p5560_p4, %p5724_p7  ;;  %p5569_p11 = por %p5568_p10, %p5567_p9 }
  0x74   : > { %p5563_p8 = pneg %p5562_p6 }
  0x76   : > { %p5570_p12 = pnand %p5569_p11, %p5563_p8 }
  0x78   : > { %5573 = shalt.err (!%p5570_p12)
}
  0x79   : > { %5366 = dma.hbm_to_vmem [thread:$0]  (!%p5708_p5), %s8375_s5, 256, %s265_s11, [#allocation12], %s5630_s13, %s5630_s13, %s5631_s14  }
  0x7a   : > { %s5574_s8 = scalar_lea.hbm %s8376_s6, 16 }
  0x7b   : > { %p5575_p2 = scmp.ne.s32.totalorder %s8376_s6, %s5574_s8  ;;  %p5581_p0 = scmp.lt.u32.totalorder %s5574_s8, %s8376_s6 }
  0x7d   : > { %p5577_p3 = pnand %p5575_p2, %p5724_p7 }
  0x7f   : > { %p5578_p13 = pneg %p5577_p3 }
  0x81   : > { %p5583_p1 = pnand %p5581_p0, %p5578_p13 }
  0x83   : > { %5586 = shalt.err (!%p5583_p1)
}
  0x84   : > { %s5587_s19 = scalar_lea.vmem %s279_s15, 16  ;;  %s5594_s13 = scalar_lea.vmem %s279_s15, 32 }
  0x85   : > { %p5588_p4 = scmp.ne.s32.totalorder %s279_s15, %s5587_s19  ;;  %p5595_p9 = scmp.lt.s32.totalorder %s279_s15, %s279_s15 }
  0x86   : > { %p5596_p10 = scmp.lt.s32.totalorder %s5594_s13, %s5587_s19 }
  0x87   : > { %p5590_p6 = pnand %p5588_p4, %p5724_p7 }
  0x88   : > { %p5597_p11 = por %p5596_p10, %p5595_p9 }
  0x89   : > { %p5591_p8 = pneg %p5590_p6 }
  0x8b   : > { %p5598_p12 = pnand %p5597_p11, %p5591_p8 }
  0x8d   : > { %5601 = shalt.err (!%p5598_p12)
}
  0x8e   : > { %5369 = dma.hbm_to_vmem [thread:$0]  (!%p5708_p5), %s8376_s6, 16, %s279_s15, [#allocation15]  }
  0x8f   : > { %p8383_p2 = scmp.ne.s32.totalorder %s8380_s28, 0 }
  0x90   : > { %p8384_p3 = scmp.eq.s32.totalorder (!%p8383_p2), %s5691_s27, 0 }
  0x91   : > { %299 = sbr.rel (%p8383_p2) target bundleno = 1684 (0x694), region = 48 }
  0x98   : > { %5607 = dma.done.wait (%p8384_p3), [#allocation7], 320   ;;  %p8385_p7 = pmov %p8384_p3 }
  0x99   : > { %p8386_p13 = pmov %p8384_p3 }
  0x9a   : > { %5609 = vsyncadd (%p8385_p7), [#allocation7], 4294966976 }
  0x9b   : > { %5611 = dma.done.wait (%p8386_p13), [#allocation9], 2320   ;;  %p8387_p0 = pmov %p8384_p3 }
  0x9d   : > { %5613 = vsyncadd (%p8387_p0), [#allocation9], 4294964976  ;;  %p8388_p1 = pmov %p8387_p0 }
  0x9e   : > { %p8389_p5 = pmov %p8387_p0 }
  0x9f   : > { %5615 = dma.done.wait (%p8388_p1), [#allocation12], 272  }
  0xa0   : > { %5617 = vsyncadd (%p8389_p5), [#allocation12], 4294967024  ;;  %p8390_p4 = pmov %p8387_p0 }
  0xa1   : > { %p8391_p6 = pmov %p8387_p0 }
  0xa2   : > { %5619 = dma.done.wait (%p8390_p4), [#allocation15], 16  }
  0xa3   : > { %5621 = vsyncadd (%p8391_p6), [#allocation15], 4294967280  ;;  %vm362_vm0 = vcmask 31744   ;;  %vm365_vm1 = vcmask 25600   ;;  %v5634_v0 = vmov 0.0   ;;  %p351_p8 = scmp.lt.s32.totalorder %s5691_s27, 3 }
  0xa4   : > { %363 = vst.msk [vmem:[#allocation2] sm:$0xff] %vm362_vm0, %v5634_v0  ;;  %364 = vst.msk [vmem:[#allocation2 + $0x8] sm:$0xff] %vm362_vm0, %v5634_v0  ;;  %s5635_s20 = smov 4   ;;  %s5636_s21 = smov 8   ;;  %v5409_v43 = vld [vmem:[#allocation6] sm:$0xff]   ;;  %v5410_v45 = vld [vmem:[#allocation6 + $0x8] sm:$0xff]  }
  0xa5   : > { %367 = vst.msk [vmem:[#allocation2 + $0x18] sm:$0xff] %vm362_vm0, %v5634_v0  ;;  %368 = vst.msk [vmem:[#allocation2 + $0x20] sm:$0xff] %vm362_vm0, %v5634_v0  ;;  %s8393_s27 = smov (!%p351_p8, %s5691_s27), 3  ;;  %s5637_s22 = smov 12   ;;  %5209 = vmatprep.subr.bf16.mxu0 %v5409_v43  ;;  %5319 = vmatprep.subr.bf16.mxu1 %v5409_v43  ;;  %vm2216_vm2 = vcmask 1041408   ;;  %vm707_vm3 = vcmask 64544  }
  0xa6   : > { %370 = vst.msk [vmem:[#allocation2 + $0x30] sm:$0xff] %vm362_vm0, %v5634_v0  ;;  %371 = vst.msk [vmem:[#allocation2 + $0x38] sm:$0xff] %vm362_vm0, %v5634_v0  ;;  %s5040_s28 = sshll.u32 %s8393_s27, 8  ;;  %s5638_s12 = smov 16   ;;  %5210 = vmatpush3.bf16.msra.mxu0 %v5409_v43  ;;  %5322 = vmatpush3.bf16.msra.mxu1 %v5409_v43  ;;  %vm900_vm4 = vcmask 97344   ;;  %vm1093_vm5 = vcmask 130144  }
  0xa7   : > { %373 = vst.msk [vmem:[#allocation2 + $0x48] sm:$0xff] %vm362_vm0, %v5634_v0  ;;  %374 = vst.msk [vmem:[#allocation2 + $0x50] sm:$0xff] %vm362_vm0, %v5634_v0  ;;  %s5993_s15 = scalar_lea.vmem %s8370_s0, %s5040_s28  ;;  %s5639_s23 = smov 20   ;;  %5211 = vmatprep.subr.bf16.mxu0 %v5410_v45  ;;  %5320 = vmatprep.subr.bf16.mxu1 %v5410_v45  ;;  %v5411_v47 = vld [vmem:[#allocation6 + $0x10] ss:$0 sps:$4 sm:$0x33]  }
  0xa8   : > { %376 = vst.msk [vmem:[#allocation2 + $0x60] sm:$0xff] %vm362_vm0, %v5634_v0  ;;  %377 = vst.msk [vmem:[#allocation2 + $0x68] sm:$0xff] %vm362_vm0, %v5634_v0  ;;  %v418_v1 = vld [vmem:[%s5993_s15] sm:$0xff]  ;;  %v419_v2 = vld [vmem:[%s5993_s15 + $0x8] sm:$0xff]  ;;  %s5640_s25 = smov 24   ;;  %s5641_s9 = smov 28  }
  0xa9   : > { %379 = vst.msk [vmem:[#allocation2 + $0x78] sm:$0xff] %vm362_vm0, %v5634_v0  ;;  %380 = vst.msk [vmem:[#allocation2 + $0x80] sm:$0xff] %vm362_vm0, %v5634_v0  ;;  %v420_v3 = vld [vmem:[%s5993_s15 + $0x10] sm:$0xff]  ;;  %v421_v7 = vld [vmem:[%s5993_s15 + $0x18] sm:$0xff]  ;;  %s5642_s29 = smov 32   ;;  %v2218_v48 = vsel %vm2216_vm2, %v5411_v47, 0  ;;  %s8243_s17 = scalar_lea.vmem %s8377_s7, %s5040_s28 }
  0xaa   : > { %382 = vst.msk [vmem:[#allocation2 + $0x90] sm:$0xff] %vm362_vm0, %v5634_v0  ;;  %383 = vst.msk [vmem:[#allocation2 + $0x98] sm:$0xff] %vm362_vm0, %v5634_v0  ;;  %v422_v8 = vld [vmem:[%s5993_s15 + $0x20] sm:$0xff]  ;;  %v423_v9 = vld [vmem:[%s5993_s15 + $0x28] sm:$0xff]  ;;  %5212 = vmatpush3.bf16.msra.mxu0 %v5410_v45  ;;  %5323 = vmatpush3.bf16.msra.mxu1 %v5410_v45  ;;  %vm1286_vm6 = vcmask 162944   ;;  %vm1479_vm7 = vcmask 195744  }
  0xab   : > { %385 = vst.msk [vmem:[#allocation2 + $0xa8] sm:$0xff] %vm362_vm0, %v5634_v0  ;;  %386 = vst.msk [vmem:[#allocation2 + $0xb0] sm:$0xff] %vm362_vm0, %v5634_v0  ;;  %v547_v4 = vld [vmem:[#allocation2 + $0x1] sm:$0xff]  ;;  %v424_v10 = vld [vmem:[%s5993_s15 + $0x30] sm:$0xff]  ;;  %5325 = vmatprep.subr.msk.bf16.mxu0 %vm2216_vm2, %v5411_v47  ;;  %5326 = vmatprep.subr.msk.bf16.mxu1 %vm2216_vm2, %v5411_v47  ;;  %vm1673_vm8 = vcmask 228544   ;;  %vm1866_vm9 = vcmask 261344  }
  0xac   : > { %388 = vst.msk [vmem:[#allocation2 + $0xc0] sm:$0xff] %vm362_vm0, %v5634_v0  ;;  %389 = vst.msk [vmem:[#allocation2 + $0xc8] sm:$0xff] %vm362_vm0, %v5634_v0  ;;  %611 = vrot.lane.b32.xlu0 %v547_v4, %s5635_s20  ;;  %v425_v11 = vld [vmem:[%s5993_s15 + $0x38] sm:$0xff]  ;;  %v426_v12 = vld [vmem:[%s5993_s15 + $0x40] sm:$0xff]  ;;  %vm2059_vm10 = vcmask 294144   ;;  %vm2167_vm11 = vcmask 293888  }
  0xad   : > { %391 = vst.msk [vmem:[#allocation2 + $0xd8] sm:$0xff] %vm362_vm0, %v5634_v0  ;;  %392 = vst.msk [vmem:[#allocation2 + $0xe0] sm:$0xff] %vm362_vm0, %v5634_v0  ;;  %v427_v13 = vld [vmem:[%s5993_s15 + $0x48] sm:$0xff]  ;;  %v483_v14 = vld [vmem:[#allocation2] sm:$0xff]  ;;  %vm2413_vm12 = vcmask 261120   ;;  %vm2416_vm13 = vcmask 254976  }
  0xae   : > { %394 = vst.msk [vmem:[#allocation2 + $0xf0] sm:$0xff] %vm362_vm0, %v5634_v0  ;;  %395 = vst.msk [vmem:[#allocation2 + $0xf8] sm:$0xff] %vm362_vm0, %v5634_v0  ;;  %v740_v15 = vld [vmem:[#allocation2 + $0x2] sm:$0xff]  ;;  %v428_v31 = vld [vmem:[%s5993_s15 + $0x50] sm:$0xff]  ;;  %5214 = vmatpush3.bf16.msra.mxu0 %v2218_v48  ;;  %5324 = vmatpush3.bf16.msra.mxu1 %v2218_v48  ;;  %s5643_s8 = smov 64   ;;  %s5644_s30 = smov 96  }
  0xaf   : > { %397 = vst.msk [vmem:[#allocation2 + $0x108] sm:$0xff] %vm362_vm0, %v5634_v0  ;;  %398 = vst.msk [vmem:[#allocation2 + $0x110] sm:$0xff] %vm362_vm0, %v5634_v0  ;;  %v484_v16 = vld [vmem:[#allocation2 + $0x8] sm:$0xff]  ;;  %v429_v32 = vld [vmem:[%s5993_s15 + $0x58] sm:$0xff]  ;;  %vm2726_vm14 = vcmask 523520   ;;  %vm2919_vm15 = vcmask 785920  }
  0xb0   : > { %400 = vst.msk [vmem:[#allocation2 + $0x120] sm:$0xff] %vm362_vm0, %v5634_v0  ;;  %401 = vst.msk [vmem:[#allocation2 + $0x128] sm:$0xff] %vm362_vm0, %v5634_v0  ;;  %v430_v38 = vld [vmem:[%s5993_s15 + $0x60] sm:$0xff]  ;;  %v431_v40 = vld [vmem:[%s5993_s15 + $0x68] sm:$0xff] }
  0xb1   : > { %403 = vst.msk [vmem:[#allocation2 + $0x138] sm:$0xff] %vm362_vm0, %v5634_v0  ;;  %404 = vst.msk [vmem:[#allocation2 + $0x140] sm:$0xff] %vm362_vm0, %v5634_v0  ;;  %v432_v51 = vld [vmem:[%s5993_s15 + $0x70] sm:$0xff]  ;;  %v433_v52 = vld [vmem:[%s5993_s15 + $0x78] sm:$0xff] }
  0xb2   : > { %406 = vst.msk [vmem:[#allocation2 + $0x150] sm:$0xff] %vm362_vm0, %v5634_v0  ;;  %407 = vst.msk [vmem:[#allocation2 + $0x158] sm:$0xff] %vm362_vm0, %v5634_v0  ;;  %v434_v58 = vld [vmem:[%s5993_s15 + $0x80] sm:$0xff]  ;;  %v435_v60 = vld [vmem:[%s5993_s15 + $0x88] sm:$0xff] }
  0xb3   : > { %409 = vst.msk [vmem:[#allocation2 + $0x168] sm:$0xff] %vm362_vm0, %v5634_v0  ;;  %410 = vst.msk [vmem:[#allocation2 + $0x170] sm:$0xff] %vm362_vm0, %v5634_v0 }
  0xb4   : > { %412 = vst.msk [vmem:[#allocation2 + $0x180] sm:$0xff] %vm362_vm0, %v5634_v0  ;;  %413 = vst.msk [vmem:[#allocation2 + $0x188] sm:$0xff] %vm362_vm0, %v5634_v0 }
  0xb5   : > { %415 = vst.msk [vmem:[#allocation2 + $0x198] sm:$0xff] %vm362_vm0, %v5634_v0  ;;  %416 = vst.msk [vmem:[#allocation2 + $0x1a0] sm:$0xff] %vm362_vm0, %v5634_v0 }
  0xb6   : > { %366 = vst.msk [vmem:[#allocation2 + $0x10] sm:$0x3] %vm365_vm1, %v5634_v0  ;;  %369 = vst.msk [vmem:[#allocation2 + $0x28] sm:$0x3] %vm365_vm1, %v5634_v0 }
  0xb7   : > { %372 = vst.msk [vmem:[#allocation2 + $0x40] sm:$0x3] %vm365_vm1, %v5634_v0  ;;  %375 = vst.msk [vmem:[#allocation2 + $0x58] sm:$0x3] %vm365_vm1, %v5634_v0 }
  0xb8   : > { %378 = vst.msk [vmem:[#allocation2 + $0x70] sm:$0x3] %vm365_vm1, %v5634_v0  ;;  %381 = vst.msk [vmem:[#allocation2 + $0x88] sm:$0x3] %vm365_vm1, %v5634_v0 }
  0xb9   : > { %384 = vst.msk [vmem:[#allocation2 + $0xa0] sm:$0x3] %vm365_vm1, %v5634_v0  ;;  %387 = vst.msk [vmem:[#allocation2 + $0xb8] sm:$0x3] %vm365_vm1, %v5634_v0 }
  0xba   : > { %390 = vst.msk [vmem:[#allocation2 + $0xd0] sm:$0x3] %vm365_vm1, %v5634_v0  ;;  %393 = vst.msk [vmem:[#allocation2 + $0xe8] sm:$0x3] %vm365_vm1, %v5634_v0 }
  0xbb   : > { %396 = vst.msk [vmem:[#allocation2 + $0x100] sm:$0x3] %vm365_vm1, %v5634_v0  ;;  %399 = vst.msk [vmem:[#allocation2 + $0x118] sm:$0x3] %vm365_vm1, %v5634_v0 }
  0xbc   : > { %402 = vst.msk [vmem:[#allocation2 + $0x130] sm:$0x3] %vm365_vm1, %v5634_v0  ;;  %405 = vst.msk [vmem:[#allocation2 + $0x148] sm:$0x3] %vm365_vm1, %v5634_v0 }
  0xbd   : > { %408 = vst.msk [vmem:[#allocation2 + $0x160] sm:$0x3] %vm365_vm1, %v5634_v0  ;;  %411 = vst.msk [vmem:[#allocation2 + $0x178] sm:$0x3] %vm365_vm1, %v5634_v0  ;;  %v741_v5 = vld [vmem:[#allocation2 + $0xa] sm:$0xff] }
  0xbe   : > { %414 = vst.msk [vmem:[#allocation2 + $0x190] sm:$0x3] %vm365_vm1, %v5634_v0  ;;  %417 = vst.msk [vmem:[#allocation2 + $0x1a8] sm:$0x3] %vm365_vm1, %v5634_v0  ;;  %806 = vrot.lane.b32.xlu1 %v741_v5, %s5636_s21  ;;  %v548_v6 = vld [vmem:[#allocation2 + $0x9] sm:$0xff]  ;;  %vm4795_vm1 = vcmask 121856  }
  0xbf   : > { %451 = vst.msk [vmem:[#allocation2 + $0x19] sm:$0xff] %vm362_vm0, %v418_v1  ;;  %452 = vst.msk [vmem:[#allocation2 + $0x21] sm:$0xff] %vm362_vm0, %v419_v2  ;;  %613 = vrot.lane.b32.xlu0 %v548_v6, %s5635_s20 }
  0xc0   : > { %453 = vst.msk [vmem:[#allocation2 + $0x31] sm:$0xff] %vm362_vm0, %v420_v3  ;;  %454 = vst.msk [vmem:[#allocation2 + $0x39] sm:$0xff] %vm362_vm0, %v421_v7 }
  0xc1   : > { %455 = vst.msk [vmem:[#allocation2 + $0x49] sm:$0xff] %vm362_vm0, %v422_v8  ;;  %456 = vst.msk [vmem:[#allocation2 + $0x51] sm:$0xff] %vm362_vm0, %v423_v9 }
  0xc2   : > { %457 = vst.msk [vmem:[#allocation2 + $0x61] sm:$0xff] %vm362_vm0, %v424_v10  ;;  %458 = vst.msk [vmem:[#allocation2 + $0x69] sm:$0xff] %vm362_vm0, %v425_v11 }
  0xc3   : > { %459 = vst.msk [vmem:[#allocation2 + $0x79] sm:$0xff] %vm362_vm0, %v426_v12  ;;  %460 = vst.msk [vmem:[#allocation2 + $0x81] sm:$0xff] %vm362_vm0, %v427_v13  ;;  %804 = vrot.lane.b32.xlu0 %v740_v15, %s5636_s21 }
  0xc4   : > { %515 = vst.msk [vmem:[#allocation4] sm:$0xff] %vm362_vm0, %v483_v14  ;;  %516 = vst.msk [vmem:[#allocation4 + $0x8] sm:$0xff] %vm362_vm0, %v484_v16 }
  0xc5   : > { %461 = vst.msk [vmem:[#allocation2 + $0x91] sm:$0xff] %vm362_vm0, %v428_v31  ;;  %462 = vst.msk [vmem:[#allocation2 + $0x99] sm:$0xff] %vm362_vm0, %v429_v32 }
  0xc6   : > { %v549_v17 = vld [vmem:[#allocation2 + $0x19] sm:$0xff]  ;;  %v550_v20 = vld [vmem:[#allocation2 + $0x21] sm:$0xff]  ;;  %463 = vst.msk [vmem:[#allocation2 + $0xa9] sm:$0xff] %vm362_vm0, %v430_v38  ;;  %464 = vst.msk [vmem:[#allocation2 + $0xb1] sm:$0xff] %vm362_vm0, %v431_v40 }
  0xc7   : > { %615 = vrot.lane.b32.xlu1 %v549_v17, %s5635_s20  ;;  %v933_v18 = vld [vmem:[#allocation2 + $0x18] sm:$0xff]  ;;  %v934_v19 = vld [vmem:[#allocation2 + $0x20] sm:$0xff]  ;;  %v935_v21 = vld [vmem:[#allocation2 + $0x30] sm:$0xff]  ;;  %465 = vst.msk [vmem:[#allocation2 + $0xc1] sm:$0xff] %vm362_vm0, %v432_v51 }
  0xc8   : > { %v936_v22 = vld [vmem:[#allocation2 + $0x38] sm:$0xff]  ;;  %517 = vst.msk [vmem:[#allocation4 + $0x10] sm:$0xff] %vm362_vm0, %v933_v18  ;;  %518 = vst.msk [vmem:[#allocation4 + $0x18] sm:$0xff] %vm362_vm0, %v934_v19  ;;  %v6026_v24 = vld [vmem:[#allocation2 + $0x48] sm:$0xff] }
  0xc9   : > { %v742_v23 = vld [vmem:[#allocation2 + $0x1a] sm:$0xff]  ;;  %519 = vst.msk [vmem:[#allocation4 + $0x20] sm:$0xff] %vm362_vm0, %v935_v21  ;;  %520 = vst.msk [vmem:[#allocation4 + $0x28] sm:$0xff] %vm362_vm0, %v936_v22  ;;  %v6028_v25 = vld [vmem:[#allocation2 + $0x50] sm:$0xff] }
  0xca   : > { %521 = vst.msk [vmem:[#allocation4 + $0x30] sm:$0xff] %vm362_vm0, %v6026_v24  ;;  %522 = vst.msk [vmem:[#allocation4 + $0x38] sm:$0xff] %vm362_vm0, %v6028_v25  ;;  %808 = vrot.lane.b32.xlu0 %v742_v23, %s5636_s21  ;;  %v743_v26 = vld [vmem:[#allocation2 + $0x22] sm:$0xff]  ;;  %v6044_v29 = vld [vmem:[#allocation2 + $0x78] sm:$0xff] }
  0xcb   : > { %617 = vrot.lane.b32.xlu1 %v550_v20, %s5635_s20  ;;  %v6036_v27 = vld [vmem:[#allocation2 + $0x60] sm:$0xff]  ;;  %v6038_v28 = vld [vmem:[#allocation2 + $0x68] sm:$0xff]  ;;  %525 = vst.msk [vmem:[#allocation4 + $0x50] sm:$0xff] %vm362_vm0, %v6044_v29  ;;  %v1128_v33 = vld [vmem:[#allocation2 + $0x31] sm:$0xff] }
  0xcc   : > { %523 = vst.msk [vmem:[#allocation4 + $0x40] sm:$0xff] %vm362_vm0, %v6036_v27  ;;  %524 = vst.msk [vmem:[#allocation4 + $0x48] sm:$0xff] %vm362_vm0, %v6038_v28  ;;  %v6046_v30 = vld [vmem:[#allocation2 + $0x80] sm:$0xff]  ;;  %v6062_v34 = vld [vmem:[#allocation2 + $0x90] sm:$0xff] }
  0xcd   : > { %526 = vst.msk [vmem:[#allocation4 + $0x58] sm:$0xff] %vm362_vm0, %v6046_v30  ;;  %v6064_v35 = vld [vmem:[#allocation2 + $0x98] sm:$0xff]  ;;  %527 = vst.msk [vmem:[#allocation4 + $0x60] sm:$0xff] %vm362_vm0, %v6062_v34  ;;  %v6083_v41 = vld [vmem:[#allocation2 + $0xa8] sm:$0xff] }
  0xce   : > { %997 = vrot.lane.b32.xlu0 %v933_v18, %s5637_s22  ;;  %528 = vst.msk [vmem:[#allocation4 + $0x68] sm:$0xff] %vm362_vm0, %v6064_v35  ;;  %v1129_v36 = vld [vmem:[#allocation2 + $0x39] sm:$0xff]  ;;  %529 = vst.msk [vmem:[#allocation4 + $0x70] sm:$0xff] %vm362_vm0, %v6083_v41  ;;  %v6089_v42 = vld [vmem:[#allocation2 + $0xb0] sm:$0xff] }
  0xcf   : > { %810 = vrot.lane.b32.xlu1 %v743_v26, %s5636_s21  ;;  %v1321_v37 = vld [vmem:[#allocation2 + $0x32] sm:$0xff]  ;;  %v1322_v39 = vld [vmem:[#allocation2 + $0x3a] sm:$0xff]  ;;  %530 = vst.msk [vmem:[#allocation4 + $0x78] sm:$0xff] %vm362_vm0, %v6089_v42  ;;  %v1708_v44 = vld [vmem:[#allocation2 + $0x49] sm:$0xff] }
  0xd0   : > { %v1709_v46 = vld [vmem:[#allocation2 + $0x51] sm:$0xff]  ;;  %466 = vst.msk [vmem:[#allocation2 + $0xc9] sm:$0xff] %vm362_vm0, %v433_v52  ;;  %v6119_v53 = vld [vmem:[#allocation2 + $0xc0] sm:$0xff]  ;;  %v1133_v56 = vld [vmem:[#allocation2 + $0x69] sm:$0xff] }
  0xd1   : > { %v1901_v49 = vld [vmem:[#allocation2 + $0x4a] sm:$0xff]  ;;  %v1902_v50 = vld [vmem:[#allocation2 + $0x52] sm:$0xff]  ;;  %531 = vst.msk [vmem:[#allocation4 + $0x80] sm:$0xff] %vm362_vm0, %v6119_v53  ;;  %v1132_v55 = vld [vmem:[#allocation2 + $0x61] sm:$0xff] }
  0xd2   : > { %1001 = vrot.lane.b32.xlu0 %v935_v21, %s5637_s22  ;;  %v1325_v57 = vld [vmem:[#allocation2 + $0x62] sm:$0xff]  ;;  %v1326_v59 = vld [vmem:[#allocation2 + $0x6a] sm:$0xff]  ;;  %467 = vst.msk [vmem:[#allocation2 + $0xd9] sm:$0xff] %vm362_vm0, %v434_v58  ;;  %468 = vst.msk [vmem:[#allocation2 + $0xe1] sm:$0xff] %vm362_vm0, %v435_v60 }
  0xd3   : > { %999 = vrot.lane.b32.xlu1 %v934_v19, %s5637_s22  ;;  %v6160_v63 = vld [vmem:[#allocation2 + $0x79] sm:$0xff]  ;;  %v6166_v3 = vld [vmem:[#allocation2 + $0x81] sm:$0xff]  ;;  %2421 = vst.msk [vmem:[#allocation3 + $0x30] sm:$0xff] %vm2413_vm12, %v5634_v0  ;;  %2422 = vst.msk [vmem:[#allocation3 + $0x38] sm:$0xff] %vm2413_vm12, %v5634_v0 }
  0xd4   : > { %v6173_v6 = vld [vmem:[#allocation2 + $0x7a] sm:$0xff]  ;;  %v6180_v8 = vld [vmem:[#allocation2 + $0x82] sm:$0xff]  ;;  %2414 = vst.msk [vmem:[#allocation3] sm:$0xff] %vm2413_vm12, %v5634_v0  ;;  %2415 = vst.msk [vmem:[#allocation3 + $0x8] sm:$0xff] %vm2413_vm12, %v5634_v0 }
  0xd5   : > { %v438_v38 = vld [vmem:[%s5993_s15 + $0xa0] sm:$0xff]  ;;  %2418 = vst.msk [vmem:[#allocation3 + $0x18] sm:$0xff] %vm2413_vm12, %v5634_v0  ;;  %2419 = vst.msk [vmem:[#allocation3 + $0x20] sm:$0xff] %vm2413_vm12, %v5634_v0 }
  0xd6   : > { %1190 = vrot.lane.b32.xlu0 %v549_v17, %s5638_s12  ;;  %v436_v17 = vld [vmem:[%s5993_s15 + $0x90] sm:$0xff]  ;;  %471 = vst.msk [vmem:[#allocation2 + $0x109] sm:$0xff] %vm362_vm0, %v438_v38 }
  0xd7   : > { %1003 = vrot.lane.b32.xlu1 %v936_v22, %s5637_s22  ;;  %v6125_v54 = vld [vmem:[#allocation2 + $0xc8] sm:$0xff]  ;;  %469 = vst.msk [vmem:[#allocation2 + $0xf1] sm:$0xff] %vm362_vm0, %v436_v17  ;;  %v441_v17 = vld [vmem:[%s5993_s15 + $0xb8] sm:$0xff] }
  0xd8   : > { %532 = vst.msk [vmem:[#allocation4 + $0x88] sm:$0xff] %vm362_vm0, %v6125_v54  ;;  %474 = vst.msk [vmem:[#allocation2 + $0x129] sm:$0xff] %vm362_vm0, %v441_v17 }
  0xd9   : > { %v6147_v61 = vld [vmem:[#allocation2 + $0xd8] sm:$0xff]  ;;  %v6153_v62 = vld [vmem:[#allocation2 + $0xe0] sm:$0xff]  ;;  %2424 = vst.msk [vmem:[#allocation3 + $0x48] sm:$0xff] %vm2413_vm12, %v5634_v0  ;;  %2425 = vst.msk [vmem:[#allocation3 + $0x50] sm:$0xff] %vm2413_vm12, %v5634_v0 }
  0xda   : > { %1194 = vrot.lane.b32.xlu0 %v1128_v33, %s5638_s12  ;;  %533 = vst.msk [vmem:[#allocation4 + $0x90] sm:$0xff] %vm362_vm0, %v6147_v61  ;;  %534 = vst.msk [vmem:[#allocation4 + $0x98] sm:$0xff] %vm362_vm0, %v6153_v62 }
  0xdb   : > { %1192 = vrot.lane.b32.xlu1 %v550_v20, %s5638_s12  ;;  %v437_v20 = vld [vmem:[%s5993_s15 + $0x98] sm:$0xff]  ;;  %2427 = vst.msk [vmem:[#allocation3 + $0x60] sm:$0xff] %vm2413_vm12, %v5634_v0  ;;  %2428 = vst.msk [vmem:[#allocation3 + $0x68] sm:$0xff] %vm2413_vm12, %v5634_v0 }
  0xdc   : > { %470 = vst.msk [vmem:[#allocation2 + $0xf9] sm:$0xff] %vm362_vm0, %v437_v20 }
  0xdd   : > { %v6272_v47 = vld [vmem:[#allocation2 + $0x108] sm:$0xff]  ;;  %2430 = vst.msk [vmem:[#allocation3 + $0x78] sm:$0xff] %vm2413_vm12, %v5634_v0  ;;  %2431 = vst.msk [vmem:[#allocation3 + $0x80] sm:$0xff] %vm2413_vm12, %v5634_v0 }
  0xde   : > { %1383 = vrot.lane.b32.xlu0 %v742_v23, %s5639_s23  ;;  %v6216_v23 = vld [vmem:[#allocation2 + $0xf0] sm:$0xff]  ;;  %537 = vst.msk [vmem:[#allocation4 + $0xb0] sm:$0xff] %vm362_vm0, %v6272_v47 }
  0xdf   : > { %1196 = vrot.lane.b32.xlu1 %v1129_v36, %s5638_s12  ;;  %535 = vst.msk [vmem:[#allocation4 + $0xa0] sm:$0xff] %vm362_vm0, %v6216_v23 }
  0xe0   : > { %2433 = vst.msk [vmem:[#allocation3 + $0x90] sm:$0xff] %vm2413_vm12, %v5634_v0  ;;  %2434 = vst.msk [vmem:[#allocation3 + $0x98] sm:$0xff] %vm2413_vm12, %v5634_v0 }
  0xe1   : > { %2436 = vst.msk [vmem:[#allocation3 + $0xa8] sm:$0xff] %vm2413_vm12, %v5634_v0  ;;  %2437 = vst.msk [vmem:[#allocation3 + $0xb0] sm:$0xff] %vm2413_vm12, %v5634_v0 }
  0xe2   : > { %1387 = vrot.lane.b32.xlu0 %v1321_v37, %s5639_s23  ;;  %2439 = vst.msk [vmem:[#allocation3 + $0xc0] sm:$0xff] %vm2413_vm12, %v5634_v0  ;;  %2440 = vst.msk [vmem:[#allocation3 + $0xc8] sm:$0xff] %vm2413_vm12, %v5634_v0 }
  0xe3   : > { %1385 = vrot.lane.b32.xlu1 %v743_v26, %s5639_s23  ;;  %v6223_v26 = vld [vmem:[#allocation2 + $0xf8] sm:$0xff]  ;;  %2442 = vst.msk [vmem:[#allocation3 + $0xd8] sm:$0xff] %vm2413_vm12, %v5634_v0  ;;  %2443 = vst.msk [vmem:[#allocation3 + $0xe0] sm:$0xff] %vm2413_vm12, %v5634_v0 }
  0xe4   : > { %536 = vst.msk [vmem:[#allocation4 + $0xa8] sm:$0xff] %vm362_vm0, %v6223_v26 }
  0xe5   : > { %2445 = vst.msk [vmem:[#allocation3 + $0xf0] sm:$0xff] %vm2413_vm12, %v5634_v0  ;;  %2446 = vst.msk [vmem:[#allocation3 + $0xf8] sm:$0xff] %vm2413_vm12, %v5634_v0 }
  0xe6   : > { %1577 = vrot.lane.b32.xlu0 %v935_v21, %s5640_s25  ;;  %2448 = vst.msk [vmem:[#allocation3 + $0x108] sm:$0xff] %vm2413_vm12, %v5634_v0  ;;  %2449 = vst.msk [vmem:[#allocation3 + $0x110] sm:$0xff] %vm2413_vm12, %v5634_v0 }
  0xe7   : > { %1389 = vrot.lane.b32.xlu1 %v1322_v39, %s5639_s23  ;;  %2451 = vst.msk [vmem:[#allocation3 + $0x120] sm:$0xff] %vm2413_vm12, %v5634_v0  ;;  %2452 = vst.msk [vmem:[#allocation3 + $0x128] sm:$0xff] %vm2413_vm12, %v5634_v0 }
  0xe8   : > { %2454 = vst.msk [vmem:[#allocation3 + $0x138] sm:$0xff] %vm2413_vm12, %v5634_v0  ;;  %2455 = vst.msk [vmem:[#allocation3 + $0x140] sm:$0xff] %vm2413_vm12, %v5634_v0 }
  0xe9   : > { %2457 = vst.msk [vmem:[#allocation3 + $0x150] sm:$0xff] %vm2413_vm12, %v5634_v0  ;;  %2458 = vst.msk [vmem:[#allocation3 + $0x158] sm:$0xff] %vm2413_vm12, %v5634_v0 }
  0xea   : > { %1581 = vrot.lane.b32.xlu0 %v6026_v24, %s5640_s25  ;;  %2460 = vst.msk [vmem:[#allocation3 + $0x168] sm:$0xff] %vm2413_vm12, %v5634_v0  ;;  %2461 = vst.msk [vmem:[#allocation3 + $0x170] sm:$0xff] %vm2413_vm12, %v5634_v0 }
  0xeb   : > { %1579 = vrot.lane.b32.xlu1 %v936_v22, %s5640_s25  ;;  %2463 = vst.msk [vmem:[#allocation3 + $0x180] sm:$0xff] %vm2413_vm12, %v5634_v0  ;;  %2464 = vst.msk [vmem:[#allocation3 + $0x188] sm:$0xff] %vm2413_vm12, %v5634_v0 }
  0xec   : > { %2466 = vst.msk [vmem:[#allocation3 + $0x198] sm:$0xff] %vm2413_vm12, %v5634_v0  ;;  %2467 = vst.msk [vmem:[#allocation3 + $0x1a0] sm:$0xff] %vm2413_vm12, %v5634_v0 }
  0xed   : > { %2423 = vst.msk [vmem:[#allocation3 + $0x40] sm:$0x3] %vm2416_vm13, %v5634_v0  ;;  %2417 = vst.msk [vmem:[#allocation3 + $0x10] sm:$0x3] %vm2416_vm13, %v5634_v0 }
  0xee   : > { %1770 = vrot.lane.b32.xlu0 %v1128_v33, %s5641_s9  ;;  %2420 = vst.msk [vmem:[#allocation3 + $0x28] sm:$0x3] %vm2416_vm13, %v5634_v0  ;;  %2426 = vst.msk [vmem:[#allocation3 + $0x58] sm:$0x3] %vm2416_vm13, %v5634_v0 }
  0xef   : > { %1583 = vrot.lane.b32.xlu1 %v6028_v25, %s5640_s25  ;;  %2429 = vst.msk [vmem:[#allocation3 + $0x70] sm:$0x3] %vm2416_vm13, %v5634_v0  ;;  %2432 = vst.msk [vmem:[#allocation3 + $0x88] sm:$0x3] %vm2416_vm13, %v5634_v0 }
  0xf0   : > { %2435 = vst.msk [vmem:[#allocation3 + $0xa0] sm:$0x3] %vm2416_vm13, %v5634_v0  ;;  %2438 = vst.msk [vmem:[#allocation3 + $0xb8] sm:$0x3] %vm2416_vm13, %v5634_v0 }
  0xf1   : > { %2441 = vst.msk [vmem:[#allocation3 + $0xd0] sm:$0x3] %vm2416_vm13, %v5634_v0  ;;  %2444 = vst.msk [vmem:[#allocation3 + $0xe8] sm:$0x3] %vm2416_vm13, %v5634_v0 }
  0xf2   : > { %1774 = vrot.lane.b32.xlu0 %v1708_v44, %s5641_s9  ;;  %2447 = vst.msk [vmem:[#allocation3 + $0x100] sm:$0x3] %vm2416_vm13, %v5634_v0  ;;  %2450 = vst.msk [vmem:[#allocation3 + $0x118] sm:$0x3] %vm2416_vm13, %v5634_v0 }
  0xf3   : > { %1772 = vrot.lane.b32.xlu1 %v1129_v36, %s5641_s9  ;;  %2453 = vst.msk [vmem:[#allocation3 + $0x130] sm:$0x3] %vm2416_vm13, %v5634_v0  ;;  %2456 = vst.msk [vmem:[#allocation3 + $0x148] sm:$0x3] %vm2416_vm13, %v5634_v0 }
  0xf4   : > { %2459 = vst.msk [vmem:[#allocation3 + $0x160] sm:$0x3] %vm2416_vm13, %v5634_v0  ;;  %2462 = vst.msk [vmem:[#allocation3 + $0x178] sm:$0x3] %vm2416_vm13, %v5634_v0 }
  0xf5   : > { %2465 = vst.msk [vmem:[#allocation3 + $0x190] sm:$0x3] %vm2416_vm13, %v5634_v0  ;;  %2468 = vst.msk [vmem:[#allocation3 + $0x1a8] sm:$0x3] %vm2416_vm13, %v5634_v0 }
  0xf6   : > { %1963 = vrot.lane.b32.xlu0 %v1321_v37, %s5642_s29 }
  0xf7   : > { %1776 = vrot.lane.b32.xlu1 %v1709_v46, %s5641_s9 }
  0xfa   : > { %1967 = vrot.lane.b32.xlu0 %v1901_v49, %s5642_s29 }
  0xfb   : > { %1965 = vrot.lane.b32.xlu1 %v1322_v39, %s5642_s29 }
  0xfe   : > { %619 = vrot.lane.b32.xlu0 %v1128_v33, %s5635_s20 }
  0xff   : > { %1969 = vrot.lane.b32.xlu1 %v1902_v50, %s5642_s29 }
 0x102   : > { %623 = vrot.lane.b32.xlu0 %v1708_v44, %s5635_s20 }
 0x103   : > { %621 = vrot.lane.b32.xlu1 %v1129_v36, %s5635_s20  ;;  %v6248_v36 = vld [vmem:[#allocation2 + $0x92] sm:$0xff] }
 0x106   : > { %812 = vrot.lane.b32.xlu0 %v1321_v37, %s5636_s21 }
 0x107   : > { %625 = vrot.lane.b32.xlu1 %v1709_v46, %s5635_s20 }
 0x10a   : > { %816 = vrot.lane.b32.xlu0 %v1901_v49, %s5636_s21 }
 0x10b   : > { %814 = vrot.lane.b32.xlu1 %v1322_v39, %s5636_s21  ;;  %v6257_v39 = vld [vmem:[#allocation2 + $0x9a] sm:$0xff] }
 0x10e   : > { %1005 = vrot.lane.b32.xlu0 %v6026_v24, %s5637_s22 }
 0x10f   : > { %818 = vrot.lane.b32.xlu1 %v1902_v50, %s5636_s21 }
 0x112   : > { %1009 = vrot.lane.b32.xlu0 %v6036_v27, %s5637_s22 }
 0x113   : > { %1007 = vrot.lane.b32.xlu1 %v6028_v25, %s5637_s22 }
 0x116   : > { %1198 = vrot.lane.b32.xlu0 %v1708_v44, %s5638_s12  ;;  %v439_v44 = vld [vmem:[%s5993_s15 + $0xa8] sm:$0xff] }
 0x117   : > { %1011 = vrot.lane.b32.xlu1 %v6038_v28, %s5637_s22  ;;  %472 = vst.msk [vmem:[#allocation2 + $0x111] sm:$0xff] %vm362_vm0, %v439_v44 }
 0x11a   : > { %1202 = vrot.lane.b32.xlu0 %v1132_v55, %s5638_s12 }
 0x11b   : > { %1200 = vrot.lane.b32.xlu1 %v1709_v46, %s5638_s12 }
 0x11e   : > { %1391 = vrot.lane.b32.xlu0 %v1901_v49, %s5639_s23  ;;  %v612_v1 = vpop.permute.xlu0 %611  ;;  %v6279_v49 = vld [vmem:[#allocation2 + $0x110] sm:$0xff] }
 0x11f   : > { %1204 = vrot.lane.b32.xlu1 %v1133_v56, %s5638_s12  ;;  %708 = vst.msk [vmem:[#allocation4] sm:$0xff] %vm707_vm3, %v612_v1  ;;  %v6305_v1 = vld [vmem:[#allocation2 + $0xaa] sm:$0xff] }
 0x120   : > { %538 = vst.msk [vmem:[#allocation4 + $0xb8] sm:$0xff] %vm362_vm0, %v6279_v49 }
 0x122   : > { %1395 = vrot.lane.b32.xlu0 %v1325_v57, %s5639_s23 }
 0x123   : > { %1393 = vrot.lane.b32.xlu1 %v1902_v50, %s5639_s23  ;;  %v6288_v50 = vld [vmem:[#allocation2 + $0xa9] sm:$0xff] }
 0x126   : > { %1585 = vrot.lane.b32.xlu0 %v6036_v27, %s5640_s25 }
 0x127   : > { %1397 = vrot.lane.b32.xlu1 %v1326_v59, %s5639_s23 }
 0x12a   : > { %1589 = vrot.lane.b32.xlu0 %v6044_v29, %s5640_s25 }
 0x12b   : > { %1587 = vrot.lane.b32.xlu1 %v6038_v28, %s5640_s25  ;;  %v6232_v28 = vld [vmem:[#allocation2 + $0x91] sm:$0xff] }
 0x12e   : > { %1778 = vrot.lane.b32.xlu0 %v1132_v55, %s5641_s9 }
 0x12f   : > { %1591 = vrot.lane.b32.xlu1 %v6046_v30, %s5640_s25 }
 0x130   : > { %v807_v2 = vpop.permute.xlu1 %806 }
 0x131   : > { %v614_v4 = vpop.permute.xlu0 %613 }
 0x132   : > { %1782 = vrot.lane.b32.xlu0 %v6160_v63, %s5641_s9  ;;  %709 = vst.msk [vmem:[#allocation4 + $0x8] sm:$0xff] %vm707_vm3, %v614_v4 }
 0x133   : > { %1780 = vrot.lane.b32.xlu1 %v1133_v56, %s5641_s9  ;;  %902 = vst.msk [vmem:[#allocation4 + $0x8] sm:$0xff] %vm900_vm4, %v807_v2 }
 0x135   : > { %v805_v7 = vpop.permute.xlu0 %804 }
 0x136   : > { %1971 = vrot.lane.b32.xlu0 %v1325_v57, %s5642_s29  ;;  %901 = vst.msk [vmem:[#allocation4] sm:$0xff] %vm900_vm4, %v805_v7 }
 0x137   : > { %1784 = vrot.lane.b32.xlu1 %v6166_v3, %s5641_s9 }
 0x139   : > { %v616_v5 = vpop.permute.xlu1 %615 }
 0x13a   : > { %710 = vst.msk [vmem:[#allocation4 + $0x10] sm:$0xff] %vm707_vm3, %v616_v5  ;;  %1975 = vrot.lane.b32.xlu0 %v6173_v6, %s5642_s29  ;;  %v6314_v5 = vld [vmem:[#allocation2 + $0xb2] sm:$0xff] }
 0x13b   : > { %1973 = vrot.lane.b32.xlu1 %v1326_v59, %s5642_s29 }
 0x13c   : > { %v809_v10 = vpop.permute.xlu0 %808 }
 0x13d   : > { %v618_v9 = vpop.permute.xlu1 %617  ;;  %903 = vst.msk [vmem:[#allocation4 + $0x10] sm:$0xff] %vm900_vm4, %v809_v10 }
 0x13e   : > { %711 = vst.msk [vmem:[#allocation4 + $0x18] sm:$0xff] %vm707_vm3, %v618_v9  ;;  %627 = vrot.lane.b32.xlu0 %v1132_v55, %s5635_s20  ;;  %v6296_v55 = vld [vmem:[#allocation2 + $0xb1] sm:$0xff] }
 0x13f   : > { %1977 = vrot.lane.b32.xlu1 %v6180_v8, %s5642_s29 }
 0x140   : > { %v998_v12 = vpop.permute.xlu0 %997 }
 0x141   : > { %v811_v11 = vpop.permute.xlu1 %810  ;;  %1094 = vst.msk [vmem:[#allocation4] sm:$0xff] %vm1093_vm5, %v998_v12 }
 0x142   : > { %904 = vst.msk [vmem:[#allocation4 + $0x18] sm:$0xff] %vm900_vm4, %v811_v11  ;;  %631 = vrot.lane.b32.xlu0 %v6160_v63, %s5635_s20 }
 0x143   : > { %629 = vrot.lane.b32.xlu1 %v1133_v56, %s5635_s20 }
 0x144   : > { %v1002_v14 = vpop.permute.xlu0 %1001 }
 0x145   : > { %v1000_v13 = vpop.permute.xlu1 %999  ;;  %1096 = vst.msk [vmem:[#allocation4 + $0x10] sm:$0xff] %vm1093_vm5, %v1002_v14  ;;  %v440_v14 = vld [vmem:[%s5993_s15 + $0xb0] sm:$0xff] }
 0x146   : > { %1095 = vst.msk [vmem:[#allocation4 + $0x8] sm:$0xff] %vm1093_vm5, %v1000_v13  ;;  %820 = vrot.lane.b32.xlu0 %v1325_v57, %s5636_s21 }
 0x147   : > { %633 = vrot.lane.b32.xlu1 %v6166_v3, %s5635_s20  ;;  %473 = vst.msk [vmem:[#allocation2 + $0x121] sm:$0xff] %vm362_vm0, %v440_v14  ;;  %v445_v14 = vld [vmem:[%s5993_s15 + $0xd8] sm:$0xff] }
 0x148   : > { %v1191_v16 = vpop.permute.xlu0 %1190  ;;  %478 = vst.msk [vmem:[#allocation2 + $0x159] sm:$0xff] %vm362_vm0, %v445_v14 }
 0x149   : > { %v1004_v15 = vpop.permute.xlu1 %1003  ;;  %1287 = vst.msk [vmem:[#allocation4] sm:$0xff] %vm1286_vm6, %v1191_v16 }
 0x14a   : > { %1097 = vst.msk [vmem:[#allocation4 + $0x18] sm:$0xff] %vm1093_vm5, %v1004_v15  ;;  %824 = vrot.lane.b32.xlu0 %v6173_v6, %s5636_s21 }
 0x14b   : > { %822 = vrot.lane.b32.xlu1 %v1326_v59, %s5636_s21 }
 0x14c   : > { %v1195_v19 = vpop.permute.xlu0 %1194 }
 0x14d   : > { %v1193_v18 = vpop.permute.xlu1 %1192  ;;  %1289 = vst.msk [vmem:[#allocation4 + $0x10] sm:$0xff] %vm1286_vm6, %v1195_v19 }
 0x14e   : > { %1288 = vst.msk [vmem:[#allocation4 + $0x8] sm:$0xff] %vm1286_vm6, %v1193_v18  ;;  %1013 = vrot.lane.b32.xlu0 %v6044_v29, %s5637_s22  ;;  %v6354_v20 = vld [vmem:[#allocation2 + $0x120] sm:$0xff] }
 0x14f   : > { %826 = vrot.lane.b32.xlu1 %v6180_v8, %s5636_s21  ;;  %539 = vst.msk [vmem:[#allocation4 + $0xc0] sm:$0xff] %vm362_vm0, %v6354_v20 }
 0x150   : > { %v1384_v22 = vpop.permute.xlu0 %1383 }
 0x151   : > { %v1197_v21 = vpop.permute.xlu1 %1196  ;;  %1480 = vst.msk [vmem:[#allocation4] sm:$0xff] %vm1479_vm7, %v1384_v22  ;;  %v6361_v22 = vld [vmem:[#allocation2 + $0x128] sm:$0xff] }
 0x152   : > { %1290 = vst.msk [vmem:[#allocation4 + $0x18] sm:$0xff] %vm1286_vm6, %v1197_v21  ;;  %1017 = vrot.lane.b32.xlu0 %v6062_v34, %s5637_s22 }
 0x153   : > { %1015 = vrot.lane.b32.xlu1 %v6046_v30, %s5637_s22  ;;  %v6240_v30 = vld [vmem:[#allocation2 + $0x99] sm:$0xff]  ;;  %540 = vst.msk [vmem:[#allocation4 + $0xc8] sm:$0xff] %vm362_vm0, %v6361_v22 }
 0x154   : > { %v1388_v25 = vpop.permute.xlu0 %1387 }
 0x155   : > { %v1386_v24 = vpop.permute.xlu1 %1385  ;;  %1482 = vst.msk [vmem:[#allocation4 + $0x10] sm:$0xff] %vm1479_vm7, %v1388_v25 }
 0x156   : > { %1481 = vst.msk [vmem:[#allocation4 + $0x8] sm:$0xff] %vm1479_vm7, %v1386_v24  ;;  %1206 = vrot.lane.b32.xlu0 %v6160_v63, %s5638_s12  ;;  %v6370_v24 = vld [vmem:[#allocation2 + $0xc1] sm:$0xff] }
 0x157   : > { %1019 = vrot.lane.b32.xlu1 %v6064_v35, %s5637_s22 }
 0x158   : > { %v1578_v29 = vpop.permute.xlu0 %1577 }
 0x159   : > { %v1390_v27 = vpop.permute.xlu1 %1389  ;;  %1674 = vst.msk [vmem:[#allocation4] sm:$0xff] %vm1673_vm8, %v1578_v29 }
 0x15a   : > { %1483 = vst.msk [vmem:[#allocation4 + $0x18] sm:$0xff] %vm1479_vm7, %v1390_v27  ;;  %1210 = vrot.lane.b32.xlu0 %v6232_v28, %s5638_s12  ;;  %v6378_v27 = vld [vmem:[#allocation2 + $0xc9] sm:$0xff] }
 0x15b   : > { %1208 = vrot.lane.b32.xlu1 %v6166_v3, %s5638_s12 }
 0x15c   : > { %v1582_v32 = vpop.permute.xlu0 %1581 }
 0x15d   : > { %v1580_v31 = vpop.permute.xlu1 %1579  ;;  %1676 = vst.msk [vmem:[#allocation4 + $0x10] sm:$0xff] %vm1673_vm8, %v1582_v32 }
 0x15e   : > { %1675 = vst.msk [vmem:[#allocation4 + $0x8] sm:$0xff] %vm1673_vm8, %v1580_v31  ;;  %1399 = vrot.lane.b32.xlu0 %v6173_v6, %s5639_s23  ;;  %v6386_v31 = vld [vmem:[#allocation2 + $0xc2] sm:$0xff] }
 0x15f   : > { %1212 = vrot.lane.b32.xlu1 %v6240_v30, %s5638_s12 }
 0x160   : > { %v1771_v37 = vpop.permute.xlu0 %1770 }
 0x161   : > { %v1584_v33 = vpop.permute.xlu1 %1583  ;;  %1867 = vst.msk [vmem:[#allocation4] sm:$0xff] %vm1866_vm9, %v1771_v37 }
 0x162   : > { %1677 = vst.msk [vmem:[#allocation4 + $0x18] sm:$0xff] %vm1673_vm8, %v1584_v33  ;;  %1403 = vrot.lane.b32.xlu0 %v6248_v36, %s5639_s23  ;;  %v442_v33 = vld [vmem:[%s5993_s15 + $0xc0] sm:$0xff] }
 0x163   : > { %1401 = vrot.lane.b32.xlu1 %v6180_v8, %s5639_s23  ;;  %475 = vst.msk [vmem:[#allocation2 + $0x139] sm:$0xff] %vm362_vm0, %v442_v33  ;;  %v447_v33 = vld [vmem:[%s5993_s15 + $0xe8] sm:$0xff] }
 0x164   : > { %v1775_v43 = vpop.permute.xlu0 %1774  ;;  %480 = vst.msk [vmem:[#allocation2 + $0x171] sm:$0xff] %vm362_vm0, %v447_v33 }
 0x165   : > { %v1773_v40 = vpop.permute.xlu1 %1772  ;;  %1869 = vst.msk [vmem:[#allocation4 + $0x10] sm:$0xff] %vm1866_vm9, %v1775_v43 }
 0x166   : > { %1868 = vst.msk [vmem:[#allocation4 + $0x8] sm:$0xff] %vm1866_vm9, %v1773_v40  ;;  %1593 = vrot.lane.b32.xlu0 %v6062_v34, %s5640_s25 }
 0x167   : > { %1405 = vrot.lane.b32.xlu1 %v6257_v39, %s5639_s23 }
 0x168   : > { %v1964_v46 = vpop.permute.xlu0 %1963 }
 0x169   : > { %v1777_v45 = vpop.permute.xlu1 %1776  ;;  %2060 = vst.msk [vmem:[#allocation4] sm:$0xff] %vm2059_vm10, %v1964_v46 }
 0x16a   : > { %1870 = vst.msk [vmem:[#allocation4 + $0x18] sm:$0xff] %vm1866_vm9, %v1777_v45  ;;  %1597 = vrot.lane.b32.xlu0 %v6083_v41, %s5640_s25  ;;  %v6410_v44 = vld [vmem:[#allocation2 + $0x138] sm:$0xff] }
 0x16b   : > { %1595 = vrot.lane.b32.xlu1 %v6064_v35, %s5640_s25  ;;  %541 = vst.msk [vmem:[#allocation4 + $0xd0] sm:$0xff] %vm362_vm0, %v6410_v44 }
 0x16c   : > { %v1968_v34 = vpop.permute.xlu0 %1967 }
 0x16d   : > { %v1966_v48 = vpop.permute.xlu1 %1965  ;;  %2062 = vst.msk [vmem:[#allocation4 + $0x10] sm:$0xff] %vm2059_vm10, %v1968_v34 }
 0x16e   : > { %2061 = vst.msk [vmem:[#allocation4 + $0x8] sm:$0xff] %vm2059_vm10, %v1966_v48  ;;  %1786 = vrot.lane.b32.xlu0 %v6232_v28, %s5641_s9  ;;  %v6426_v48 = vld [vmem:[#allocation2 + $0xd9] sm:$0xff] }
 0x16f   : > { %1599 = vrot.lane.b32.xlu1 %v6089_v42, %s5640_s25 }
 0x170   : > { %v620_v51 = vpop.permute.xlu0 %619  ;;  %v2092_v52 = vld [vmem:[#allocation4] sm:$0xff] }
 0x171   : > { %v1970_v35 = vpop.permute.xlu1 %1969  ;;  %712 = vst.msk [vmem:[#allocation4 + $0x20] sm:$0xff] %vm707_vm3, %v620_v51 }
 0x172   : > { %2063 = vst.msk [vmem:[#allocation4 + $0x18] sm:$0xff] %vm2059_vm10, %v1970_v35  ;;  %1790 = vrot.lane.b32.xlu0 %v6288_v50, %s5641_s9 }
 0x173   : > { %1788 = vrot.lane.b32.xlu1 %v6240_v30, %s5641_s9 }
 0x174   : > { %v624_v58 = vpop.permute.xlu0 %623  ;;  %v2094_v60 = vld [vmem:[#allocation4 + $0x10] sm:$0xff] }
 0x175   : > { %v622_v56 = vpop.permute.xlu1 %621  ;;  %v2093_v57 = vld [vmem:[#allocation4 + $0x8] sm:$0xff]  ;;  %714 = vst.msk [vmem:[#allocation4 + $0x30] sm:$0xff] %vm707_vm3, %v624_v58 }
 0x176   : > { %713 = vst.msk [vmem:[#allocation4 + $0x28] sm:$0xff] %vm707_vm3, %v622_v56  ;;  %v2124_v59 = vpack.c.bf16 %v2093_v57, %v2092_v52  ;;  %1979 = vrot.lane.b32.xlu0 %v6248_v36, %s5642_s29 }
 0x177   : > { %1792 = vrot.lane.b32.xlu1 %v6296_v55, %s5641_s9 }
 0x178   : > { %5215 = vmatprep.mubr.msk.bf16.mxu0 %vm2167_vm11, %v2124_v59  ;;  %v813_v3 = vpop.permute.xlu0 %812  ;;  %v6443_v59 = vld [vmem:[#allocation2 + $0xda] sm:$0xff] }
 0x179   : > { %v626_v63 = vpop.permute.xlu1 %625  ;;  %v2095_v2 = vld [vmem:[#allocation4 + $0x18] sm:$0xff]  ;;  %905 = vst.msk [vmem:[#allocation4 + $0x20] sm:$0xff] %vm900_vm4, %v813_v3 }
 0x17a   : > { %715 = vst.msk [vmem:[#allocation4 + $0x38] sm:$0xff] %vm707_vm3, %v626_v63  ;;  %v2125_v4 = vpack.c.bf16 %v2095_v2, %v2094_v60  ;;  %1983 = vrot.lane.b32.xlu0 %v6305_v1, %s5642_s29  ;;  %v6452_v2 = vld [vmem:[#allocation2 + $0xe2] sm:$0xff] }
 0x17b   : > { %1981 = vrot.lane.b32.xlu1 %v6257_v39, %s5642_s29 }
 0x17c   : > { %5216 = vmatmul.mubr.msk.bf16.vlgmr.msra.gmra.mrb[0].mxu0 %vm2167_vm11, %v2125_v4  ;;  %v817_v7 = vpop.permute.xlu0 %816 }
 0x17d   : > { %v815_v6 = vpop.permute.xlu1 %814  ;;  %907 = vst.msk [vmem:[#allocation4 + $0x30] sm:$0xff] %vm900_vm4, %v817_v7 }
 0x17e   : > { %906 = vst.msk [vmem:[#allocation4 + $0x28] sm:$0xff] %vm900_vm4, %v815_v6  ;;  %635 = vrot.lane.b32.xlu0 %v6232_v28, %s5635_s20 }
 0x17f   : > { %1985 = vrot.lane.b32.xlu1 %v6314_v5, %s5642_s29 }
 0x180   : > { %v1006_v9 = vpop.permute.xlu0 %1005 }
 0x181   : > { %v819_v8 = vpop.permute.xlu1 %818  ;;  %1098 = vst.msk [vmem:[#allocation4 + $0x20] sm:$0xff] %vm1093_vm5, %v1006_v9 }
 0x182   : > { %908 = vst.msk [vmem:[#allocation4 + $0x38] sm:$0xff] %vm900_vm4, %v819_v8  ;;  %639 = vrot.lane.b32.xlu0 %v6288_v50, %s5635_s20 }
 0x183   : > { %637 = vrot.lane.b32.xlu1 %v6240_v30, %s5635_s20 }
 0x184   : > { %v1010_v11 = vpop.permute.xlu0 %1009 }
 0x185   : > { %v1008_v10 = vpop.permute.xlu1 %1007  ;;  %1100 = vst.msk [vmem:[#allocation4 + $0x30] sm:$0xff] %vm1093_vm5, %v1010_v11  ;;  %v444_v11 = vld [vmem:[%s5993_s15 + $0xd0] sm:$0xff] }
 0x186   : > { %1099 = vst.msk [vmem:[#allocation4 + $0x28] sm:$0xff] %vm1093_vm5, %v1008_v10  ;;  %828 = vrot.lane.b32.xlu0 %v6248_v36, %s5636_s21  ;;  %v6395_v36 = vld [vmem:[#allocation2 + $0xca] sm:$0xff] }
 0x187   : > { %641 = vrot.lane.b32.xlu1 %v6296_v55, %s5635_s20  ;;  %477 = vst.msk [vmem:[#allocation2 + $0x151] sm:$0xff] %vm362_vm0, %v444_v11 }
 0x188   : > { %v1199_v13 = vpop.permute.xlu0 %1198 }
 0x189   : > { %v1012_v12 = vpop.permute.xlu1 %1011  ;;  %1291 = vst.msk [vmem:[#allocation4 + $0x20] sm:$0xff] %vm1286_vm6, %v1199_v13 }
 0x18a   : > { %1101 = vst.msk [vmem:[#allocation4 + $0x38] sm:$0xff] %vm1093_vm5, %v1012_v12  ;;  %832 = vrot.lane.b32.xlu0 %v6305_v1, %s5636_s21 }
 0x18b   : > { %830 = vrot.lane.b32.xlu1 %v6257_v39, %s5636_s21  ;;  %v443_v39 = vld [vmem:[%s5993_s15 + $0xc8] sm:$0xff] }
 0x18c   : > { %v1203_v16 = vpop.permute.xlu0 %1202  ;;  %476 = vst.msk [vmem:[#allocation2 + $0x141] sm:$0xff] %vm362_vm0, %v443_v39 }
 0x18d   : > { %v1201_v15 = vpop.permute.xlu1 %1200  ;;  %1293 = vst.msk [vmem:[#allocation4 + $0x30] sm:$0xff] %vm1286_vm6, %v1203_v16 }
 0x18e   : > { %1292 = vst.msk [vmem:[#allocation4 + $0x28] sm:$0xff] %vm1286_vm6, %v1201_v15  ;;  %1021 = vrot.lane.b32.xlu0 %v6083_v41, %s5637_s22 }
 0x18f   : > { %834 = vrot.lane.b32.xlu1 %v6314_v5, %s5636_s21 }
 0x190   : > { %v1392_v19 = vpop.permute.xlu0 %1391 }
 0x191   : > { %v1205_v18 = vpop.permute.xlu1 %1204  ;;  %1484 = vst.msk [vmem:[#allocation4 + $0x20] sm:$0xff] %vm1479_vm7, %v1392_v19 }
 0x192   : > { %1294 = vst.msk [vmem:[#allocation4 + $0x38] sm:$0xff] %vm1286_vm6, %v1205_v18  ;;  %1025 = vrot.lane.b32.xlu0 %v6119_v53, %s5637_s22  ;;  %v6607_v18 = vld [vmem:[#allocation2 + $0x158] sm:$0xff] }
 0x193   : > { %1023 = vrot.lane.b32.xlu1 %v6089_v42, %s5637_s22  ;;  %v6417_v46 = vld [vmem:[#allocation2 + $0x140] sm:$0xff]  ;;  %544 = vst.msk [vmem:[#allocation4 + $0xe8] sm:$0xff] %vm362_vm0, %v6607_v18 }
 0x194   : > { %v1396_v41 = vpop.permute.xlu0 %1395  ;;  %542 = vst.msk [vmem:[#allocation4 + $0xd8] sm:$0xff] %vm362_vm0, %v6417_v46 }
 0x195   : > { %v1394_v21 = vpop.permute.xlu1 %1393  ;;  %1486 = vst.msk [vmem:[#allocation4 + $0x30] sm:$0xff] %vm1479_vm7, %v1396_v41  ;;  %v6624_v41 = vld [vmem:[#allocation2 + $0xf9] sm:$0xff] }
 0x196   : > { %1485 = vst.msk [vmem:[#allocation4 + $0x28] sm:$0xff] %vm1479_vm7, %v1394_v21  ;;  %1214 = vrot.lane.b32.xlu0 %v6288_v50, %s5638_s12  ;;  %v6434_v50 = vld [vmem:[#allocation2 + $0xe1] sm:$0xff]  ;;  %v6616_v21 = vld [vmem:[#allocation2 + $0xf1] sm:$0xff] }
 0x197   : > { %1027 = vrot.lane.b32.xlu1 %v6125_v54, %s5637_s22 }
 0x198   : > { %v1586_v25 = vpop.permute.xlu0 %1585 }
 0x199   : > { %v1398_v42 = vpop.permute.xlu1 %1397  ;;  %1678 = vst.msk [vmem:[#allocation4 + $0x20] sm:$0xff] %vm1673_vm8, %v1586_v25 }
 0x19a   : > { %1487 = vst.msk [vmem:[#allocation4 + $0x38] sm:$0xff] %vm1479_vm7, %v1398_v42  ;;  %1218 = vrot.lane.b32.xlu0 %v6370_v24, %s5638_s12 }
 0x19b   : > { %1216 = vrot.lane.b32.xlu1 %v6296_v55, %s5638_s12 }
 0x19c   : > { %v1590_v29 = vpop.permute.xlu0 %1589 }
 0x19d   : > { %v1588_v28 = vpop.permute.xlu1 %1587  ;;  %1680 = vst.msk [vmem:[#allocation4 + $0x30] sm:$0xff] %vm1673_vm8, %v1590_v29  ;;  %v446_v29 = vld [vmem:[%s5993_s15 + $0xe0] sm:$0xff] }
 0x19e   : > { %1679 = vst.msk [vmem:[#allocation4 + $0x28] sm:$0xff] %vm1673_vm8, %v1588_v28  ;;  %1407 = vrot.lane.b32.xlu0 %v6305_v1, %s5639_s23 }
 0x19f   : > { %1220 = vrot.lane.b32.xlu1 %v6378_v27, %s5638_s12  ;;  %479 = vst.msk [vmem:[#allocation2 + $0x169] sm:$0xff] %vm362_vm0, %v446_v29 }
 0x1a0   : > { %v1779_v32 = vpop.permute.xlu0 %1778 }
 0x1a1   : > { %v1592_v30 = vpop.permute.xlu1 %1591  ;;  %1871 = vst.msk [vmem:[#allocation4 + $0x20] sm:$0xff] %vm1866_vm9, %v1779_v32 }
 0x1a2   : > { %1681 = vst.msk [vmem:[#allocation4 + $0x38] sm:$0xff] %vm1673_vm8, %v1592_v30  ;;  %1411 = vrot.lane.b32.xlu0 %v6386_v31, %s5639_s23  ;;  %v6641_v30 = vld [vmem:[#allocation2 + $0xfa] sm:$0xff] }
 0x1a3   : > { %1409 = vrot.lane.b32.xlu1 %v6314_v5, %s5639_s23 }
 0x1a4   : > { %v1783_v38 = vpop.permute.xlu0 %1782 }
 0x1a5   : > { %v1781_v37 = vpop.permute.xlu1 %1780  ;;  %1873 = vst.msk [vmem:[#allocation4 + $0x30] sm:$0xff] %vm1866_vm9, %v1783_v38 }
 0x1a6   : > { %1872 = vst.msk [vmem:[#allocation4 + $0x28] sm:$0xff] %vm1866_vm9, %v1781_v37  ;;  %1601 = vrot.lane.b32.xlu0 %v6119_v53, %s5640_s25  ;;  %v6656_v38 = vld [vmem:[#allocation2 + $0x168] sm:$0xff] }
 0x1a7   : > { %1413 = vrot.lane.b32.xlu1 %v6395_v36, %s5639_s23  ;;  %545 = vst.msk [vmem:[#allocation4 + $0xf0] sm:$0xff] %vm362_vm0, %v6656_v38 }
 0x1a8   : > { %v1972_v43 = vpop.permute.xlu0 %1971 }
 0x1a9   : > { %v1785_v40 = vpop.permute.xlu1 %1784  ;;  %2064 = vst.msk [vmem:[#allocation4 + $0x20] sm:$0xff] %vm2059_vm10, %v1972_v43  ;;  %v6672_v43 = vld [vmem:[#allocation2 + $0x109] sm:$0xff] }
 0x1aa   : > { %1874 = vst.msk [vmem:[#allocation4 + $0x38] sm:$0xff] %vm1866_vm9, %v1785_v40  ;;  %1605 = vrot.lane.b32.xlu0 %v6147_v61, %s5640_s25  ;;  %v6663_v40 = vld [vmem:[#allocation2 + $0x170] sm:$0xff] }
 0x1ab   : > { %1603 = vrot.lane.b32.xlu1 %v6125_v54, %s5640_s25  ;;  %546 = vst.msk [vmem:[#allocation4 + $0xf8] sm:$0xff] %vm362_vm0, %v6663_v40 }
 0x1ac   : > { %v1976_v53 = vpop.permute.xlu0 %1975 }
 0x1ad   : > { %v1974_v45 = vpop.permute.xlu1 %1973  ;;  %2066 = vst.msk [vmem:[#allocation4 + $0x30] sm:$0xff] %vm2059_vm10, %v1976_v53 }
 0x1ae   : > { %2065 = vst.msk [vmem:[#allocation4 + $0x28] sm:$0xff] %vm2059_vm10, %v1974_v45  ;;  %1794 = vrot.lane.b32.xlu0 %v6370_v24, %s5641_s9 }
 0x1af   : > { %1607 = vrot.lane.b32.xlu1 %v6153_v62, %s5640_s25 }
 0x1b0   : > { %v628_v34 = vpop.permute.xlu0 %627  ;;  %v2096_v35 = vld [vmem:[#allocation4 + $0x20] sm:$0xff] }
 0x1b1   : > { %v1978_v54 = vpop.permute.xlu1 %1977  ;;  %716 = vst.msk [vmem:[#allocation4 + $0x40] sm:$0xff] %vm707_vm3, %v628_v34 }
 0x1b2   : > { %2067 = vst.msk [vmem:[#allocation4 + $0x38] sm:$0xff] %vm2059_vm10, %v1978_v54  ;;  %1798 = vrot.lane.b32.xlu0 %v6426_v48, %s5641_s9  ;;  %v6680_v54 = vld [vmem:[#allocation2 + $0x111] sm:$0xff] }
 0x1b3   : > { %1796 = vrot.lane.b32.xlu1 %v6378_v27, %s5641_s9 }
 0x1b4   : > { %v632_v55 = vpop.permute.xlu0 %631  ;;  %v2098_v57 = vld [vmem:[#allocation4 + $0x30] sm:$0xff] }
 0x1b5   : > { %v630_v51 = vpop.permute.xlu1 %629  ;;  %v2097_v52 = vld [vmem:[#allocation4 + $0x28] sm:$0xff]  ;;  %718 = vst.msk [vmem:[#allocation4 + $0x50] sm:$0xff] %vm707_vm3, %v632_v55 }
 0x1b6   : > { %717 = vst.msk [vmem:[#allocation4 + $0x48] sm:$0xff] %vm707_vm3, %v630_v51  ;;  %v2126_v56 = vpack.c.bf16 %v2097_v52, %v2096_v35  ;;  %1987 = vrot.lane.b32.xlu0 %v6386_v31, %s5642_s29  ;;  %v6689_v55 = vld [vmem:[#allocation2 + $0x10a] sm:$0xff] }
 0x1b7   : > { %1800 = vrot.lane.b32.xlu1 %v6434_v50, %s5641_s9 }
 0x1b8   : > { %5219 = vmatprep.mubr.msk.bf16.mxu0 %vm2167_vm11, %v2126_v56  ;;  %v821_v63 = vpop.permute.xlu0 %820 }
 0x1b9   : > { %v634_v58 = vpop.permute.xlu1 %633  ;;  %v2099_v60 = vld [vmem:[#allocation4 + $0x38] sm:$0xff]  ;;  %909 = vst.msk [vmem:[#allocation4 + $0x40] sm:$0xff] %vm900_vm4, %v821_v63 }
 0x1ba   : > { %719 = vst.msk [vmem:[#allocation4 + $0x58] sm:$0xff] %vm707_vm3, %v634_v58  ;;  %v2127_v1 = vpack.c.bf16 %v2099_v60, %v2098_v57  ;;  %1991 = vrot.lane.b32.xlu0 %v6443_v59, %s5642_s29 }
 0x1bb   : > { %1989 = vrot.lane.b32.xlu1 %v6395_v36, %s5642_s29 }
 0x1bc   : > { %5220 = vmatmul.mubr.msk.bf16.gmra.mrb[4].mxu0 %vm2167_vm11, %v2127_v1  ;;  %v825_v4 = vpop.permute.xlu0 %824 }
 0x1bd   : > { %v823_v3 = vpop.permute.xlu1 %822  ;;  %911 = vst.msk [vmem:[#allocation4 + $0x50] sm:$0xff] %vm900_vm4, %v825_v4 }
 0x1be   : > { %910 = vst.msk [vmem:[#allocation4 + $0x48] sm:$0xff] %vm900_vm4, %v823_v3  ;;  %643 = vrot.lane.b32.xlu0 %v6370_v24, %s5635_s20 }
 0x1bf   : > { %1993 = vrot.lane.b32.xlu1 %v6452_v2, %s5642_s29 }
 0x1c0   : > { %v1014_v6 = vpop.permute.xlu0 %1013 }
 0x1c1   : > { %v827_v5 = vpop.permute.xlu1 %826  ;;  %1102 = vst.msk [vmem:[#allocation4 + $0x40] sm:$0xff] %vm1093_vm5, %v1014_v6 }
 0x1c2   : > { %912 = vst.msk [vmem:[#allocation4 + $0x58] sm:$0xff] %vm900_vm4, %v827_v5  ;;  %647 = vrot.lane.b32.xlu0 %v6426_v48, %s5635_s20 }
 0x1c3   : > { %645 = vrot.lane.b32.xlu1 %v6378_v27, %s5635_s20  ;;  %v6632_v27 = vld [vmem:[#allocation2 + $0xf2] sm:$0xff] }
 0x1c4   : > { %v1018_v8 = vpop.permute.xlu0 %1017 }
 0x1c5   : > { %v1016_v7 = vpop.permute.xlu1 %1015  ;;  %1104 = vst.msk [vmem:[#allocation4 + $0x50] sm:$0xff] %vm1093_vm5, %v1018_v8 }
 0x1c6   : > { %1103 = vst.msk [vmem:[#allocation4 + $0x48] sm:$0xff] %vm1093_vm5, %v1016_v7  ;;  %836 = vrot.lane.b32.xlu0 %v6386_v31, %s5636_s21  ;;  %v448_v7 = vld [vmem:[%s5993_s15 + $0xf0] sm:$0xff] }
 0x1c7   : > { %649 = vrot.lane.b32.xlu1 %v6434_v50, %s5635_s20  ;;  %481 = vst.msk [vmem:[#allocation2 + $0x181] sm:$0xff] %vm362_vm0, %v448_v7 }
 0x1c8   : > { %v1207_v10 = vpop.permute.xlu0 %1206 }
 0x1c9   : > { %v1020_v9 = vpop.permute.xlu1 %1019  ;;  %1295 = vst.msk [vmem:[#allocation4 + $0x40] sm:$0xff] %vm1286_vm6, %v1207_v10  ;;  %v449_v10 = vld [vmem:[%s5993_s15 + $0xf8] sm:$0xff] }
 0x1ca   : > { %1105 = vst.msk [vmem:[#allocation4 + $0x58] sm:$0xff] %vm1093_vm5, %v1020_v9  ;;  %840 = vrot.lane.b32.xlu0 %v6443_v59, %s5636_s21 }
 0x1cb   : > { %838 = vrot.lane.b32.xlu1 %v6395_v36, %s5636_s21  ;;  %482 = vst.msk [vmem:[#allocation2 + $0x189] sm:$0xff] %vm362_vm0, %v449_v10 }
 0x1cc   : > { %v1211_v13 = vpop.permute.xlu0 %1210 }
 0x1cd   : > { %v1209_v12 = vpop.permute.xlu1 %1208  ;;  %1297 = vst.msk [vmem:[#allocation4 + $0x50] sm:$0xff] %vm1286_vm6, %v1211_v13 }
 0x1ce   : > { %1296 = vst.msk [vmem:[#allocation4 + $0x48] sm:$0xff] %vm1286_vm6, %v1209_v12  ;;  %1029 = vrot.lane.b32.xlu0 %v6147_v61, %s5637_s22  ;;  %v6564_v61 = vld [vmem:[#allocation2 + $0x150] sm:$0xff] }
 0x1cf   : > { %842 = vrot.lane.b32.xlu1 %v6452_v2, %s5636_s21  ;;  %543 = vst.msk [vmem:[#allocation4 + $0xe0] sm:$0xff] %vm362_vm0, %v6564_v61  ;;  %vm3112_vm0 = vcmask 1048320  }
 0x1d0   : > { %v1400_v16 = vpop.permute.xlu0 %1399 }
 0x1d1   : > { %v1213_v15 = vpop.permute.xlu1 %1212  ;;  %1488 = vst.msk [vmem:[#allocation4 + $0x40] sm:$0xff] %vm1479_vm7, %v1400_v16  ;;  %v6754_v16 = vld [vmem:[#allocation2 + $0x129] sm:$0xff] }
 0x1d2   : > { %1298 = vst.msk [vmem:[#allocation4 + $0x58] sm:$0xff] %vm1286_vm6, %v1213_v15  ;;  %1033 = vrot.lane.b32.xlu0 %v6216_v23, %s5637_s22  ;;  %v6746_v15 = vld [vmem:[#allocation2 + $0x121] sm:$0xff] }
 0x1d3   : > { %1031 = vrot.lane.b32.xlu1 %v6153_v62, %s5637_s22 }
 0x1d4   : > { %v1404_v17 = vpop.permute.xlu0 %1403 }
 0x1d5   : > { %v1402_v62 = vpop.permute.xlu1 %1401  ;;  %1490 = vst.msk [vmem:[#allocation4 + $0x50] sm:$0xff] %vm1479_vm7, %v1404_v17 }
 0x1d6   : > { %1489 = vst.msk [vmem:[#allocation4 + $0x48] sm:$0xff] %vm1479_vm7, %v1402_v62  ;;  %1222 = vrot.lane.b32.xlu0 %v6426_v48, %s5638_s12 }
 0x1d7   : > { %1035 = vrot.lane.b32.xlu1 %v6223_v26, %s5637_s22 }
 0x1d8   : > { %v1594_v0 = vpop.permute.xlu0 %1593 }
 0x1d9   : > { %v1406_v19 = vpop.permute.xlu1 %1405  ;;  %1682 = vst.msk [vmem:[#allocation4 + $0x40] sm:$0xff] %vm1673_vm8, %v1594_v0  ;;  %v6762_v0 = vld [vmem:[#allocation2 + $0x122] sm:$0xff] }
 0x1da   : > { %1491 = vst.msk [vmem:[#allocation4 + $0x58] sm:$0xff] %vm1479_vm7, %v1406_v19  ;;  %1226 = vrot.lane.b32.xlu0 %v6616_v21, %s5638_s12  ;;  %v5412_v19 = vld [vmem:[#allocation10 + $0x80] sm:$0xff]  }
 0x1db   : > { %1224 = vrot.lane.b32.xlu1 %v6434_v50, %s5638_s12  ;;  %5247 = vmatprep.subr.bf16.mxu0 %v5412_v19 }
 0x1dc   : > { %v1598_v24 = vpop.permute.xlu0 %1597  ;;  %5248 = vmatpush3.bf16.msra.mxu0 %v5412_v19  ;;  %v6880_v19 = vld [vmem:[#allocation2 + $0x159] sm:$0xff] }
 0x1dd   : > { %v1596_v42 = vpop.permute.xlu1 %1595  ;;  %1684 = vst.msk [vmem:[#allocation4 + $0x50] sm:$0xff] %vm1673_vm8, %v1598_v24  ;;  %v6770_v24 = vld [vmem:[#allocation2 + $0x12a] sm:$0xff] }
 0x1de   : > { %1683 = vst.msk [vmem:[#allocation4 + $0x48] sm:$0xff] %vm1673_vm8, %v1596_v42  ;;  %1415 = vrot.lane.b32.xlu0 %v6443_v59, %s5639_s23  ;;  %v6698_v59 = vld [vmem:[#allocation2 + $0x112] sm:$0xff]  ;;  %v5413_v42 = vld [vmem:[#allocation10 + $0x88] sm:$0xff]  }
 0x1df   : > { %1228 = vrot.lane.b32.xlu1 %v6624_v41, %s5638_s12  ;;  %5249 = vmatprep.subr.bf16.mxu0 %v5413_v42 }
 0x1e0   : > { %v1787_v28 = vpop.permute.xlu0 %1786  ;;  %5250 = vmatpush3.bf16.msra.mxu0 %v5413_v42 }
 0x1e1   : > { %v1600_v25 = vpop.permute.xlu1 %1599  ;;  %1875 = vst.msk [vmem:[#allocation4 + $0x40] sm:$0xff] %vm1866_vm9, %v1787_v28 }
 0x1e2   : > { %1685 = vst.msk [vmem:[#allocation4 + $0x58] sm:$0xff] %vm1673_vm8, %v1600_v25  ;;  %1419 = vrot.lane.b32.xlu0 %v6632_v27, %s5639_s23 }
 0x1e3   : > { %1417 = vrot.lane.b32.xlu1 %v6452_v2, %s5639_s23 }
 0x1e4   : > { %v1791_v32 = vpop.permute.xlu0 %1790 }
 0x1e5   : > { %v1789_v31 = vpop.permute.xlu1 %1788  ;;  %1877 = vst.msk [vmem:[#allocation4 + $0x50] sm:$0xff] %vm1866_vm9, %v1791_v32  ;;  %v6790_v32 = vld [vmem:[#allocation2 + $0x139] sm:$0xff] }
 0x1e6   : > { %1876 = vst.msk [vmem:[#allocation4 + $0x48] sm:$0xff] %vm1866_vm9, %v1789_v31  ;;  %1609 = vrot.lane.b32.xlu0 %v6216_v23, %s5640_s25 }
 0x1e7   : > { %1421 = vrot.lane.b32.xlu1 %v6641_v30, %s5639_s23 }
 0x1e8   : > { %v1980_v37 = vpop.permute.xlu0 %1979 }
 0x1e9   : > { %v1793_v36 = vpop.permute.xlu1 %1792  ;;  %2068 = vst.msk [vmem:[#allocation4 + $0x40] sm:$0xff] %vm2059_vm10, %v1980_v37 }
 0x1ea   : > { %1878 = vst.msk [vmem:[#allocation4 + $0x58] sm:$0xff] %vm1866_vm9, %v1793_v36  ;;  %1613 = vrot.lane.b32.xlu0 %v6272_v47, %s5640_s25  ;;  %v6798_v36 = vld [vmem:[#allocation2 + $0x141] sm:$0xff] }
 0x1eb   : > { %1611 = vrot.lane.b32.xlu1 %v6223_v26, %s5640_s25 }
 0x1ec   : > { %v1984_v23 = vpop.permute.xlu0 %1983 }
 0x1ed   : > { %v1982_v39 = vpop.permute.xlu1 %1981  ;;  %2070 = vst.msk [vmem:[#allocation4 + $0x50] sm:$0xff] %vm2059_vm10, %v1984_v23 }
 0x1ee   : > { %2069 = vst.msk [vmem:[#allocation4 + $0x48] sm:$0xff] %vm2059_vm10, %v1982_v39  ;;  %1802 = vrot.lane.b32.xlu0 %v6616_v21, %s5641_s9 }
 0x1ef   : > { %1615 = vrot.lane.b32.xlu1 %v6279_v49, %s5640_s25 }
 0x1f0   : > { %v636_v45 = vpop.permute.xlu0 %635  ;;  %v2100_v53 = vld [vmem:[#allocation4 + $0x40] sm:$0xff] }
 0x1f1   : > { %v1986_v26 = vpop.permute.xlu1 %1985  ;;  %720 = vst.msk [vmem:[#allocation4 + $0x60] sm:$0xff] %vm707_vm3, %v636_v45 }
 0x1f2   : > { %2071 = vst.msk [vmem:[#allocation4 + $0x58] sm:$0xff] %vm2059_vm10, %v1986_v26  ;;  %1806 = vrot.lane.b32.xlu0 %v6672_v43, %s5641_s9 }
 0x1f3   : > { %1804 = vrot.lane.b32.xlu1 %v6624_v41, %s5641_s9 }
 0x1f4   : > { %v640_v35 = vpop.permute.xlu0 %639  ;;  %v2102_v51 = vld [vmem:[#allocation4 + $0x50] sm:$0xff] }
 0x1f5   : > { %v638_v48 = vpop.permute.xlu1 %637  ;;  %v2101_v34 = vld [vmem:[#allocation4 + $0x48] sm:$0xff]  ;;  %722 = vst.msk [vmem:[#allocation4 + $0x70] sm:$0xff] %vm707_vm3, %v640_v35 }
 0x1f6   : > { %721 = vst.msk [vmem:[#allocation4 + $0x68] sm:$0xff] %vm707_vm3, %v638_v48  ;;  %v2128_v50 = vpack.c.bf16 %v2101_v34, %v2100_v53  ;;  %1995 = vrot.lane.b32.xlu0 %v6632_v27, %s5642_s29  ;;  %v6807_v53 = vld [vmem:[#allocation2 + $0x13a] sm:$0xff]  ;;  %v6816_v35 = vld [vmem:[#allocation2 + $0x142] sm:$0xff] }
 0x1f7   : > { %1808 = vrot.lane.b32.xlu1 %v6680_v54, %s5641_s9 }
 0x1f8   : > { %5223 = vmatprep.mubr.msk.bf16.mxu0 %vm2167_vm11, %v2128_v50  ;;  %v829_v57 = vpop.permute.xlu0 %828 }
 0x1f9   : > { %v642_v52 = vpop.permute.xlu1 %641  ;;  %v2103_v56 = vld [vmem:[#allocation4 + $0x58] sm:$0xff]  ;;  %913 = vst.msk [vmem:[#allocation4 + $0x60] sm:$0xff] %vm900_vm4, %v829_v57 }
 0x1fa   : > { %723 = vst.msk [vmem:[#allocation4 + $0x78] sm:$0xff] %vm707_vm3, %v642_v52  ;;  %v2129_v58 = vpack.c.bf16 %v2103_v56, %v2102_v51  ;;  %1999 = vrot.lane.b32.xlu0 %v6689_v55, %s5642_s29 }
 0x1fb   : > { %1997 = vrot.lane.b32.xlu1 %v6641_v30, %s5642_s29 }
 0x1fc   : > { %5224 = vmatmul.mubr.msk.bf16.gmra.mrb[8].mxu0 %vm2167_vm11, %v2129_v58  ;;  %v833_v63 = vpop.permute.xlu0 %832 }
 0x1fd   : > { %v831_v60 = vpop.permute.xlu1 %830  ;;  %915 = vst.msk [vmem:[#allocation4 + $0x70] sm:$0xff] %vm900_vm4, %v833_v63  ;;  %v6842_v63 = vld [vmem:[#allocation8] ss:$0 sm:$0xff] }
 0x1fe   : > { %914 = vst.msk [vmem:[#allocation4 + $0x68] sm:$0xff] %vm900_vm4, %v831_v60  ;;  %651 = vrot.lane.b32.xlu0 %v6616_v21, %s5635_s20 }
 0x1ff   : > { %2001 = vrot.lane.b32.xlu1 %v6698_v59, %s5642_s29 }
 0x200   : > { %v1022_v2 = vpop.permute.xlu0 %1021 }
 0x201   : > { %v835_v1 = vpop.permute.xlu1 %834  ;;  %1106 = vst.msk [vmem:[#allocation4 + $0x60] sm:$0xff] %vm1093_vm5, %v1022_v2 }
 0x202   : > { %916 = vst.msk [vmem:[#allocation4 + $0x78] sm:$0xff] %vm900_vm4, %v835_v1  ;;  %655 = vrot.lane.b32.xlu0 %v6672_v43, %s5635_s20 }
 0x203   : > { %653 = vrot.lane.b32.xlu1 %v6624_v41, %s5635_s20 }
 0x204   : > { %v1026_v4 = vpop.permute.xlu0 %1025 }
 0x205   : > { %v1024_v3 = vpop.permute.xlu1 %1023  ;;  %1108 = vst.msk [vmem:[#allocation4 + $0x70] sm:$0xff] %vm1093_vm5, %v1026_v4 }
 0x206   : > { %1107 = vst.msk [vmem:[#allocation4 + $0x68] sm:$0xff] %vm1093_vm5, %v1024_v3  ;;  %844 = vrot.lane.b32.xlu0 %v6632_v27, %s5636_s21 }
 0x207   : > { %657 = vrot.lane.b32.xlu1 %v6680_v54, %s5635_s20 }
 0x208   : > { %v1215_v6 = vpop.permute.xlu0 %1214 }
 0x209   : > { %v1028_v5 = vpop.permute.xlu1 %1027  ;;  %1299 = vst.msk [vmem:[#allocation4 + $0x60] sm:$0xff] %vm1286_vm6, %v1215_v6 }
 0x20a   : > { %1109 = vst.msk [vmem:[#allocation4 + $0x78] sm:$0xff] %vm1093_vm5, %v1028_v5  ;;  %848 = vrot.lane.b32.xlu0 %v6689_v55, %s5636_s21 }
 0x20b   : > { %846 = vrot.lane.b32.xlu1 %v6641_v30, %s5636_s21 }
 0x20c   : > { %v1219_v9 = vpop.permute.xlu0 %1218 }
 0x20d   : > { %v1217_v8 = vpop.permute.xlu1 %1216  ;;  %1301 = vst.msk [vmem:[#allocation4 + $0x70] sm:$0xff] %vm1286_vm6, %v1219_v9 }
 0x20e   : > { %1300 = vst.msk [vmem:[#allocation4 + $0x68] sm:$0xff] %vm1286_vm6, %v1217_v8  ;;  %1037 = vrot.lane.b32.xlu0 %v6272_v47, %s5637_s22 }
 0x20f   : > { %850 = vrot.lane.b32.xlu1 %v6698_v59, %s5636_s21 }
 0x210   : > { %v1408_v12 = vpop.permute.xlu0 %1407 }
 0x211   : > { %v1221_v11 = vpop.permute.xlu1 %1220  ;;  %1492 = vst.msk [vmem:[#allocation4 + $0x60] sm:$0xff] %vm1479_vm7, %v1408_v12 }
 0x212   : > { %1302 = vst.msk [vmem:[#allocation4 + $0x78] sm:$0xff] %vm1286_vm6, %v1221_v11  ;;  %1041 = vrot.lane.b32.xlu0 %v6354_v20, %s5637_s22 }
 0x213   : > { %1039 = vrot.lane.b32.xlu1 %v6279_v49, %s5637_s22 }
 0x214   : > { %v1412_v14 = vpop.permute.xlu0 %1411 }
 0x215   : > { %v1410_v13 = vpop.permute.xlu1 %1409  ;;  %1494 = vst.msk [vmem:[#allocation4 + $0x70] sm:$0xff] %vm1479_vm7, %v1412_v14 }
 0x216   : > { %1493 = vst.msk [vmem:[#allocation4 + $0x68] sm:$0xff] %vm1479_vm7, %v1410_v13  ;;  %1230 = vrot.lane.b32.xlu0 %v6672_v43, %s5638_s12 }
 0x217   : > { %1043 = vrot.lane.b32.xlu1 %v6361_v22, %s5637_s22 }
 0x218   : > { %v1602_v49 = vpop.permute.xlu0 %1601 }
 0x219   : > { %v1414_v47 = vpop.permute.xlu1 %1413  ;;  %1686 = vst.msk [vmem:[#allocation4 + $0x60] sm:$0xff] %vm1673_vm8, %v1602_v49  ;;  %v6870_v49 = vld [vmem:[#allocation2 + $0x151] sm:$0xff] }
 0x21a   : > { %1495 = vst.msk [vmem:[#allocation4 + $0x78] sm:$0xff] %vm1479_vm7, %v1414_v47  ;;  %1234 = vrot.lane.b32.xlu0 %v6746_v15, %s5638_s12 }
 0x21b   : > { %1232 = vrot.lane.b32.xlu1 %v6680_v54, %s5638_s12 }
 0x21c   : > { %v1606_v17 = vpop.permute.xlu0 %1605 }
 0x21d   : > { %v1604_v62 = vpop.permute.xlu1 %1603  ;;  %1688 = vst.msk [vmem:[#allocation4 + $0x70] sm:$0xff] %vm1673_vm8, %v1606_v17 }
 0x21e   : > { %1687 = vst.msk [vmem:[#allocation4 + $0x68] sm:$0xff] %vm1673_vm8, %v1604_v62  ;;  %1423 = vrot.lane.b32.xlu0 %v6689_v55, %s5639_s23 }
 0x21f   : > { %1236 = vrot.lane.b32.xlu1 %v6754_v16, %s5638_s12 }
 0x220   : > { %v1795_v41 = vpop.permute.xlu0 %1794 }
 0x221   : > { %v1608_v21 = vpop.permute.xlu1 %1607  ;;  %1879 = vst.msk [vmem:[#allocation4 + $0x60] sm:$0xff] %vm1866_vm9, %v1795_v41 }
 0x222   : > { %1689 = vst.msk [vmem:[#allocation4 + $0x78] sm:$0xff] %vm1673_vm8, %v1608_v21  ;;  %1427 = vrot.lane.b32.xlu0 %v6762_v0, %s5639_s23 }
 0x223   : > { %1425 = vrot.lane.b32.xlu1 %v6698_v59, %s5639_s23 }
 0x224   : > { %v1799_v27 = vpop.permute.xlu0 %1798 }
 0x225   : > { %v1797_v25 = vpop.permute.xlu1 %1796  ;;  %1881 = vst.msk [vmem:[#allocation4 + $0x70] sm:$0xff] %vm1866_vm9, %v1799_v27 }
 0x226   : > { %1880 = vst.msk [vmem:[#allocation4 + $0x68] sm:$0xff] %vm1866_vm9, %v1797_v25  ;;  %1617 = vrot.lane.b32.xlu0 %v6354_v20, %s5640_s25 }
 0x227   : > { %1429 = vrot.lane.b32.xlu1 %v6770_v24, %s5639_s23 }
 0x228   : > { %v1988_v29 = vpop.permute.xlu0 %1987 }
 0x229   : > { %v1801_v28 = vpop.permute.xlu1 %1800  ;;  %2072 = vst.msk [vmem:[#allocation4 + $0x60] sm:$0xff] %vm2059_vm10, %v1988_v29 }
 0x22a   : > { %1882 = vst.msk [vmem:[#allocation4 + $0x78] sm:$0xff] %vm1866_vm9, %v1801_v28  ;;  %1621 = vrot.lane.b32.xlu0 %v6410_v44, %s5640_s25 }
 0x22b   : > { %1619 = vrot.lane.b32.xlu1 %v6361_v22, %s5640_s25 }
 0x22c   : > { %v1992_v31 = vpop.permute.xlu0 %1991 }
 0x22d   : > { %v1990_v30 = vpop.permute.xlu1 %1989  ;;  %2074 = vst.msk [vmem:[#allocation4 + $0x70] sm:$0xff] %vm2059_vm10, %v1992_v31 }
 0x22e   : > { %2073 = vst.msk [vmem:[#allocation4 + $0x68] sm:$0xff] %vm2059_vm10, %v1990_v30  ;;  %1810 = vrot.lane.b32.xlu0 %v6746_v15, %s5641_s9 }
 0x22f   : > { %1623 = vrot.lane.b32.xlu1 %v6417_v46, %s5640_s25 }
 0x230   : > { %v644_v22 = vpop.permute.xlu0 %643  ;;  %v2104_v33 = vld [vmem:[#allocation4 + $0x60] sm:$0xff] }
 0x231   : > { %v1994_v20 = vpop.permute.xlu1 %1993  ;;  %724 = vst.msk [vmem:[#allocation4 + $0x80] sm:$0xff] %vm707_vm3, %v644_v22  ;;  %v6928_v22 = vld [vmem:[#allocation2 + $0x15a] sm:$0xff] }
 0x232   : > { %2075 = vst.msk [vmem:[#allocation4 + $0x78] sm:$0xff] %vm2059_vm10, %v1994_v20  ;;  %1814 = vrot.lane.b32.xlu0 %v6790_v32, %s5641_s9  ;;  %v6920_v20 = vld [vmem:[#allocation2 + $0x152] sm:$0xff] }
 0x233   : > { %1812 = vrot.lane.b32.xlu1 %v6754_v16, %s5641_s9 }
 0x234   : > { %v648_v23 = vpop.permute.xlu0 %647  ;;  %v2106_v43 = vld [vmem:[#allocation4 + $0x70] sm:$0xff] }
 0x235   : > { %v646_v37 = vpop.permute.xlu1 %645  ;;  %v2105_v39 = vld [vmem:[#allocation4 + $0x68] sm:$0xff]  ;;  %726 = vst.msk [vmem:[#allocation4 + $0x90] sm:$0xff] %vm707_vm3, %v648_v23 }
 0x236   : > { %725 = vst.msk [vmem:[#allocation4 + $0x88] sm:$0xff] %vm707_vm3, %v646_v37  ;;  %v2130_v26 = vpack.c.bf16 %v2105_v39, %v2104_v33  ;;  %2003 = vrot.lane.b32.xlu0 %v6762_v0, %s5642_s29 }
 0x237   : > { %1816 = vrot.lane.b32.xlu1 %v6798_v36, %s5641_s9 }
 0x238   : > { %5227 = vmatprep.mubr.msk.bf16.mxu0 %vm2167_vm11, %v2130_v26  ;;  %v837_v48 = vpop.permute.xlu0 %836 }
 0x239   : > { %v650_v45 = vpop.permute.xlu1 %649  ;;  %v2107_v54 = vld [vmem:[#allocation4 + $0x78] sm:$0xff]  ;;  %917 = vst.msk [vmem:[#allocation4 + $0x80] sm:$0xff] %vm900_vm4, %v837_v48 }
 0x23a   : > { %727 = vst.msk [vmem:[#allocation4 + $0x98] sm:$0xff] %vm707_vm3, %v650_v45  ;;  %v2131_v34 = vpack.c.bf16 %v2107_v54, %v2106_v43  ;;  %2007 = vrot.lane.b32.xlu0 %v6807_v53, %s5642_s29  ;;  %v6949_v54 = vld [vmem:[#allocation2 + $0x169] sm:$0xff] }
 0x23b   : > { %2005 = vrot.lane.b32.xlu1 %v6770_v24, %s5642_s29 }
 0x23c   : > { %5228 = vmatmul.mubr.msk.bf16.gmra.mrb[12].mxu0 %vm2167_vm11, %v2131_v34  ;;  %v841_v51 = vpop.permute.xlu0 %840  ;;  %v6957_v34 = vld [vmem:[#allocation2 + $0x171] sm:$0xff] }
 0x23d   : > { %v839_v50 = vpop.permute.xlu1 %838  ;;  %919 = vst.msk [vmem:[#allocation4 + $0x90] sm:$0xff] %vm900_vm4, %v841_v51 }
 0x23e   : > { %918 = vst.msk [vmem:[#allocation4 + $0x88] sm:$0xff] %vm900_vm4, %v839_v50  ;;  %659 = vrot.lane.b32.xlu0 %v6746_v15, %s5635_s20 }
 0x23f   : > { %2009 = vrot.lane.b32.xlu1 %v6816_v35, %s5642_s29 }
 0x240   : > { %v1030_v55 = vpop.permute.xlu0 %1029 }
 0x241   : > { %v843_v52 = vpop.permute.xlu1 %842  ;;  %1110 = vst.msk [vmem:[#allocation4 + $0x80] sm:$0xff] %vm1093_vm5, %v1030_v55 }
 0x242   : > { %920 = vst.msk [vmem:[#allocation4 + $0x98] sm:$0xff] %vm900_vm4, %v843_v52  ;;  %663 = vrot.lane.b32.xlu0 %v6790_v32, %s5635_s20 }
 0x243   : > { %661 = vrot.lane.b32.xlu1 %v6754_v16, %s5635_s20 }
 0x244   : > { %v1034_v57 = vpop.permute.xlu0 %1033 }
 0x245   : > { %v1032_v56 = vpop.permute.xlu1 %1031  ;;  %1112 = vst.msk [vmem:[#allocation4 + $0x90] sm:$0xff] %vm1093_vm5, %v1034_v57  ;;  %v6966_v57 = vld [vmem:[#allocation2 + $0x16a] sm:$0xff] }
 0x246   : > { %1111 = vst.msk [vmem:[#allocation4 + $0x88] sm:$0xff] %vm1093_vm5, %v1032_v56  ;;  %852 = vrot.lane.b32.xlu0 %v6762_v0, %s5636_s21 }
 0x247   : > { %665 = vrot.lane.b32.xlu1 %v6798_v36, %s5635_s20 }
 0x248   : > { %v1223_v59 = vpop.permute.xlu0 %1222 }
 0x249   : > { %v1036_v58 = vpop.permute.xlu1 %1035  ;;  %1303 = vst.msk [vmem:[#allocation4 + $0x80] sm:$0xff] %vm1286_vm6, %v1223_v59 }
 0x24a   : > { %1113 = vst.msk [vmem:[#allocation4 + $0x98] sm:$0xff] %vm1093_vm5, %v1036_v58  ;;  %856 = vrot.lane.b32.xlu0 %v6807_v53, %s5636_s21 }
 0x24b   : > { %854 = vrot.lane.b32.xlu1 %v6770_v24, %s5636_s21 }
 0x24c   : > { %v1227_v1 = vpop.permute.xlu0 %1226 }
 0x24d   : > { %v1225_v60 = vpop.permute.xlu1 %1224  ;;  %1305 = vst.msk [vmem:[#allocation4 + $0x90] sm:$0xff] %vm1286_vm6, %v1227_v1  ;;  %v6975_v1 = vld [vmem:[#allocation2 + $0x172] sm:$0xff] }
 0x24e   : > { %1304 = vst.msk [vmem:[#allocation4 + $0x88] sm:$0xff] %vm1286_vm6, %v1225_v60  ;;  %1045 = vrot.lane.b32.xlu0 %v6410_v44, %s5637_s22 }
 0x24f   : > { %858 = vrot.lane.b32.xlu1 %v6816_v35, %s5636_s21  ;;  %v5217_v2 = vpop.f32.mrb[0].mxu0 }
 0x250   : > { %v2263_v3 = vadd.f32 %v5217_v2, %v6842_v63  ;;  %v2254_v4 = vpop.f32.mrb[1].mxu0  ;;  %v1416_v10 = vpop.permute.xlu0 %1415 }
 0x251   : > { %v2255_v5 = vadd.f32 %v6842_v63, %v2254_v4  ;;  %v1229_v6 = vpop.permute.xlu1 %1228  ;;  %v5218_v7 = vpop.f32.mrb[2].mxu0  ;;  %1496 = vst.msk [vmem:[#allocation4 + $0x80] sm:$0xff] %vm1479_vm7, %v1416_v10 }
 0x252   : > { %v2383_v8 = vmax.f32 %v2263_v3, 0.0  ;;  %1306 = vst.msk [vmem:[#allocation4 + $0x98] sm:$0xff] %vm1286_vm6, %v1229_v6  ;;  %v2266_v9 = vadd.f32 %v5218_v7, %v6842_v63  ;;  %v2257_v11 = vpop.f32.mrb[3].mxu0  ;;  %1049 = vrot.lane.b32.xlu0 %v6564_v61, %s5637_s22 }
 0x253   : > { %v2381_v12 = vmax.f32 %v2255_v5, 0.0  ;;  %v2258_v13 = vadd.f32 %v6842_v63, %v2257_v11  ;;  %1047 = vrot.lane.b32.xlu1 %v6417_v46, %s5637_s22 }
 0x254   : > { %2472 = vst.msk [vmem:[#allocation3 + $0x31] sm:$0xff] %vm2413_vm12, %v2383_v8  ;;  %v2384_v44 = vmax.f32 %v2266_v9, 0.0  ;;  %v1420_v15 = vpop.permute.xlu0 %1419 }
 0x255   : > { %2470 = vst.msk [vmem:[#allocation3 + $0x19] sm:$0xff] %vm2413_vm12, %v2381_v12  ;;  %v2382_v14 = vmax.f32 %v2258_v13, 0.0  ;;  %v1418_v47 = vpop.permute.xlu1 %1417 }
 0x256   : > { %2473 = vst.msk [vmem:[#allocation3 + $0x39] sm:$0xff] %vm2413_vm12, %v2384_v44  ;;  %1238 = vrot.lane.b32.xlu0 %v6790_v32, %s5638_s12 }
 0x257   : > { %1497 = vst.msk [vmem:[#allocation4 + $0x88] sm:$0xff] %vm1479_vm7, %v1418_v47  ;;  %1498 = vst.msk [vmem:[#allocation4 + $0x90] sm:$0xff] %vm1479_vm7, %v1420_v15  ;;  %1051 = vrot.lane.b32.xlu1 %v6607_v18, %s5637_s22 }
 0x258   : > { %2471 = vst.msk [vmem:[#allocation3 + $0x21] sm:$0xff] %vm2413_vm12, %v2382_v14  ;;  %v1610_v16 = vpop.permute.xlu0 %1609 }
 0x259   : > { %v1422_v46 = vpop.permute.xlu1 %1421  ;;  %1690 = vst.msk [vmem:[#allocation4 + $0x80] sm:$0xff] %vm1673_vm8, %v1610_v16 }
 0x25a   : > { %1499 = vst.msk [vmem:[#allocation4 + $0x98] sm:$0xff] %vm1479_vm7, %v1422_v46  ;;  %1242 = vrot.lane.b32.xlu0 %v6870_v49, %s5638_s12  ;;  %v7009_v46 = vld [vmem:[#allocation2 + $0x180] sm:$0xff] }
 0x25b   : > { %1240 = vrot.lane.b32.xlu1 %v6798_v36, %s5638_s12  ;;  %v6876_v62 = vld [vmem:[#allocation3 + $0x31] sm:$0xff] }
 0x25c   : > { %v2506_v17 = vld [vmem:[#allocation3 + $0x30] sm:$0xff]  ;;  %v6882_v21 = vld [vmem:[#allocation3 + $0x18] sm:$0xff]  ;;  %3179 = vst.msk [vmem:[#allocation5 + $0x38] sm:$0xff] %vm2413_vm12, %v6876_v62  ;;  %v1614_v25 = vpop.permute.xlu0 %1613 }
 0x25d   : > { %v6884_v0 = vld [vmem:[#allocation3 + $0x19] sm:$0xff]  ;;  %2538 = vst.msk [vmem:[#allocation5 + $0x60] sm:$0xff] %vm2413_vm12, %v2506_v17  ;;  %v1612_v41 = vpop.permute.xlu1 %1611  ;;  %2536 = vst.msk [vmem:[#allocation5 + $0x30] sm:$0xff] %vm2413_vm12, %v6882_v21 }
 0x25e   : > { %v6889_v42 = vld [vmem:[#allocation3 + $0x32] sm:$0xff]  ;;  %v6891_v24 = vld [vmem:[#allocation3 + $0x3a] sm:$0xff]  ;;  %3177 = vst.msk [vmem:[#allocation5 + $0x8] sm:$0xff] %vm2413_vm12, %v6884_v0  ;;  %1431 = vrot.lane.b32.xlu0 %v6807_v53, %s5639_s23 }
 0x25f   : > { %1691 = vst.msk [vmem:[#allocation4 + $0x88] sm:$0xff] %vm1673_vm8, %v1612_v41  ;;  %v6902_v27 = vld [vmem:[#allocation3 + $0x39] sm:$0xff]  ;;  %1692 = vst.msk [vmem:[#allocation4 + $0x90] sm:$0xff] %vm1673_vm8, %v1614_v25  ;;  %1244 = vrot.lane.b32.xlu1 %v6880_v19, %s5638_s12  ;;  %v6909_v29 = vld [vmem:[#allocation3 + $0x21] sm:$0xff] }
 0x260   : > { %3818 = vst.msk [vmem:[#allocation5 + $0x10] sm:$0xff] %vm2413_vm12, %v6889_v42  ;;  %3819 = vst.msk [vmem:[#allocation5 + $0x28] sm:$0xff] %vm2413_vm12, %v6891_v24  ;;  %v6907_v28 = vld [vmem:[#allocation3 + $0x20] sm:$0xff]  ;;  %v2507_v30 = vld [vmem:[#allocation3 + $0x38] sm:$0xff]  ;;  %v1803_v32 = vpop.permute.xlu0 %1802 }
 0x261   : > { %3180 = vst.msk [vmem:[#allocation5 + $0x50] sm:$0xff] %vm2413_vm12, %v6902_v27  ;;  %3178 = vst.msk [vmem:[#allocation5 + $0x20] sm:$0xff] %vm2413_vm12, %v6909_v29  ;;  %v1616_v31 = vpop.permute.xlu1 %1615 }
 0x262   : > { %2537 = vst.msk [vmem:[#allocation5 + $0x48] sm:$0xff] %vm2413_vm12, %v6907_v28  ;;  %2539 = vst.msk [vmem:[#allocation5 + $0x78] sm:$0xff] %vm2413_vm12, %v2507_v30  ;;  %1435 = vrot.lane.b32.xlu0 %v6920_v20, %s5639_s23  ;;  %v7020_v30 = vld [vmem:[#allocation2 + $0x188] sm:$0xff] }
 0x263   : > { %1693 = vst.msk [vmem:[#allocation4 + $0x98] sm:$0xff] %vm1673_vm8, %v1616_v31  ;;  %1433 = vrot.lane.b32.xlu1 %v6816_v35, %s5639_s23 }
 0x264   : > { %1883 = vst.msk [vmem:[#allocation4 + $0x80] sm:$0xff] %vm1866_vm9, %v1803_v32  ;;  %v1807_v39 = vpop.permute.xlu0 %1806 }
 0x265   : > { %v1805_v33 = vpop.permute.xlu1 %1804  ;;  %1885 = vst.msk [vmem:[#allocation4 + $0x90] sm:$0xff] %vm1866_vm9, %v1807_v39  ;;  %v7041_v39 = vld [vmem:[#allocation2 + $0x189] sm:$0xff] }
 0x266   : > { %1884 = vst.msk [vmem:[#allocation4 + $0x88] sm:$0xff] %vm1866_vm9, %v1805_v33  ;;  %1625 = vrot.lane.b32.xlu0 %v6564_v61, %s5640_s25 }
 0x267   : > { %v3852_v36 = vld [vmem:[#allocation5 + $0x10] sm:$0xff]  ;;  %v3855_v37 = vld [vmem:[#allocation5 + $0x28] sm:$0xff]  ;;  %1437 = vrot.lane.b32.xlu1 %v6928_v22, %s5639_s23 }
 0x268   : > { %v3948_v23 = vpack.c.bf16 %v3855_v37, %v3852_v36  ;;  %v1996_v43 = vpop.permute.xlu0 %1995 }
 0x269   : > { %v1809_v26 = vpop.permute.xlu1 %1808  ;;  %2076 = vst.msk [vmem:[#allocation4 + $0x80] sm:$0xff] %vm2059_vm10, %v1996_v43 }
 0x26a   : > { %5251 = vmatprep.mubr.msk.bf16.mxu0 %vm2413_vm12, %v3948_v23  ;;  %1886 = vst.msk [vmem:[#allocation4 + $0x98] sm:$0xff] %vm1866_vm9, %v1809_v26  ;;  %1629 = vrot.lane.b32.xlu0 %v6656_v38, %s5640_s25 }
 0x26b   : > { %1627 = vrot.lane.b32.xlu1 %v6607_v18, %s5640_s25 }
 0x26c   : > { %v2000_v53 = vpop.permute.xlu0 %1999 }
 0x26d   : > { %v1998_v45 = vpop.permute.xlu1 %1997  ;;  %2078 = vst.msk [vmem:[#allocation4 + $0x90] sm:$0xff] %vm2059_vm10, %v2000_v53 }
 0x26e   : > { %2077 = vst.msk [vmem:[#allocation4 + $0x88] sm:$0xff] %vm2059_vm10, %v1998_v45  ;;  %1818 = vrot.lane.b32.xlu0 %v6870_v49, %s5641_s9 }
 0x26f   : > { %1631 = vrot.lane.b32.xlu1 %v6663_v40, %s5640_s25 }
 0x270   : > { %v652_v18 = vpop.permute.xlu0 %651  ;;  %v2108_v48 = vld [vmem:[#allocation4 + $0x80] sm:$0xff] }
 0x271   : > { %v2002_v61 = vpop.permute.xlu1 %2001  ;;  %728 = vst.msk [vmem:[#allocation4 + $0xa0] sm:$0xff] %vm707_vm3, %v652_v18 }
 0x272   : > { %2079 = vst.msk [vmem:[#allocation4 + $0x98] sm:$0xff] %vm2059_vm10, %v2002_v61  ;;  %1822 = vrot.lane.b32.xlu0 %v6949_v54, %s5641_s9 }
 0x273   : > { %1820 = vrot.lane.b32.xlu1 %v6880_v19, %s5641_s9 }
 0x274   : > { %v656_v51 = vpop.permute.xlu0 %655  ;;  %v2110_v55 = vld [vmem:[#allocation4 + $0x90] sm:$0xff] }
 0x275   : > { %v654_v35 = vpop.permute.xlu1 %653  ;;  %v2109_v50 = vld [vmem:[#allocation4 + $0x88] sm:$0xff]  ;;  %730 = vst.msk [vmem:[#allocation4 + $0xb0] sm:$0xff] %vm707_vm3, %v656_v51 }
 0x276   : > { %729 = vst.msk [vmem:[#allocation4 + $0xa8] sm:$0xff] %vm707_vm3, %v654_v35  ;;  %v2132_v52 = vpack.c.bf16 %v2109_v50, %v2108_v48  ;;  %2011 = vrot.lane.b32.xlu0 %v6920_v20, %s5642_s29 }
 0x277   : > { %1824 = vrot.lane.b32.xlu1 %v6957_v34, %s5641_s9 }
 0x278   : > { %5231 = vmatprep.mubr.msk.bf16.mxu1 %vm2167_vm11, %v2132_v52  ;;  %v845_v59 = vpop.permute.xlu0 %844  ;;  %v1349_v52 = vld [vmem:[#allocation2 + $0x182] sm:$0xff] }
 0x279   : > { %v658_v56 = vpop.permute.xlu1 %657  ;;  %v2111_v58 = vld [vmem:[#allocation4 + $0x98] sm:$0xff]  ;;  %921 = vst.msk [vmem:[#allocation4 + $0xa0] sm:$0xff] %vm900_vm4, %v845_v59 }
 0x27a   : > { %731 = vst.msk [vmem:[#allocation4 + $0xb8] sm:$0xff] %vm707_vm3, %v658_v56  ;;  %v2133_v60 = vpack.c.bf16 %v2111_v58, %v2110_v55  ;;  %2015 = vrot.lane.b32.xlu0 %v6966_v57, %s5642_s29  ;;  %v7088_v56 = vld [vmem:[#allocation2 + $0x18a] sm:$0xff] }
 0x27b   : > { %2013 = vrot.lane.b32.xlu1 %v6928_v22, %s5642_s29 }
 0x27c   : > { %5232 = vmatmul.mubr.msk.bf16.vlgmr.msra.gmra.mrb[0].mxu1 %vm2167_vm11, %v2133_v60  ;;  %v849_v3 = vpop.permute.xlu0 %848 }
 0x27d   : > { %v847_v2 = vpop.permute.xlu1 %846  ;;  %923 = vst.msk [vmem:[#allocation4 + $0xb0] sm:$0xff] %vm900_vm4, %v849_v3 }
 0x27e   : > { %922 = vst.msk [vmem:[#allocation4 + $0xa8] sm:$0xff] %vm900_vm4, %v847_v2  ;;  %667 = vrot.lane.b32.xlu0 %v6870_v49, %s5635_s20 }
 0x27f   : > { %2017 = vrot.lane.b32.xlu1 %v6975_v1, %s5642_s29 }
 0x280   : > { %v1038_v5 = vpop.permute.xlu0 %1037 }
 0x281   : > { %v851_v4 = vpop.permute.xlu1 %850  ;;  %1114 = vst.msk [vmem:[#allocation4 + $0xa0] sm:$0xff] %vm1093_vm5, %v1038_v5 }
 0x282   : > { %924 = vst.msk [vmem:[#allocation4 + $0xb8] sm:$0xff] %vm900_vm4, %v851_v4  ;;  %671 = vrot.lane.b32.xlu0 %v6949_v54, %s5635_s20 }
 0x283   : > { %669 = vrot.lane.b32.xlu1 %v6880_v19, %s5635_s20 }
 0x284   : > { %v1042_v7 = vpop.permute.xlu0 %1041 }
 0x285   : > { %v1040_v6 = vpop.permute.xlu1 %1039  ;;  %1116 = vst.msk [vmem:[#allocation4 + $0xb0] sm:$0xff] %vm1093_vm5, %v1042_v7 }
 0x286   : > { %1115 = vst.msk [vmem:[#allocation4 + $0xa8] sm:$0xff] %vm1093_vm5, %v1040_v6  ;;  %860 = vrot.lane.b32.xlu0 %v6920_v20, %s5636_s21  ;;  %v1543_v6 = vld [vmem:[#allocation2 + $0x198] sm:$0xff] }
 0x287   : > { %673 = vrot.lane.b32.xlu1 %v6957_v34, %s5635_s20 }
 0x288   : > { %v1231_v9 = vpop.permute.xlu0 %1230 }
 0x289   : > { %v1044_v8 = vpop.permute.xlu1 %1043  ;;  %1307 = vst.msk [vmem:[#allocation4 + $0xa0] sm:$0xff] %vm1286_vm6, %v1231_v9 }
 0x28a   : > { %1117 = vst.msk [vmem:[#allocation4 + $0xb8] sm:$0xff] %vm1093_vm5, %v1044_v8  ;;  %864 = vrot.lane.b32.xlu0 %v6966_v57, %s5636_s21  ;;  %v1544_v8 = vld [vmem:[#allocation2 + $0x1a0] sm:$0xff] }
 0x28b   : > { %862 = vrot.lane.b32.xlu1 %v6928_v22, %s5636_s21  ;;  %v7031_v22 = vld [vmem:[#allocation2 + $0x181] sm:$0xff] }
 0x28c   : > { %v1235_v11 = vpop.permute.xlu0 %1234 }
 0x28d   : > { %v1233_v10 = vpop.permute.xlu1 %1232  ;;  %1309 = vst.msk [vmem:[#allocation4 + $0xb0] sm:$0xff] %vm1286_vm6, %v1235_v11 }
 0x28e   : > { %1308 = vst.msk [vmem:[#allocation4 + $0xa8] sm:$0xff] %vm1286_vm6, %v1233_v10  ;;  %1053 = vrot.lane.b32.xlu0 %v6656_v38, %s5637_s22 }
 0x28f   : > { %866 = vrot.lane.b32.xlu1 %v6975_v1, %s5636_s21  ;;  %v5221_v12 = vpop.f32.mrb[4].mxu0 }
 0x290   : > { %v2279_v13 = vadd.f32 %v5221_v12, %v6842_v63  ;;  %v2270_v44 = vpop.f32.mrb[5].mxu0  ;;  %v1424_v17 = vpop.permute.xlu0 %1423  ;;  %v1736_v12 = vld [vmem:[#allocation2 + $0x199] sm:$0xff] }
 0x291   : > { %v2271_v14 = vadd.f32 %v6842_v63, %v2270_v44  ;;  %v1237_v47 = vpop.permute.xlu1 %1236  ;;  %v5222_v15 = vpop.f32.mrb[6].mxu0  ;;  %1500 = vst.msk [vmem:[#allocation4 + $0xa0] sm:$0xff] %vm1479_vm7, %v1424_v17 }
 0x292   : > { %v2387_v49 = vmax.f32 %v2279_v13, 0.0  ;;  %1310 = vst.msk [vmem:[#allocation4 + $0xb8] sm:$0xff] %vm1286_vm6, %v1237_v47  ;;  %v2282_v16 = vadd.f32 %v5222_v15, %v6842_v63  ;;  %v2273_v19 = vpop.f32.mrb[7].mxu0  ;;  %1057 = vrot.lane.b32.xlu0 %v7009_v46, %s5637_s22  ;;  %v1737_v47 = vld [vmem:[#allocation2 + $0x1a1] sm:$0xff]  ;;  %v5415_v15 = vld [vmem:[#allocation10] sm:$0xff]  }
 0x293   : > { %v2385_v41 = vmax.f32 %v2271_v14, 0.0  ;;  %v2274_v25 = vadd.f32 %v6842_v63, %v2273_v19  ;;  %1055 = vrot.lane.b32.xlu1 %v6663_v40, %s5637_s22  ;;  %v5414_v14 = vld [vmem:[#allocation10 + $0x40] sm:$0xff]  }
 0x294   : > { %2476 = vst.msk [vmem:[#allocation3 + $0x61] sm:$0xff] %vm2413_vm12, %v2387_v49  ;;  %v2388_v38 = vmax.f32 %v2282_v16, 0.0  ;;  %v1428_v32 = vpop.permute.xlu0 %1427  ;;  %5061 = vmatprep.subr.bf16.mxu1 %v5414_v14  ;;  %v2502_v19 = vld [vmem:[#allocation3] sm:$0xff] }
 0x295   : > { %2474 = vst.msk [vmem:[#allocation3 + $0x49] sm:$0xff] %vm2413_vm12, %v2385_v41  ;;  %v2386_v31 = vmax.f32 %v2274_v25, 0.0  ;;  %v1426_v20 = vpop.permute.xlu1 %1425  ;;  %5062 = vmatpush3.bf16.msra.mxu1 %v5415_v15  ;;  %2534 = vst.msk [vmem:[#allocation5] sm:$0xff] %vm2413_vm12, %v2502_v19  ;;  %v5416_v25 = vld [vmem:[#allocation10 + $0x48] sm:$0xff]   ;;  %v5428_v15 = vld [vmem:[#allocation10 + $0x78] sm:$0xff]  }
 0x296   : > { %2477 = vst.msk [vmem:[#allocation3 + $0x69] sm:$0xff] %vm2413_vm12, %v2388_v38  ;;  %1246 = vrot.lane.b32.xlu0 %v6949_v54, %s5638_s12  ;;  %v5417_v38 = vld [vmem:[#allocation10 + $0x8] sm:$0xff]   ;;  %5063 = vmatprep.subr.bf16.mxu1 %v5416_v25 }
 0x297   : > { %1501 = vst.msk [vmem:[#allocation4 + $0xa8] sm:$0xff] %vm1479_vm7, %v1426_v20  ;;  %1502 = vst.msk [vmem:[#allocation4 + $0xb0] sm:$0xff] %vm1479_vm7, %v1428_v32  ;;  %1059 = vrot.lane.b32.xlu1 %v7020_v30, %s5637_s22  ;;  %v1929_v20 = vld [vmem:[#allocation2 + $0x19a] sm:$0xff] }
 0x298   : > { %2475 = vst.msk [vmem:[#allocation3 + $0x51] sm:$0xff] %vm2413_vm12, %v2386_v31  ;;  %v1618_v33 = vpop.permute.xlu0 %1617 }
 0x299   : > { %v1430_v40 = vpop.permute.xlu1 %1429  ;;  %1694 = vst.msk [vmem:[#allocation4 + $0xa0] sm:$0xff] %vm1673_vm8, %v1618_v33  ;;  %5064 = vmatpush3.bf16.msra.mxu1 %v5417_v38  ;;  %v1930_v33 = vld [vmem:[#allocation2 + $0x1a2] sm:$0xff] }
 0x29a   : > { %1503 = vst.msk [vmem:[#allocation4 + $0xb8] sm:$0xff] %vm1479_vm7, %v1430_v40  ;;  %1250 = vrot.lane.b32.xlu0 %v7031_v22, %s5638_s12 }
 0x29b   : > { %1248 = vrot.lane.b32.xlu1 %v6957_v34, %s5638_s12  ;;  %v7037_v36 = vld [vmem:[#allocation3 + $0x61] sm:$0xff] }
 0x29c   : > { %v2510_v37 = vld [vmem:[#allocation3 + $0x60] sm:$0xff]  ;;  %v7043_v23 = vld [vmem:[#allocation3 + $0x49] sm:$0xff]  ;;  %3183 = vst.msk [vmem:[#allocation5 + $0x98] sm:$0xff] %vm2413_vm12, %v7037_v36  ;;  %v1622_v18 = vpop.permute.xlu0 %1621 }
 0x29d   : > { %v2508_v26 = vld [vmem:[#allocation3 + $0x48] sm:$0xff]  ;;  %2542 = vst.msk [vmem:[#allocation5 + $0xc0] sm:$0xff] %vm2413_vm12, %v2510_v37  ;;  %v1620_v43 = vpop.permute.xlu1 %1619  ;;  %3181 = vst.msk [vmem:[#allocation5 + $0x68] sm:$0xff] %vm2413_vm12, %v7043_v23  ;;  %v5418_v37 = vld [vmem:[#allocation10 + $0x50] sm:$0xff]  }
 0x29e   : > { %v7048_v45 = vld [vmem:[#allocation3 + $0x62] sm:$0xff]  ;;  %v7050_v53 = vld [vmem:[#allocation3 + $0x6a] sm:$0xff]  ;;  %2540 = vst.msk [vmem:[#allocation5 + $0x90] sm:$0xff] %vm2413_vm12, %v2508_v26  ;;  %1439 = vrot.lane.b32.xlu0 %v6966_v57, %s5639_s23  ;;  %5065 = vmatprep.subr.bf16.mxu1 %v5418_v37 }
 0x29f   : > { %v7055_v61 = vld [vmem:[#allocation3 + $0x4a] sm:$0xff]  ;;  %v7057_v54 = vld [vmem:[#allocation3 + $0x52] sm:$0xff]  ;;  %1695 = vst.msk [vmem:[#allocation4 + $0xa8] sm:$0xff] %vm1673_vm8, %v1620_v43  ;;  %1696 = vst.msk [vmem:[#allocation4 + $0xb0] sm:$0xff] %vm1673_vm8, %v1622_v18  ;;  %1252 = vrot.lane.b32.xlu1 %v7041_v39, %s5638_s12 }
 0x2a0   : > { %3822 = vst.msk [vmem:[#allocation5 + $0x70] sm:$0xff] %vm2413_vm12, %v7048_v45  ;;  %3823 = vst.msk [vmem:[#allocation5 + $0x88] sm:$0xff] %vm2413_vm12, %v7050_v53  ;;  %v7071_v48 = vld [vmem:[#allocation3 + $0x51] sm:$0xff]  ;;  %v7073_v34 = vld [vmem:[#allocation3 + $0x69] sm:$0xff]  ;;  %v1811_v55 = vpop.permute.xlu0 %1810 }
 0x2a1   : > { %3820 = vst.msk [vmem:[#allocation5 + $0x40] sm:$0xff] %vm2413_vm12, %v7055_v61  ;;  %3821 = vst.msk [vmem:[#allocation5 + $0x58] sm:$0xff] %vm2413_vm12, %v7057_v54  ;;  %v2509_v35 = vld [vmem:[#allocation3 + $0x50] sm:$0xff]  ;;  %v2511_v50 = vld [vmem:[#allocation3 + $0x68] sm:$0xff]  ;;  %v1624_v51 = vpop.permute.xlu1 %1623 }
 0x2a2   : > { %3182 = vst.msk [vmem:[#allocation5 + $0x80] sm:$0xff] %vm2413_vm12, %v7071_v48  ;;  %3184 = vst.msk [vmem:[#allocation5 + $0xb0] sm:$0xff] %vm2413_vm12, %v7073_v34  ;;  %1443 = vrot.lane.b32.xlu0 %v1349_v52, %s5639_s23  ;;  %v7129_v18 = vld [vmem:[#allocation3 + $0x1a] sm:$0xff] }
 0x2a3   : > { %2541 = vst.msk [vmem:[#allocation5 + $0xa8] sm:$0xff] %vm2413_vm12, %v2509_v35  ;;  %2543 = vst.msk [vmem:[#allocation5 + $0xd8] sm:$0xff] %vm2413_vm12, %v2511_v50  ;;  %1441 = vrot.lane.b32.xlu1 %v6975_v1, %s5639_s23  ;;  %v5420_v35 = vld [vmem:[#allocation10 + $0x58] sm:$0xff]  }
 0x2a4   : > { %1697 = vst.msk [vmem:[#allocation4 + $0xb8] sm:$0xff] %vm1673_vm8, %v1624_v51  ;;  %v1815_v60 = vpop.permute.xlu0 %1814  ;;  %v5421_v50 = vld [vmem:[#allocation10 + $0x18] sm:$0xff]  }
 0x2a5   : > { %1887 = vst.msk [vmem:[#allocation4 + $0xa0] sm:$0xff] %vm1866_vm9, %v1811_v55  ;;  %v1813_v57 = vpop.permute.xlu1 %1812  ;;  %1889 = vst.msk [vmem:[#allocation4 + $0xb0] sm:$0xff] %vm1866_vm9, %v1815_v60 }
 0x2a6   : > { %1888 = vst.msk [vmem:[#allocation4 + $0xa8] sm:$0xff] %vm1866_vm9, %v1813_v57  ;;  %1633 = vrot.lane.b32.xlu0 %v7009_v46, %s5640_s25  ;;  %v5422_v57 = vld [vmem:[#allocation10 + $0x60] sm:$0xff]  }
 0x2a7   : > { %v3864_v58 = vld [vmem:[#allocation5 + $0x70] sm:$0xff]  ;;  %v3867_v59 = vld [vmem:[#allocation5 + $0x88] sm:$0xff]  ;;  %1445 = vrot.lane.b32.xlu1 %v7088_v56, %s5639_s23 }
 0x2a8   : > { %v3858_v2 = vld [vmem:[#allocation5 + $0x40] sm:$0xff]  ;;  %v3861_v3 = vld [vmem:[#allocation5 + $0x58] sm:$0xff]  ;;  %v3954_v1 = vpack.c.bf16 %v3867_v59, %v3864_v58  ;;  %v2004_v7 = vpop.permute.xlu0 %2003 }
 0x2a9   : > { %v3951_v4 = vpack.c.bf16 %v3861_v3, %v3858_v2  ;;  %v1817_v5 = vpop.permute.xlu1 %1816  ;;  %2080 = vst.msk [vmem:[#allocation4 + $0xa0] sm:$0xff] %vm2059_vm10, %v2004_v7  ;;  %v2567_v58 = vld [vmem:[#allocation3 + $0x9] sm:$0xff] }
 0x2aa   : > { %1890 = vst.msk [vmem:[#allocation4 + $0xb8] sm:$0xff] %vm1866_vm9, %v1817_v5  ;;  %1637 = vrot.lane.b32.xlu0 %v1543_v6, %s5640_s25  ;;  %v5423_v59 = vld [vmem:[#allocation10 + $0x20] sm:$0xff]   ;;  %v7143_v3 = vld [vmem:[#allocation3 + $0x30] sm:$0xff] }
 0x2ab   : > { %5252 = vmatmul.mubr.msk.bf16.vlgmr.msra.gmra.mrb[16].mxu0 %vm2413_vm12, %v3951_v4  ;;  %1635 = vrot.lane.b32.xlu1 %v7020_v30, %s5640_s25  ;;  %v2503_v30 = vld [vmem:[#allocation3 + $0x8] sm:$0xff] }
 0x2ac   : > { %5255 = vmatprep.mubr.msk.bf16.mxu0 %vm2413_vm12, %v3954_v1  ;;  %v2008_v10 = vpop.permute.xlu0 %2007  ;;  %2535 = vst.msk [vmem:[#allocation5 + $0x18] sm:$0xff] %vm2413_vm12, %v2503_v30  ;;  %v5424_v4 = vld [vmem:[#allocation10 + $0x68] sm:$0xff]   ;;  %v2759_v6 = vld [vmem:[#allocation3 + $0x2] sm:$0xff] }
 0x2ad   : > { %v2006_v9 = vpop.permute.xlu1 %2005  ;;  %2082 = vst.msk [vmem:[#allocation4 + $0xb0] sm:$0xff] %vm2059_vm10, %v2008_v10  ;;  %v5425_v1 = vld [vmem:[#allocation10 + $0x28] sm:$0xff]  }
 0x2ae   : > { %2081 = vst.msk [vmem:[#allocation4 + $0xa8] sm:$0xff] %vm2059_vm10, %v2006_v9  ;;  %1826 = vrot.lane.b32.xlu0 %v7031_v22, %s5641_s9  ;;  %v5426_v9 = vld [vmem:[#allocation10 + $0x70] sm:$0xff]   ;;  %v2760_v10 = vld [vmem:[#allocation3 + $0xa] sm:$0xff] }
 0x2af   : > { %1639 = vrot.lane.b32.xlu1 %v1544_v8, %s5640_s25  ;;  %v7148_v8 = vld [vmem:[#allocation3 + $0x38] sm:$0xff] }
 0x2b0   : > { %v660_v13 = vpop.permute.xlu0 %659  ;;  %v2112_v44 = vld [vmem:[#allocation4 + $0xa0] sm:$0xff] }
 0x2b1   : > { %v2010_v11 = vpop.permute.xlu1 %2009  ;;  %732 = vst.msk [vmem:[#allocation4 + $0xc0] sm:$0xff] %vm707_vm3, %v660_v13 }
 0x2b2   : > { %2083 = vst.msk [vmem:[#allocation4 + $0xb8] sm:$0xff] %vm2059_vm10, %v2010_v11  ;;  %1830 = vrot.lane.b32.xlu0 %v1736_v12, %s5641_s9  ;;  %v5427_v11 = vld [vmem:[#allocation10 + $0x30] sm:$0xff]  }
 0x2b3   : > { %1828 = vrot.lane.b32.xlu1 %v7041_v39, %s5641_s9  ;;  %v5419_v39 = vld [vmem:[#allocation10 + $0x10] sm:$0xff]  }
 0x2b4   : > { %v664_v16 = vpop.permute.xlu0 %663  ;;  %v2114_v41 = vld [vmem:[#allocation4 + $0xb0] sm:$0xff]  ;;  %5066 = vmatpush3.bf16.msra.mxu1 %v5419_v39 }
 0x2b5   : > { %v662_v46 = vpop.permute.xlu1 %661  ;;  %v2113_v49 = vld [vmem:[#allocation4 + $0xa8] sm:$0xff]  ;;  %734 = vst.msk [vmem:[#allocation4 + $0xd0] sm:$0xff] %vm707_vm3, %v664_v16  ;;  %5067 = vmatprep.subr.bf16.mxu1 %v5420_v35 }
 0x2b6   : > { %733 = vst.msk [vmem:[#allocation4 + $0xc8] sm:$0xff] %vm707_vm3, %v662_v46  ;;  %v2134_v17 = vpack.c.bf16 %v2113_v49, %v2112_v44  ;;  %2019 = vrot.lane.b32.xlu0 %v1349_v52, %s5642_s29  ;;  %v2566_v52 = vld [vmem:[#allocation3 + $0x1] sm:$0xff] }
 0x2b7   : > { %1832 = vrot.lane.b32.xlu1 %v1737_v47, %s5641_s9 }
 0x2b8   : > { %5235 = vmatprep.mubr.msk.bf16.mxu1 %vm2167_vm11, %v2134_v17  ;;  %v853_v40 = vpop.permute.xlu0 %852  ;;  %5068 = vmatpush3.bf16.msra.mxu1 %v5421_v50  ;;  %v5429_v17 = vld [vmem:[#allocation10 + $0x38] sm:$0xff]   ;;  %v7200_v50 = vld [vmem:[#allocation3 + $0x48] sm:$0xff] }
 0x2b9   : > { %v666_v31 = vpop.permute.xlu1 %665  ;;  %v2115_v32 = vld [vmem:[#allocation4 + $0xb8] sm:$0xff]  ;;  %925 = vst.msk [vmem:[#allocation4 + $0xc0] sm:$0xff] %vm900_vm4, %v853_v40  ;;  %5069 = vmatprep.subr.bf16.mxu1 %v5422_v57 }
 0x2ba   : > { %735 = vst.msk [vmem:[#allocation4 + $0xd8] sm:$0xff] %vm707_vm3, %v666_v31  ;;  %v2135_v22 = vpack.c.bf16 %v2115_v32, %v2114_v41  ;;  %2023 = vrot.lane.b32.xlu0 %v1929_v20, %s5642_s29 }
 0x2bb   : > { %2021 = vrot.lane.b32.xlu1 %v7088_v56, %s5642_s29  ;;  %v7134_v56 = vld [vmem:[#allocation3 + $0x22] sm:$0xff] }
 0x2bc   : > { %5236 = vmatmul.mubr.msk.bf16.gmra.mrb[4].mxu1 %vm2167_vm11, %v2135_v22  ;;  %v857_v43 = vpop.permute.xlu0 %856 }
 0x2bd   : > { %v855_v26 = vpop.permute.xlu1 %854  ;;  %927 = vst.msk [vmem:[#allocation4 + $0xd0] sm:$0xff] %vm900_vm4, %v857_v43  ;;  %5070 = vmatpush3.bf16.msra.mxu1 %v5423_v59 }
 0x2be   : > { %926 = vst.msk [vmem:[#allocation4 + $0xc8] sm:$0xff] %vm900_vm4, %v855_v26  ;;  %3273 = vrot.lane.b32.xlu0 %v7129_v18, %s5642_s29  ;;  %5071 = vmatprep.subr.bf16.mxu1 %v5424_v4 }
 0x2bf   : > { %2025 = vrot.lane.b32.xlu1 %v1930_v33, %s5642_s29 }
 0x2c0   : > { %v1046_v55 = vpop.permute.xlu0 %1045 }
 0x2c1   : > { %v859_v51 = vpop.permute.xlu1 %858  ;;  %1118 = vst.msk [vmem:[#allocation4 + $0xc0] sm:$0xff] %vm1093_vm5, %v1046_v55  ;;  %5072 = vmatpush3.bf16.msra.mxu1 %v5425_v1 }
 0x2c2   : > { %928 = vst.msk [vmem:[#allocation4 + $0xd8] sm:$0xff] %vm900_vm4, %v859_v51  ;;  %2630 = vrot.lane.b32.xlu0 %v2566_v52, %s5642_s29  ;;  %5073 = vmatprep.subr.bf16.mxu1 %v5426_v9 }
 0x2c3   : > { %3275 = vrot.lane.b32.xlu1 %v7134_v56, %s5642_s29 }
 0x2c4   : > { %v1050_v2 = vpop.permute.xlu0 %1049 }
 0x2c5   : > { %v1048_v60 = vpop.permute.xlu1 %1047  ;;  %1120 = vst.msk [vmem:[#allocation4 + $0xd0] sm:$0xff] %vm1093_vm5, %v1050_v2  ;;  %5074 = vmatpush3.bf16.msra.mxu1 %v5427_v11  ;;  %v7230_v2 = vld [vmem:[#allocation3 + $0x50] sm:$0xff] }
 0x2c6   : > { %1119 = vst.msk [vmem:[#allocation4 + $0xc8] sm:$0xff] %vm1093_vm5, %v1048_v60  ;;  %3466 = vrot.lane.b32.xlu0 %v7143_v3, %s5643_s8  ;;  %5075 = vmatprep.subr.bf16.mxu1 %v5428_v15 }
 0x2c7   : > { %2632 = vrot.lane.b32.xlu1 %v2567_v58, %s5642_s29 }
 0x2c8   : > { %v1239_v7 = vpop.permute.xlu0 %1238 }
 0x2c9   : > { %v1052_v5 = vpop.permute.xlu1 %1051  ;;  %1311 = vst.msk [vmem:[#allocation4 + $0xc0] sm:$0xff] %vm1286_vm6, %v1239_v7  ;;  %5076 = vmatpush3.bf16.msra.mxu1 %v5429_v17 }
 0x2ca   : > { %1121 = vst.msk [vmem:[#allocation4 + $0xd8] sm:$0xff] %vm1093_vm5, %v1052_v5  ;;  %2823 = vrot.lane.b32.xlu0 %v2759_v6, %s5643_s8 }
 0x2cb   : > { %3468 = vrot.lane.b32.xlu1 %v7148_v8, %s5643_s8 }
 0x2cc   : > { %v1243_v13 = vpop.permute.xlu0 %1242 }
 0x2cd   : > { %v1241_v12 = vpop.permute.xlu1 %1240  ;;  %1313 = vst.msk [vmem:[#allocation4 + $0xd0] sm:$0xff] %vm1286_vm6, %v1243_v13 }
 0x2ce   : > { %1312 = vst.msk [vmem:[#allocation4 + $0xc8] sm:$0xff] %vm1286_vm6, %v1241_v12  ;;  %3658 = vrot.lane.b32.xlu0 %v6876_v62, %s5644_s30 }
 0x2cf   : > { %v5225_v44 = vpop.f32.mrb[8].mxu0  ;;  %2825 = vrot.lane.b32.xlu1 %v2760_v10, %s5643_s8 }
 0x2d0   : > { %v2295_v14 = vadd.f32 %v5225_v44, %v6842_v63  ;;  %v2286_v47 = vpop.f32.mrb[9].mxu0  ;;  %v1432_v25 = vpop.permute.xlu0 %1431 }
 0x2d1   : > { %v2287_v46 = vadd.f32 %v6842_v63, %v2286_v47  ;;  %v1245_v49 = vpop.permute.xlu1 %1244  ;;  %v5226_v16 = vpop.f32.mrb[10].mxu0  ;;  %1504 = vst.msk [vmem:[#allocation4 + $0xc0] sm:$0xff] %vm1479_vm7, %v1432_v25 }
 0x2d2   : > { %v2391_v19 = vmax.f32 %v2295_v14, 0.0  ;;  %1314 = vst.msk [vmem:[#allocation4 + $0xd8] sm:$0xff] %vm1286_vm6, %v1245_v49  ;;  %v2298_v41 = vadd.f32 %v5226_v16, %v6842_v63  ;;  %v2289_v38 = vpop.f32.mrb[11].mxu0  ;;  %3016 = vrot.lane.b32.xlu0 %v6882_v21, %s5644_s30  ;;  %v7267_v49 = vld [vmem:[#allocation3 + $0x60] sm:$0xff] }
 0x2d3   : > { %v2389_v30 = vmax.f32 %v2287_v46, 0.0  ;;  %v2290_v31 = vadd.f32 %v6842_v63, %v2289_v38  ;;  %3660 = vrot.lane.b32.xlu1 %v6902_v27, %s5644_s30 }
 0x2d4   : > { %2480 = vst.msk [vmem:[#allocation3 + $0x91] sm:$0xff] %vm2413_vm12, %v2391_v19  ;;  %v2392_v20 = vmax.f32 %v2298_v41, 0.0  ;;  %v1436_v22 = vpop.permute.xlu0 %1435  ;;  %v7273_v41 = vld [vmem:[#allocation3 + $0x68] sm:$0xff] }
 0x2d5   : > { %2478 = vst.msk [vmem:[#allocation3 + $0x79] sm:$0xff] %vm2413_vm12, %v2389_v30  ;;  %v2390_v32 = vmax.f32 %v2290_v31, 0.0  ;;  %v1434_v40 = vpop.permute.xlu1 %1433 }
 0x2d6   : > { %2481 = vst.msk [vmem:[#allocation3 + $0x99] sm:$0xff] %vm2413_vm12, %v2392_v20  ;;  %3277 = vrot.lane.b32.xlu0 %v6889_v42, %s5642_s29 }
 0x2d7   : > { %1505 = vst.msk [vmem:[#allocation4 + $0xc8] sm:$0xff] %vm1479_vm7, %v1434_v40  ;;  %1506 = vst.msk [vmem:[#allocation4 + $0xd0] sm:$0xff] %vm1479_vm7, %v1436_v22  ;;  %3018 = vrot.lane.b32.xlu1 %v6907_v28, %s5644_s30 }
 0x2d8   : > { %2479 = vst.msk [vmem:[#allocation3 + $0x81] sm:$0xff] %vm2413_vm12, %v2390_v32  ;;  %v1626_v21 = vpop.permute.xlu0 %1625 }
 0x2d9   : > { %v1438_v63 = vpop.permute.xlu1 %1437  ;;  %1698 = vst.msk [vmem:[#allocation4 + $0xc0] sm:$0xff] %vm1673_vm8, %v1626_v21 }
 0x2da   : > { %1507 = vst.msk [vmem:[#allocation4 + $0xd8] sm:$0xff] %vm1479_vm7, %v1438_v63  ;;  %2634 = vrot.lane.b32.xlu0 %v6884_v0, %s5642_s29 }
 0x2db   : > { %3279 = vrot.lane.b32.xlu1 %v6891_v24, %s5642_s29  ;;  %v7183_v33 = vld [vmem:[#allocation3 + $0x91] sm:$0xff] }
 0x2dc   : > { %v2514_v37 = vld [vmem:[#allocation3 + $0x90] sm:$0xff]  ;;  %v7187_v39 = vld [vmem:[#allocation3 + $0x79] sm:$0xff]  ;;  %3187 = vst.msk [vmem:[#allocation5 + $0xf8] sm:$0xff] %vm2413_vm12, %v7183_v33  ;;  %v1630_v0 = vpop.permute.xlu0 %1629 }
 0x2dd   : > { %v2512_v28 = vld [vmem:[#allocation3 + $0x78] sm:$0xff]  ;;  %2546 = vst.msk [vmem:[#allocation5 + $0x120] sm:$0xff] %vm2413_vm12, %v2514_v37  ;;  %v1628_v26 = vpop.permute.xlu1 %1627  ;;  %3185 = vst.msk [vmem:[#allocation5 + $0xc8] sm:$0xff] %vm2413_vm12, %v7187_v39  ;;  %v7311_v37 = vld [vmem:[#allocation8] ss:$0 sm:$0xff] }
 0x2de   : > { %v7192_v43 = vld [vmem:[#allocation3 + $0x92] sm:$0xff]  ;;  %v7194_v35 = vld [vmem:[#allocation3 + $0x9a] sm:$0xff]  ;;  %2544 = vst.msk [vmem:[#allocation5 + $0xf0] sm:$0xff] %vm2413_vm12, %v2512_v28  ;;  %3470 = vrot.lane.b32.xlu0 %v7200_v50, %s5643_s8 }
 0x2df   : > { %1699 = vst.msk [vmem:[#allocation4 + $0xc8] sm:$0xff] %vm1673_vm8, %v1628_v26  ;;  %v7202_v51 = vld [vmem:[#allocation3 + $0x7a] sm:$0xff]  ;;  %v7204_v52 = vld [vmem:[#allocation3 + $0x82] sm:$0xff]  ;;  %1700 = vst.msk [vmem:[#allocation4 + $0xd0] sm:$0xff] %vm1673_vm8, %v1630_v0  ;;  %2636 = vrot.lane.b32.xlu1 %v6909_v29, %s5642_s29 }
 0x2e0   : > { %3826 = vst.msk [vmem:[#allocation5 + $0xd0] sm:$0xff] %vm2413_vm12, %v7192_v43  ;;  %3827 = vst.msk [vmem:[#allocation5 + $0xe8] sm:$0xff] %vm2413_vm12, %v7194_v35  ;;  %v7217_v55 = vld [vmem:[#allocation3 + $0x81] sm:$0xff]  ;;  %v7219_v57 = vld [vmem:[#allocation3 + $0x99] sm:$0xff]  ;;  %v1819_v60 = vpop.permute.xlu0 %1818 }
 0x2e1   : > { %3824 = vst.msk [vmem:[#allocation5 + $0xa0] sm:$0xff] %vm2413_vm12, %v7202_v51  ;;  %3825 = vst.msk [vmem:[#allocation5 + $0xb8] sm:$0xff] %vm2413_vm12, %v7204_v52  ;;  %v2513_v58 = vld [vmem:[#allocation3 + $0x80] sm:$0xff]  ;;  %v2515_v29 = vld [vmem:[#allocation3 + $0x98] sm:$0xff]  ;;  %v1632_v59 = vpop.permute.xlu1 %1631 }
 0x2e2   : > { %3186 = vst.msk [vmem:[#allocation5 + $0xe0] sm:$0xff] %vm2413_vm12, %v7217_v55  ;;  %3188 = vst.msk [vmem:[#allocation5 + $0x110] sm:$0xff] %vm2413_vm12, %v7219_v57  ;;  %2827 = vrot.lane.b32.xlu0 %v7129_v18, %s5643_s8  ;;  %v7309_v21 = vld [vmem:[#allocation3 + $0x78] sm:$0xff] }
 0x2e3   : > { %2545 = vst.msk [vmem:[#allocation5 + $0x108] sm:$0xff] %vm2413_vm12, %v2513_v58  ;;  %2547 = vst.msk [vmem:[#allocation5 + $0x138] sm:$0xff] %vm2413_vm12, %v2515_v29  ;;  %3472 = vrot.lane.b32.xlu1 %v7230_v2, %s5643_s8 }
 0x2e4   : > { %1701 = vst.msk [vmem:[#allocation4 + $0xd8] sm:$0xff] %vm1673_vm8, %v1632_v59  ;;  %v1823_v6 = vpop.permute.xlu0 %1822 }
 0x2e5   : > { %1891 = vst.msk [vmem:[#allocation4 + $0xc0] sm:$0xff] %vm1866_vm9, %v1819_v60  ;;  %v1821_v4 = vpop.permute.xlu1 %1820  ;;  %1893 = vst.msk [vmem:[#allocation4 + $0xd0] sm:$0xff] %vm1866_vm9, %v1823_v6  ;;  %v7319_v60 = vld [vmem:[#allocation3 + $0x80] sm:$0xff] }
 0x2e6   : > { %1892 = vst.msk [vmem:[#allocation4 + $0xc8] sm:$0xff] %vm1866_vm9, %v1821_v4  ;;  %3662 = vrot.lane.b32.xlu0 %v7043_v23, %s5644_s30 }
 0x2e7   : > { %v3876_v1 = vld [vmem:[#allocation5 + $0xd0] sm:$0xff]  ;;  %v3879_v5 = vld [vmem:[#allocation5 + $0xe8] sm:$0xff]  ;;  %2829 = vrot.lane.b32.xlu1 %v7134_v56, %s5643_s8 }
 0x2e8   : > { %v3870_v7 = vld [vmem:[#allocation5 + $0xa0] sm:$0xff]  ;;  %v3873_v9 = vld [vmem:[#allocation5 + $0xb8] sm:$0xff]  ;;  %v3960_v11 = vpack.c.bf16 %v3879_v5, %v3876_v1  ;;  %v2012_v18 = vpop.permute.xlu0 %2011 }
 0x2e9   : > { %v3957_v10 = vpack.c.bf16 %v3873_v9, %v3870_v7  ;;  %v1825_v12 = vpop.permute.xlu1 %1824  ;;  %2084 = vst.msk [vmem:[#allocation4 + $0xc0] sm:$0xff] %vm2059_vm10, %v2012_v18 }
 0x2ea   : > { %1894 = vst.msk [vmem:[#allocation4 + $0xd8] sm:$0xff] %vm1866_vm9, %v1825_v12  ;;  %3020 = vrot.lane.b32.xlu0 %v7143_v3, %s5644_s30 }
 0x2eb   : > { %5256 = vmatmul.mubr.msk.bf16.gmra.mrb[20].mxu0 %vm2413_vm12, %v3957_v10  ;;  %3664 = vrot.lane.b32.xlu1 %v7071_v48, %s5644_s30 }
 0x2ec   : > { %5259 = vmatprep.mubr.msk.bf16.mxu0 %vm2413_vm12, %v3960_v11  ;;  %v2016_v13 = vpop.permute.xlu0 %2015 }
 0x2ed   : > { %v2014_v56 = vpop.permute.xlu1 %2013  ;;  %2086 = vst.msk [vmem:[#allocation4 + $0xd0] sm:$0xff] %vm2059_vm10, %v2016_v13 }
 0x2ee   : > { %2085 = vst.msk [vmem:[#allocation4 + $0xc8] sm:$0xff] %vm2059_vm10, %v2014_v56  ;;  %3281 = vrot.lane.b32.xlu0 %v7055_v61, %s5642_s29 }
 0x2ef   : > { %3022 = vrot.lane.b32.xlu1 %v7148_v8, %s5644_s30 }
 0x2f0   : > { %v668_v14 = vpop.permute.xlu0 %667  ;;  %v2116_v3 = vld [vmem:[#allocation4 + $0xc0] sm:$0xff] }
 0x2f1   : > { %v2018_v44 = vpop.permute.xlu1 %2017  ;;  %736 = vst.msk [vmem:[#allocation4 + $0xe0] sm:$0xff] %vm707_vm3, %v668_v14 }
 0x2f2   : > { %2087 = vst.msk [vmem:[#allocation4 + $0xd8] sm:$0xff] %vm2059_vm10, %v2018_v44  ;;  %2638 = vrot.lane.b32.xlu0 %v6876_v62, %s5642_s29 }
 0x2f3   : > { %3283 = vrot.lane.b32.xlu1 %v7057_v54, %s5642_s29 }
 0x2f4   : > { %v672_v8 = vpop.permute.xlu0 %671  ;;  %v2118_v16 = vld [vmem:[#allocation4 + $0xd0] sm:$0xff] }
 0x2f5   : > { %v670_v47 = vpop.permute.xlu1 %669  ;;  %v2117_v15 = vld [vmem:[#allocation4 + $0xc8] sm:$0xff]  ;;  %738 = vst.msk [vmem:[#allocation4 + $0xf0] sm:$0xff] %vm707_vm3, %v672_v8 }
 0x2f6   : > { %737 = vst.msk [vmem:[#allocation4 + $0xe8] sm:$0xff] %vm707_vm3, %v670_v47  ;;  %v2136_v46 = vpack.c.bf16 %v2117_v15, %v2116_v3  ;;  %3474 = vrot.lane.b32.xlu0 %v7267_v49, %s5643_s8 }
 0x2f7   : > { %2640 = vrot.lane.b32.xlu1 %v6902_v27, %s5642_s29 }
 0x2f8   : > { %5239 = vmatprep.mubr.msk.bf16.mxu1 %vm2167_vm11, %v2136_v46  ;;  %v861_v19 = vpop.permute.xlu0 %860 }
 0x2f9   : > { %v674_v62 = vpop.permute.xlu1 %673  ;;  %v2119_v17 = vld [vmem:[#allocation4 + $0xd8] sm:$0xff]  ;;  %929 = vst.msk [vmem:[#allocation4 + $0xe0] sm:$0xff] %vm900_vm4, %v861_v19 }
 0x2fa   : > { %739 = vst.msk [vmem:[#allocation4 + $0xf8] sm:$0xff] %vm707_vm3, %v674_v62  ;;  %v2137_v25 = vpack.c.bf16 %v2119_v17, %v2118_v16  ;;  %2831 = vrot.lane.b32.xlu0 %v6889_v42, %s5643_s8 }
 0x2fb   : > { %3476 = vrot.lane.b32.xlu1 %v7273_v41, %s5643_s8 }
 0x2fc   : > { %5240 = vmatmul.mubr.msk.bf16.gmra.mrb[8].mxu1 %vm2167_vm11, %v2137_v25  ;;  %v865_v38 = vpop.permute.xlu0 %864 }
 0x2fd   : > { %v863_v27 = vpop.permute.xlu1 %862  ;;  %931 = vst.msk [vmem:[#allocation4 + $0xf0] sm:$0xff] %vm900_vm4, %v865_v38  ;;  %v7401_v38 = vld [vmem:[#allocation3 + $0x90] sm:$0xff] }
 0x2fe   : > { %930 = vst.msk [vmem:[#allocation4 + $0xe8] sm:$0xff] %vm900_vm4, %v863_v27  ;;  %3666 = vrot.lane.b32.xlu0 %v7037_v36, %s5644_s30 }
 0x2ff   : > { %2833 = vrot.lane.b32.xlu1 %v6891_v24, %s5643_s8 }
 0x300   : > { %v1054_v31 = vpop.permute.xlu0 %1053 }
 0x301   : > { %v867_v30 = vpop.permute.xlu1 %866  ;;  %1122 = vst.msk [vmem:[#allocation4 + $0xe0] sm:$0xff] %vm1093_vm5, %v1054_v31 }
 0x302   : > { %932 = vst.msk [vmem:[#allocation4 + $0xf8] sm:$0xff] %vm900_vm4, %v867_v30  ;;  %3024 = vrot.lane.b32.xlu0 %v7200_v50, %s5644_s30 }
 0x303   : > { %3668 = vrot.lane.b32.xlu1 %v7073_v34, %s5644_s30 }
 0x304   : > { %v1058_v20 = vpop.permute.xlu0 %1057 }
 0x305   : > { %v1056_v42 = vpop.permute.xlu1 %1055  ;;  %1124 = vst.msk [vmem:[#allocation4 + $0xf0] sm:$0xff] %vm1093_vm5, %v1058_v20  ;;  %v7408_v20 = vld [vmem:[#allocation3 + $0x98] sm:$0xff] }
 0x306   : > { %1123 = vst.msk [vmem:[#allocation4 + $0xe8] sm:$0xff] %vm1093_vm5, %v1056_v42  ;;  %3285 = vrot.lane.b32.xlu0 %v7048_v45, %s5642_s29 }
 0x307   : > { %3026 = vrot.lane.b32.xlu1 %v7230_v2, %s5644_s30 }
 0x308   : > { %v1247_v32 = vpop.permute.xlu0 %1246 }
 0x309   : > { %v1060_v24 = vpop.permute.xlu1 %1059  ;;  %1315 = vst.msk [vmem:[#allocation4 + $0xe0] sm:$0xff] %vm1286_vm6, %v1247_v32 }
 0x30a   : > { %1125 = vst.msk [vmem:[#allocation4 + $0xf8] sm:$0xff] %vm1093_vm5, %v1060_v24  ;;  %2642 = vrot.lane.b32.xlu0 %v7043_v23, %s5642_s29 }
 0x30b   : > { %3287 = vrot.lane.b32.xlu1 %v7050_v53, %s5642_s29 }
 0x30c   : > { %v1251_v22 = vpop.permute.xlu0 %1250 }
 0x30d   : > { %v1249_v40 = vpop.permute.xlu1 %1248  ;;  %1317 = vst.msk [vmem:[#allocation4 + $0xf0] sm:$0xff] %vm1286_vm6, %v1251_v22 }
 0x30e   : > { %1316 = vst.msk [vmem:[#allocation4 + $0xe8] sm:$0xff] %vm1286_vm6, %v1249_v40  ;;  %3478 = vrot.lane.b32.xlu0 %v7309_v21, %s5643_s8 }
 0x30f   : > { %v5229_v63 = vpop.f32.mrb[12].mxu0  ;;  %2644 = vrot.lane.b32.xlu1 %v7071_v48, %s5642_s29 }
 0x310   : > { %v2311_v28 = vadd.f32 %v7311_v37, %v5229_v63  ;;  %v2302_v26 = vpop.f32.mrb[13].mxu0  ;;  %v1440_v48 = vpop.permute.xlu0 %1439 }
 0x311   : > { %v2303_v23 = vadd.f32 %v7311_v37, %v2302_v26  ;;  %v1253_v0 = vpop.permute.xlu1 %1252  ;;  %v5230_v50 = vpop.f32.mrb[14].mxu0  ;;  %1508 = vst.msk [vmem:[#allocation4 + $0xe0] sm:$0xff] %vm1479_vm7, %v1440_v48 }
 0x312   : > { %v2395_v58 = vmax.f32 %v2311_v28, 0.0  ;;  %1318 = vst.msk [vmem:[#allocation4 + $0xf8] sm:$0xff] %vm1286_vm6, %v1253_v0  ;;  %v2314_v29 = vadd.f32 %v7311_v37, %v5230_v50  ;;  %v2305_v59 = vpop.f32.mrb[15].mxu0  ;;  %2835 = vrot.lane.b32.xlu0 %v7055_v61, %s5643_s8 }
 0x313   : > { %v2393_v2 = vmax.f32 %v2303_v23, 0.0  ;;  %v2306_v4 = vadd.f32 %v7311_v37, %v2305_v59  ;;  %3480 = vrot.lane.b32.xlu1 %v7319_v60, %s5643_s8 }
 0x314   : > { %2484 = vst.msk [vmem:[#allocation3 + $0xc1] sm:$0xff] %vm2413_vm12, %v2395_v58  ;;  %v2396_v1 = vmax.f32 %v2314_v29, 0.0  ;;  %v1444_v7 = vpop.permute.xlu0 %1443 }
 0x315   : > { %2482 = vst.msk [vmem:[#allocation3 + $0xa9] sm:$0xff] %vm2413_vm12, %v2393_v2  ;;  %v2394_v5 = vmax.f32 %v2306_v4, 0.0  ;;  %v1442_v6 = vpop.permute.xlu1 %1441 }
 0x316   : > { %2485 = vst.msk [vmem:[#allocation3 + $0xc9] sm:$0xff] %vm2413_vm12, %v2396_v1  ;;  %3670 = vrot.lane.b32.xlu0 %v7187_v39, %s5644_s30 }
 0x317   : > { %1509 = vst.msk [vmem:[#allocation4 + $0xe8] sm:$0xff] %vm1479_vm7, %v1442_v6  ;;  %1510 = vst.msk [vmem:[#allocation4 + $0xf0] sm:$0xff] %vm1479_vm7, %v1444_v7  ;;  %2837 = vrot.lane.b32.xlu1 %v7057_v54, %s5643_s8 }
 0x318   : > { %2483 = vst.msk [vmem:[#allocation3 + $0xb1] sm:$0xff] %vm2413_vm12, %v2394_v5  ;;  %v1634_v9 = vpop.permute.xlu0 %1633 }
 0x319   : > { %v1446_v61 = vpop.permute.xlu1 %1445  ;;  %1702 = vst.msk [vmem:[#allocation4 + $0xe0] sm:$0xff] %vm1673_vm8, %v1634_v9 }
 0x31a   : > { %1511 = vst.msk [vmem:[#allocation4 + $0xf8] sm:$0xff] %vm1479_vm7, %v1446_v61  ;;  %3028 = vrot.lane.b32.xlu0 %v7267_v49, %s5644_s30 }
 0x31b   : > { %3672 = vrot.lane.b32.xlu1 %v7217_v55, %s5644_s30  ;;  %v7341_v10 = vld [vmem:[#allocation3 + $0xc0] sm:$0xff] }
 0x31c   : > { %v7343_v11 = vld [vmem:[#allocation3 + $0xc1] sm:$0xff]  ;;  %v7347_v54 = vld [vmem:[#allocation3 + $0xa9] sm:$0xff]  ;;  %2550 = vst.msk [vmem:[#allocation5 + $0x180] sm:$0xff] %vm2413_vm12, %v7341_v10  ;;  %v1638_v14 = vpop.permute.xlu0 %1637 }
 0x31d   : > { %3191 = vst.msk [vmem:[#allocation5 + $0x158] sm:$0xff] %vm2413_vm12, %v7343_v11  ;;  %v2516_v12 = vld [vmem:[#allocation3 + $0xa8] sm:$0xff]  ;;  %v1636_v18 = vpop.permute.xlu1 %1635  ;;  %3189 = vst.msk [vmem:[#allocation5 + $0x128] sm:$0xff] %vm2413_vm12, %v7347_v54 }
 0x31e   : > { %v7353_v56 = vld [vmem:[#allocation3 + $0xc2] sm:$0xff]  ;;  %v7355_v13 = vld [vmem:[#allocation3 + $0xca] sm:$0xff]  ;;  %2548 = vst.msk [vmem:[#allocation5 + $0x150] sm:$0xff] %vm2413_vm12, %v2516_v12  ;;  %3289 = vrot.lane.b32.xlu0 %v7202_v51, %s5642_s29 }
 0x31f   : > { %v7357_v44 = vld [vmem:[#allocation3 + $0xc8] sm:$0xff]  ;;  %1703 = vst.msk [vmem:[#allocation4 + $0xe8] sm:$0xff] %vm1673_vm8, %v1636_v18  ;;  %v7365_v47 = vld [vmem:[#allocation3 + $0xb2] sm:$0xff]  ;;  %1704 = vst.msk [vmem:[#allocation4 + $0xf0] sm:$0xff] %vm1673_vm8, %v1638_v14  ;;  %3030 = vrot.lane.b32.xlu1 %v7273_v41, %s5644_s30 }
 0x320   : > { %v7363_v3 = vld [vmem:[#allocation3 + $0xaa] sm:$0xff]  ;;  %3830 = vst.msk [vmem:[#allocation5 + $0x130] sm:$0xff] %vm2413_vm12, %v7353_v56  ;;  %3831 = vst.msk [vmem:[#allocation5 + $0x148] sm:$0xff] %vm2413_vm12, %v7355_v13  ;;  %v1827_v16 = vpop.permute.xlu0 %1826 }
 0x321   : > { %2551 = vst.msk [vmem:[#allocation5 + $0x198] sm:$0xff] %vm2413_vm12, %v7357_v44  ;;  %3828 = vst.msk [vmem:[#allocation5 + $0x100] sm:$0xff] %vm2413_vm12, %v7363_v3  ;;  %v7380_v15 = vld [vmem:[#allocation3 + $0xb1] sm:$0xff]  ;;  %v7382_v8 = vld [vmem:[#allocation3 + $0xc9] sm:$0xff]  ;;  %v1640_v49 = vpop.permute.xlu1 %1639 }
 0x322   : > { %3829 = vst.msk [vmem:[#allocation5 + $0x118] sm:$0xff] %vm2413_vm12, %v7365_v47  ;;  %v2517_v46 = vld [vmem:[#allocation3 + $0xb0] sm:$0xff]  ;;  %3190 = vst.msk [vmem:[#allocation5 + $0x140] sm:$0xff] %vm2413_vm12, %v7380_v15  ;;  %2646 = vrot.lane.b32.xlu0 %v7037_v36, %s5642_s29  ;;  %v7445_v48 = vld [vmem:[#allocation3 + $0xa8] sm:$0xff] }
 0x323   : > { %3192 = vst.msk [vmem:[#allocation5 + $0x170] sm:$0xff] %vm2413_vm12, %v7382_v8  ;;  %2549 = vst.msk [vmem:[#allocation5 + $0x168] sm:$0xff] %vm2413_vm12, %v2517_v46  ;;  %3291 = vrot.lane.b32.xlu1 %v7204_v52, %s5642_s29 }
 0x324   : > { %1705 = vst.msk [vmem:[#allocation4 + $0xf8] sm:$0xff] %vm1673_vm8, %v1640_v49  ;;  %v1831_v41 = vpop.permute.xlu0 %1830 }
 0x325   : > { %1895 = vst.msk [vmem:[#allocation4 + $0xe0] sm:$0xff] %vm1866_vm9, %v1827_v16  ;;  %v1829_v62 = vpop.permute.xlu1 %1828  ;;  %1897 = vst.msk [vmem:[#allocation4 + $0xf0] sm:$0xff] %vm1866_vm9, %v1831_v41 }
 0x326   : > { %1896 = vst.msk [vmem:[#allocation4 + $0xe8] sm:$0xff] %vm1866_vm9, %v1829_v62  ;;  %3482 = vrot.lane.b32.xlu0 %v7401_v38, %s5643_s8 }
 0x327   : > { %v3888_v17 = vld [vmem:[#allocation5 + $0x130] sm:$0xff]  ;;  %v3891_v19 = vld [vmem:[#allocation5 + $0x148] sm:$0xff]  ;;  %2648 = vrot.lane.b32.xlu1 %v7073_v34, %s5642_s29 }
 0x328   : > { %v3882_v25 = vld [vmem:[#allocation5 + $0x100] sm:$0xff]  ;;  %v3966_v36 = vpack.c.bf16 %v3891_v19, %v3888_v17  ;;  %v2020_v42 = vpop.permute.xlu0 %2019 }
 0x329   : > { %v3885_v27 = vld [vmem:[#allocation5 + $0x118] sm:$0xff]  ;;  %v1833_v31 = vpop.permute.xlu1 %1832  ;;  %2088 = vst.msk [vmem:[#allocation4 + $0xe0] sm:$0xff] %vm2059_vm10, %v2020_v42 }
 0x32a   : > { %v3963_v30 = vpack.c.bf16 %v3885_v27, %v3882_v25  ;;  %1898 = vst.msk [vmem:[#allocation4 + $0xf8] sm:$0xff] %vm1866_vm9, %v1833_v31  ;;  %2839 = vrot.lane.b32.xlu0 %v7048_v45, %s5643_s8 }
 0x32b   : > { %3484 = vrot.lane.b32.xlu1 %v7408_v20, %s5643_s8 }
 0x32c   : > { %5260 = vmatmul.mubr.msk.bf16.gmra.mrb[24].mxu0 %vm2413_vm12, %v3963_v30  ;;  %v2024_v24 = vpop.permute.xlu0 %2023 }
 0x32d   : > { %5263 = vmatprep.mubr.msk.bf16.mxu0 %vm2413_vm12, %v3966_v36  ;;  %v2022_v34 = vpop.permute.xlu1 %2021  ;;  %2090 = vst.msk [vmem:[#allocation4 + $0xf0] sm:$0xff] %vm2059_vm10, %v2024_v24 }
 0x32e   : > { %2089 = vst.msk [vmem:[#allocation4 + $0xe8] sm:$0xff] %vm2059_vm10, %v2022_v34  ;;  %3674 = vrot.lane.b32.xlu0 %v7183_v33, %s5644_s30 }
 0x32f   : > { %2841 = vrot.lane.b32.xlu1 %v7050_v53, %s5643_s8 }
 0x330   : > { %v3274_v40 = vpop.permute.xlu0 %3273  ;;  %v2120_v45 = vld [vmem:[#allocation4 + $0xe0] sm:$0xff] }
 0x331   : > { %v2026_v32 = vpop.permute.xlu1 %2025  ;;  %3369 = vst.msk [vmem:[#allocation5 + $0x8] sm:$0xff] %vm2726_vm14, %v3274_v40 }
 0x332   : > { %2091 = vst.msk [vmem:[#allocation4 + $0xf8] sm:$0xff] %vm2059_vm10, %v2026_v32  ;;  %3032 = vrot.lane.b32.xlu0 %v7309_v21, %s5644_s30 }
 0x333   : > { %3676 = vrot.lane.b32.xlu1 %v7219_v57, %s5644_s30 }
 0x334   : > { %v2631_v53 = vpop.permute.xlu0 %2630  ;;  %v2122_v26 = vld [vmem:[#allocation4 + $0xf0] sm:$0xff] }
 0x335   : > { %v3276_v22 = vpop.permute.xlu1 %3275  ;;  %v2121_v63 = vld [vmem:[#allocation4 + $0xe8] sm:$0xff]  ;;  %2727 = vst.msk [vmem:[#allocation5] sm:$0xff] %vm2726_vm14, %v2631_v53 }
 0x336   : > { %3370 = vst.msk [vmem:[#allocation5 + $0x20] sm:$0xff] %vm2726_vm14, %v3276_v22  ;;  %v2138_v28 = vpack.c.bf16 %v2121_v63, %v2120_v45  ;;  %3293 = vrot.lane.b32.xlu0 %v7192_v43, %s5642_s29 }
 0x337   : > { %3034 = vrot.lane.b32.xlu1 %v7319_v60, %s5644_s30 }
 0x338   : > { %5243 = vmatprep.mubr.msk.bf16.mxu1 %vm2167_vm11, %v2138_v28  ;;  %v3467_v0 = vpop.permute.xlu0 %3466 }
 0x339   : > { %v2633_v23 = vpop.permute.xlu1 %2632  ;;  %v2123_v21 = vld [vmem:[#allocation4 + $0xf8] sm:$0xff]  ;;  %3562 = vst.msk [vmem:[#allocation5 + $0x8] sm:$0xff] %vm2919_vm15, %v3467_v0 }
 0x33a   : > { %2728 = vst.msk [vmem:[#allocation5 + $0x18] sm:$0xff] %vm2726_vm14, %v2633_v23  ;;  %v2139_v50 = vpack.c.bf16 %v2123_v21, %v2122_v26  ;;  %2650 = vrot.lane.b32.xlu0 %v7187_v39, %s5642_s29  ;;  %v7450_v39 = vld [vmem:[#allocation3 + $0xb0] sm:$0xff] }
 0x33b   : > { %3295 = vrot.lane.b32.xlu1 %v7194_v35, %s5642_s29 }
 0x33c   : > { %5244 = vmatmul.mubr.msk.bf16.gmra.mrb[12].mxu1 %vm2167_vm11, %v2139_v50  ;;  %v2824_v29 = vpop.permute.xlu0 %2823 }
 0x33d   : > { %v3469_v58 = vpop.permute.xlu1 %3468  ;;  %2920 = vst.msk [vmem:[#allocation5] sm:$0xff] %vm2919_vm15, %v2824_v29 }
 0x33e   : > { %3563 = vst.msk [vmem:[#allocation5 + $0x20] sm:$0xff] %vm2919_vm15, %v3469_v58  ;;  %3486 = vrot.lane.b32.xlu0 %v7445_v48, %s5643_s8 }
 0x33f   : > { %2652 = vrot.lane.b32.xlu1 %v7217_v55, %s5642_s29 }
 0x340   : > { %v3659_v60 = vpop.permute.xlu0 %3658 }
 0x341   : > { %v2826_v59 = vpop.permute.xlu1 %2825  ;;  %3754 = vst.msk [vmem:[#allocation5 + $0x8] sm:$0xff] %vm3112_vm0, %v3659_v60 }
 0x342   : > { %2921 = vst.msk [vmem:[#allocation5 + $0x18] sm:$0xff] %vm2919_vm15, %v2826_v59  ;;  %2843 = vrot.lane.b32.xlu0 %v7202_v51, %s5643_s8 }
 0x343   : > { %3488 = vrot.lane.b32.xlu1 %v7450_v39, %s5643_s8 }
 0x344   : > { %v3017_v2 = vpop.permute.xlu0 %3016 }
 0x345   : > { %v3661_v55 = vpop.permute.xlu1 %3660  ;;  %3113 = vst.msk [vmem:[#allocation5] sm:$0xff] %vm3112_vm0, %v3017_v2 }
 0x346   : > { %3755 = vst.msk [vmem:[#allocation5 + $0x20] sm:$0xff] %vm3112_vm0, %v3661_v55  ;;  %3678 = vrot.lane.b32.xlu0 %v7347_v54, %s5644_s30 }
 0x347   : > { %2845 = vrot.lane.b32.xlu1 %v7204_v52, %s5643_s8 }
 0x348   : > { %v3278_v1 = vpop.permute.xlu0 %3277  ;;  %v3851_v5 = vld [vmem:[#allocation5 + $0x8] sm:$0xff] }
 0x349   : > { %v3019_v4 = vpop.permute.xlu1 %3018  ;;  %3371 = vst.msk [vmem:[#allocation5 + $0x38] sm:$0xff] %vm2726_vm14, %v3278_v1 }
 0x34a   : > { %3114 = vst.msk [vmem:[#allocation5 + $0x18] sm:$0xff] %vm3112_vm0, %v3019_v4  ;;  %3036 = vrot.lane.b32.xlu0 %v7401_v38, %s5644_s30 }
 0x34b   : > { %3680 = vrot.lane.b32.xlu1 %v7380_v15, %s5644_s30 }
 0x34c   : > { %v2635_v52 = vpop.permute.xlu0 %2634  ;;  %v3850_v49 = vld [vmem:[#allocation5] sm:$0xff] }
 0x34d   : > { %v3280_v51 = vpop.permute.xlu1 %3279  ;;  %v3854_v6 = vld [vmem:[#allocation5 + $0x20] sm:$0xff]  ;;  %2729 = vst.msk [vmem:[#allocation5 + $0x30] sm:$0xff] %vm2726_vm14, %v2635_v52 }
 0x34e   : > { %3372 = vst.msk [vmem:[#allocation5 + $0x50] sm:$0xff] %vm2726_vm14, %v3280_v51  ;;  %v3947_v7 = vpack.c.bf16 %v3854_v6, %v3851_v5  ;;  %3297 = vrot.lane.b32.xlu0 %v7363_v3, %s5642_s29 }
 0x34f   : > { %v5233_v61 = vpop.f32.mrb[0].mxu1  ;;  %3038 = vrot.lane.b32.xlu1 %v7408_v20, %s5644_s30 }
 0x350   : > { %v2327_v9 = vadd.f32 %v7311_v37, %v5233_v61  ;;  %v2318_v12 = vpop.f32.mrb[1].mxu1  ;;  %4225 = vmatprep.mubr.bf16.mxu1 %v3947_v7  ;;  %v3471_v41 = vpop.permute.xlu0 %3470 }
 0x351   : > { %v2319_v18 = vadd.f32 %v7311_v37, %v2318_v12  ;;  %v5234_v14 = vpop.f32.mrb[2].mxu1  ;;  %v2637_v46 = vpop.permute.xlu1 %2636  ;;  %v3853_v16 = vld [vmem:[#allocation5 + $0x18] sm:$0xff]  ;;  %3564 = vst.msk [vmem:[#allocation5 + $0x38] sm:$0xff] %vm2919_vm15, %v3471_v41 }
 0x352   : > { %v2399_v62 = vmax.f32 %v2327_v9, 0.0  ;;  %v2330_v17 = vadd.f32 %v7311_v37, %v5234_v14  ;;  %2730 = vst.msk [vmem:[#allocation5 + $0x48] sm:$0xff] %vm2726_vm14, %v2637_v46  ;;  %v2321_v19 = vpop.f32.mrb[3].mxu1  ;;  %v3946_v25 = vpack.c.bf16 %v3853_v16, %v3850_v49  ;;  %2654 = vrot.lane.b32.xlu0 %v7183_v33, %s5642_s29 }
 0x353   : > { %v2397_v27 = vmax.f32 %v2319_v18, 0.0  ;;  %v2322_v38 = vadd.f32 %v7311_v37, %v2321_v19  ;;  %3299 = vrot.lane.b32.xlu1 %v7365_v47, %s5642_s29 }
 0x354   : > { %2488 = vst.msk [vmem:[#allocation3 + $0xf1] sm:$0xff] %vm2413_vm12, %v2399_v62  ;;  %v2400_v30 = vmax.f32 %v2330_v17, 0.0  ;;  %4226 = vmatmul.mubr.bf16.vlgmr.msra.gmra.mrb[16].mxu1 %v3946_v25  ;;  %v2828_v42 = vpop.permute.xlu0 %2827 }
 0x355   : > { %2486 = vst.msk [vmem:[#allocation3 + $0xd9] sm:$0xff] %vm2413_vm12, %v2397_v27  ;;  %v2398_v36 = vmax.f32 %v2322_v38, 0.0  ;;  %v3473_v31 = vpop.permute.xlu1 %3472 }
 0x356   : > { %2489 = vst.msk [vmem:[#allocation3 + $0xf9] sm:$0xff] %vm2413_vm12, %v2400_v30  ;;  %3490 = vrot.lane.b32.xlu0 %v7341_v10, %s5643_s8 }
 0x357   : > { %3565 = vst.msk [vmem:[#allocation5 + $0x50] sm:$0xff] %vm2919_vm15, %v3473_v31  ;;  %2922 = vst.msk [vmem:[#allocation5 + $0x30] sm:$0xff] %vm2919_vm15, %v2828_v42  ;;  %2656 = vrot.lane.b32.xlu1 %v7219_v57, %s5642_s29 }
 0x358   : > { %2487 = vst.msk [vmem:[#allocation3 + $0xe1] sm:$0xff] %vm2413_vm12, %v2398_v36  ;;  %v3663_v20 = vpop.permute.xlu0 %3662 }
 0x359   : > { %v2830_v33 = vpop.permute.xlu1 %2829  ;;  %3756 = vst.msk [vmem:[#allocation5 + $0x38] sm:$0xff] %vm3112_vm0, %v3663_v20 }
 0x35a   : > { %2923 = vst.msk [vmem:[#allocation5 + $0x48] sm:$0xff] %vm2919_vm15, %v2830_v33  ;;  %2847 = vrot.lane.b32.xlu0 %v7192_v43, %s5643_s8 }
 0x35b   : > { %3492 = vrot.lane.b32.xlu1 %v7357_v44, %s5643_s8  ;;  %v7499_v34 = vld [vmem:[#allocation3 + $0xf0] sm:$0xff] }
 0x35c   : > { %v7501_v24 = vld [vmem:[#allocation3 + $0xf1] sm:$0xff]  ;;  %v7507_v32 = vld [vmem:[#allocation3 + $0xd9] sm:$0xff]  ;;  %2554 = vst.msk [vmem:[#allocation5 + $0x1e0] sm:$0xff] %vm2413_vm12, %v7499_v34  ;;  %v3021_v43 = vpop.permute.xlu0 %3020 }
 0x35d   : > { %v7505_v57 = vld [vmem:[#allocation3 + $0xd8] sm:$0xff]  ;;  %3195 = vst.msk [vmem:[#allocation5 + $0x1b8] sm:$0xff] %vm2413_vm12, %v7501_v24  ;;  %v3665_v40 = vpop.permute.xlu1 %3664  ;;  %3193 = vst.msk [vmem:[#allocation5 + $0x188] sm:$0xff] %vm2413_vm12, %v7507_v32 }
 0x35e   : > { %v7513_v45 = vld [vmem:[#allocation3 + $0xf2] sm:$0xff]  ;;  %v7515_v22 = vld [vmem:[#allocation3 + $0xfa] sm:$0xff]  ;;  %2552 = vst.msk [vmem:[#allocation5 + $0x1b0] sm:$0xff] %vm2413_vm12, %v7505_v57  ;;  %3682 = vrot.lane.b32.xlu0 %v7343_v11, %s5644_s30 }
 0x35f   : > { %v7517_v63 = vld [vmem:[#allocation3 + $0xf8] sm:$0xff]  ;;  %3757 = vst.msk [vmem:[#allocation5 + $0x50] sm:$0xff] %vm3112_vm0, %v3665_v40  ;;  %v7526_v28 = vld [vmem:[#allocation3 + $0xe2] sm:$0xff]  ;;  %3115 = vst.msk [vmem:[#allocation5 + $0x30] sm:$0xff] %vm3112_vm0, %v3021_v43  ;;  %2849 = vrot.lane.b32.xlu1 %v7194_v35, %s5643_s8 }
 0x360   : > { %v7524_v53 = vld [vmem:[#allocation3 + $0xda] sm:$0xff]  ;;  %3834 = vst.msk [vmem:[#allocation5 + $0x190] sm:$0xff] %vm2413_vm12, %v7513_v45  ;;  %3835 = vst.msk [vmem:[#allocation5 + $0x1a8] sm:$0xff] %vm2413_vm12, %v7515_v22  ;;  %v3282_v0 = vpop.permute.xlu0 %3281  ;;  %v3857_v50 = vld [vmem:[#allocation5 + $0x38] sm:$0xff] }
 0x361   : > { %v7532_v26 = vld [vmem:[#allocation3 + $0xe0] sm:$0xff]  ;;  %2555 = vst.msk [vmem:[#allocation5 + $0x1f8] sm:$0xff] %vm2413_vm12, %v7517_v63  ;;  %3832 = vst.msk [vmem:[#allocation5 + $0x160] sm:$0xff] %vm2413_vm12, %v7524_v53  ;;  %v3023_v35 = vpop.permute.xlu1 %3022 }
 0x362   : > { %3833 = vst.msk [vmem:[#allocation5 + $0x178] sm:$0xff] %vm2413_vm12, %v7526_v28  ;;  %v7543_v23 = vld [vmem:[#allocation3 + $0xe1] sm:$0xff]  ;;  %v7545_v21 = vld [vmem:[#allocation3 + $0xf9] sm:$0xff]  ;;  %2553 = vst.msk [vmem:[#allocation5 + $0x1c8] sm:$0xff] %vm2413_vm12, %v7532_v26  ;;  %3040 = vrot.lane.b32.xlu0 %v7445_v48, %s5644_s30 }
 0x363   : > { %3194 = vst.msk [vmem:[#allocation5 + $0x1a0] sm:$0xff] %vm2413_vm12, %v7543_v23  ;;  %3196 = vst.msk [vmem:[#allocation5 + $0x1d0] sm:$0xff] %vm2413_vm12, %v7545_v21  ;;  %3684 = vrot.lane.b32.xlu1 %v7382_v8, %s5644_s30 }
 0x364   : > { %3116 = vst.msk [vmem:[#allocation5 + $0x48] sm:$0xff] %vm3112_vm0, %v3023_v35  ;;  %v2639_v55 = vpop.permute.xlu0 %2638 }
 0x365   : > { %3373 = vst.msk [vmem:[#allocation5 + $0x68] sm:$0xff] %vm2726_vm14, %v3282_v0  ;;  %v3284_v58 = vpop.permute.xlu1 %3283  ;;  %2731 = vst.msk [vmem:[#allocation5 + $0x60] sm:$0xff] %vm2726_vm14, %v2639_v55 }
 0x366   : > { %v3860_v29 = vld [vmem:[#allocation5 + $0x50] sm:$0xff]  ;;  %3374 = vst.msk [vmem:[#allocation5 + $0x80] sm:$0xff] %vm2726_vm14, %v3284_v58  ;;  %3301 = vrot.lane.b32.xlu0 %v7353_v56, %s5642_s29 }
 0x367   : > { %v3900_v59 = vld [vmem:[#allocation5 + $0x190] sm:$0xff]  ;;  %v3903_v60 = vld [vmem:[#allocation5 + $0x1a8] sm:$0xff]  ;;  %v3950_v2 = vpack.c.bf16 %v3860_v29, %v3857_v50  ;;  %3042 = vrot.lane.b32.xlu1 %v7450_v39, %s5644_s30 }
 0x368   : > { %v3894_v4 = vld [vmem:[#allocation5 + $0x160] sm:$0xff]  ;;  %v3972_v48 = vpack.c.bf16 %v3903_v60, %v3900_v59  ;;  %v3856_v6 = vld [vmem:[#allocation5 + $0x30] sm:$0xff]  ;;  %v3475_v7 = vpop.permute.xlu0 %3474 }
 0x369   : > { %v3897_v1 = vld [vmem:[#allocation5 + $0x178] sm:$0xff]  ;;  %4233 = vmatprep.mubr.bf16.mxu1 %v3950_v2  ;;  %v2641_v5 = vpop.permute.xlu1 %2640  ;;  %3566 = vst.msk [vmem:[#allocation5 + $0x68] sm:$0xff] %vm2919_vm15, %v3475_v7 }
 0x36a   : > { %v3969_v51 = vpack.c.bf16 %v3897_v1, %v3894_v4  ;;  %2732 = vst.msk [vmem:[#allocation5 + $0x78] sm:$0xff] %vm2726_vm14, %v2641_v5  ;;  %2658 = vrot.lane.b32.xlu0 %v7347_v54, %s5642_s29 }
 0x36b   : > { %v3859_v52 = vld [vmem:[#allocation5 + $0x48] sm:$0xff]  ;;  %3303 = vrot.lane.b32.xlu1 %v7355_v13, %s5642_s29 }
 0x36c   : > { %5264 = vmatmul.mubr.msk.bf16.gmra.mrb[28].mxu0 %vm2413_vm12, %v3969_v51  ;;  %v3949_v61 = vpack.c.bf16 %v3859_v52, %v3856_v6  ;;  %v2832_v9 = vpop.permute.xlu0 %2831 }
 0x36d   : > { %5267 = vmatprep.mubr.msk.bf16.mxu0 %vm2413_vm12, %v3972_v48  ;;  %v3477_v39 = vpop.permute.xlu1 %3476  ;;  %2924 = vst.msk [vmem:[#allocation5 + $0x60] sm:$0xff] %vm2919_vm15, %v2832_v9 }
 0x36e   : > { %4234 = vmatmul.mubr.bf16.gmra.mrb[20].mxu1 %v3949_v61  ;;  %3567 = vst.msk [vmem:[#allocation5 + $0x80] sm:$0xff] %vm2919_vm15, %v3477_v39  ;;  %3494 = vrot.lane.b32.xlu0 %v7505_v57, %s5643_s8 }
 0x36f   : > { %2660 = vrot.lane.b32.xlu1 %v7380_v15, %s5642_s29 }
 0x370   : > { %v3667_v18 = vpop.permute.xlu0 %3666 }
 0x371   : > { %v2834_v12 = vpop.permute.xlu1 %2833  ;;  %3758 = vst.msk [vmem:[#allocation5 + $0x68] sm:$0xff] %vm3112_vm0, %v3667_v18 }
 0x372   : > { %2925 = vst.msk [vmem:[#allocation5 + $0x78] sm:$0xff] %vm2919_vm15, %v2834_v12  ;;  %2851 = vrot.lane.b32.xlu0 %v7363_v3, %s5643_s8 }
 0x373   : > { %3496 = vrot.lane.b32.xlu1 %v7532_v26, %s5643_s8 }
 0x374   : > { %v3025_v14 = vpop.permute.xlu0 %3024 }
 0x375   : > { %v3669_v54 = vpop.permute.xlu1 %3668  ;;  %3117 = vst.msk [vmem:[#allocation5 + $0x60] sm:$0xff] %vm3112_vm0, %v3025_v14 }
 0x376   : > { %3759 = vst.msk [vmem:[#allocation5 + $0x80] sm:$0xff] %vm3112_vm0, %v3669_v54  ;;  %3686 = vrot.lane.b32.xlu0 %v7507_v32, %s5644_s30 }
 0x377   : > { %2853 = vrot.lane.b32.xlu1 %v7365_v47, %s5643_s8 }
 0x378   : > { %v3286_v46 = vpop.permute.xlu0 %3285  ;;  %v3863_v16 = vld [vmem:[#allocation5 + $0x68] sm:$0xff] }
 0x379   : > { %v3027_v15 = vpop.permute.xlu1 %3026  ;;  %3375 = vst.msk [vmem:[#allocation5 + $0x98] sm:$0xff] %vm2726_vm14, %v3286_v46 }
 0x37a   : > { %3118 = vst.msk [vmem:[#allocation5 + $0x78] sm:$0xff] %vm3112_vm0, %v3027_v15  ;;  %3044 = vrot.lane.b32.xlu0 %v7341_v10, %s5644_s30 }
 0x37b   : > { %3688 = vrot.lane.b32.xlu1 %v7543_v23, %s5644_s30 }
 0x37c   : > { %v2643_v19 = vpop.permute.xlu0 %2642  ;;  %v3862_v27 = vld [vmem:[#allocation5 + $0x60] sm:$0xff] }
 0x37d   : > { %v3288_v47 = vpop.permute.xlu1 %3287  ;;  %v3866_v62 = vld [vmem:[#allocation5 + $0x80] sm:$0xff]  ;;  %2733 = vst.msk [vmem:[#allocation5 + $0x90] sm:$0xff] %vm2726_vm14, %v2643_v19 }
 0x37e   : > { %v7597_v3 = vpop.f32.mrb[16].mxu0  ;;  %3376 = vst.msk [vmem:[#allocation5 + $0xb0] sm:$0xff] %vm2726_vm14, %v3288_v47  ;;  %v3953_v41 = vpack.c.bf16 %v3866_v62, %v3863_v16  ;;  %3305 = vrot.lane.b32.xlu0 %v7524_v53, %s5642_s29 }
 0x37f   : > { %v7601_v49 = vpop.f32.mrb[17].mxu0  ;;  %3046 = vrot.lane.b32.xlu1 %v7357_v44, %s5644_s30 }
 0x380   : > { %v7604_v17 = vpop.f32.mrb[18].mxu0  ;;  %4241 = vmatprep.mubr.bf16.mxu1 %v3953_v41  ;;  %v3479_v30 = vpop.permute.xlu0 %3478 }
 0x381   : > { %v7607_v25 = vpop.f32.mrb[19].mxu0  ;;  %v2645_v10 = vpop.permute.xlu1 %2644  ;;  %v3865_v38 = vld [vmem:[#allocation5 + $0x78] sm:$0xff]  ;;  %3568 = vst.msk [vmem:[#allocation5 + $0x98] sm:$0xff] %vm2919_vm15, %v3479_v30 }
 0x382   : > { %2734 = vst.msk [vmem:[#allocation5 + $0xa8] sm:$0xff] %vm2726_vm14, %v2645_v10  ;;  %v3952_v36 = vpack.c.bf16 %v3865_v38, %v3862_v27  ;;  %2662 = vrot.lane.b32.xlu0 %v7343_v11, %s5642_s29 }
 0x383   : > { %3307 = vrot.lane.b32.xlu1 %v7526_v28, %s5642_s29 }
 0x384   : > { %4242 = vmatmul.mubr.bf16.gmra.mrb[24].mxu1 %v3952_v36  ;;  %v2836_v31 = vpop.permute.xlu0 %2835 }
 0x385   : > { %v3481_v44 = vpop.permute.xlu1 %3480  ;;  %2926 = vst.msk [vmem:[#allocation5 + $0x90] sm:$0xff] %vm2919_vm15, %v2836_v31 }
 0x386   : > { %3569 = vst.msk [vmem:[#allocation5 + $0xb0] sm:$0xff] %vm2919_vm15, %v3481_v44  ;;  %3498 = vrot.lane.b32.xlu0 %v7499_v34, %s5643_s8 }
 0x387   : > { %2664 = vrot.lane.b32.xlu1 %v7382_v8, %s5642_s29 }
 0x388   : > { %v3671_v33 = vpop.permute.xlu0 %3670 }
 0x389   : > { %v2838_v42 = vpop.permute.xlu1 %2837  ;;  %3760 = vst.msk [vmem:[#allocation5 + $0x98] sm:$0xff] %vm3112_vm0, %v3671_v33 }
 0x38a   : > { %2927 = vst.msk [vmem:[#allocation5 + $0xa8] sm:$0xff] %vm2919_vm15, %v2838_v42  ;;  %2855 = vrot.lane.b32.xlu0 %v7353_v56, %s5643_s8 }
 0x38b   : > { %3500 = vrot.lane.b32.xlu1 %v7517_v63, %s5643_s8 }
 0x38c   : > { %v3029_v20 = vpop.permute.xlu0 %3028 }
 0x38d   : > { %v3673_v11 = vpop.permute.xlu1 %3672  ;;  %3119 = vst.msk [vmem:[#allocation5 + $0x90] sm:$0xff] %vm3112_vm0, %v3029_v20 }
 0x38e   : > { %3761 = vst.msk [vmem:[#allocation5 + $0xb0] sm:$0xff] %vm3112_vm0, %v3673_v11  ;;  %3690 = vrot.lane.b32.xlu0 %v7501_v24, %s5644_s30  ;;  %v3817_v11 = vld [vmem:[#allocation3 + $0x1a2] sm:$0xff] }
 0x38f   : > { %v5237_v8 = vpop.f32.mrb[4].mxu1  ;;  %2857 = vrot.lane.b32.xlu1 %v7355_v13, %s5643_s8  ;;  %3849 = vst.msk [vmem:[#allocation5 + $0x2f8] sm:$0xff] %vm2413_vm12, %v3817_v11 }
 0x390   : > { %v2343_v40 = vadd.f32 %v7311_v37, %v5237_v8  ;;  %v2334_v43 = vpop.f32.mrb[5].mxu1  ;;  %v3290_v59 = vpop.permute.xlu0 %3289  ;;  %v3869_v1 = vld [vmem:[#allocation5 + $0x98] sm:$0xff] }
 0x391   : > { %v2335_v35 = vadd.f32 %v7311_v37, %v2334_v43  ;;  %v5238_v0 = vpop.f32.mrb[6].mxu1  ;;  %v3031_v56 = vpop.permute.xlu1 %3030  ;;  %3377 = vst.msk [vmem:[#allocation5 + $0xc8] sm:$0xff] %vm2726_vm14, %v3290_v59 }
 0x392   : > { %v2403_v50 = vmax.f32 %v2343_v40, 0.0  ;;  %v2346_v58 = vadd.f32 %v7311_v37, %v5238_v0  ;;  %3120 = vst.msk [vmem:[#allocation5 + $0xa8] sm:$0xff] %vm3112_vm0, %v3031_v56  ;;  %v2337_v29 = vpop.f32.mrb[7].mxu1  ;;  %3048 = vrot.lane.b32.xlu0 %v7505_v57, %s5644_s30 }
 0x393   : > { %v2401_v60 = vmax.f32 %v2335_v35, 0.0  ;;  %v2338_v13 = vadd.f32 %v7311_v37, %v2337_v29  ;;  %3692 = vrot.lane.b32.xlu1 %v7545_v21, %s5644_s30 }
 0x394   : > { %2492 = vst.msk [vmem:[#allocation3 + $0x121] sm:$0xff] %vm2413_vm12, %v2403_v50  ;;  %v2404_v55 = vmax.f32 %v2346_v58, 0.0  ;;  %v2647_v37 = vpop.permute.xlu0 %2646  ;;  %v3868_v5 = vld [vmem:[#allocation5 + $0x90] sm:$0xff] }
 0x395   : > { %2490 = vst.msk [vmem:[#allocation3 + $0x109] sm:$0xff] %vm2413_vm12, %v2401_v60  ;;  %v2402_v2 = vmax.f32 %v2338_v13, 0.0  ;;  %v3292_v4 = vpop.permute.xlu1 %3291  ;;  %v3872_v51 = vld [vmem:[#allocation5 + $0xb0] sm:$0xff] }
 0x396   : > { %2493 = vst.msk [vmem:[#allocation3 + $0x129] sm:$0xff] %vm2413_vm12, %v2404_v55  ;;  %v3956_v48 = vpack.c.bf16 %v3872_v51, %v3869_v1  ;;  %3309 = vrot.lane.b32.xlu0 %v7513_v45, %s5642_s29 }
 0x397   : > { %3378 = vst.msk [vmem:[#allocation5 + $0xe0] sm:$0xff] %vm2726_vm14, %v3292_v4  ;;  %2735 = vst.msk [vmem:[#allocation5 + $0xc0] sm:$0xff] %vm2726_vm14, %v2647_v37  ;;  %3050 = vrot.lane.b32.xlu1 %v7532_v26, %s5644_s30 }
 0x398   : > { %2491 = vst.msk [vmem:[#allocation3 + $0x111] sm:$0xff] %vm2413_vm12, %v2402_v2  ;;  %4249 = vmatprep.mubr.bf16.mxu1 %v3956_v48  ;;  %v3483_v52 = vpop.permute.xlu0 %3482 }
 0x399   : > { %v2649_v57 = vpop.permute.xlu1 %2648  ;;  %v3871_v6 = vld [vmem:[#allocation5 + $0xa8] sm:$0xff]  ;;  %3570 = vst.msk [vmem:[#allocation5 + $0xc8] sm:$0xff] %vm2919_vm15, %v3483_v52 }
 0x39a   : > { %2736 = vst.msk [vmem:[#allocation5 + $0xd8] sm:$0xff] %vm2726_vm14, %v2649_v57  ;;  %v3955_v7 = vpack.c.bf16 %v3871_v6, %v3868_v5  ;;  %2666 = vrot.lane.b32.xlu0 %v7507_v32, %s5642_s29  ;;  %v5430_v52 = vld [vmem:[#allocation13] sm:$0xff]  }
 0x39b   : > { %3311 = vrot.lane.b32.xlu1 %v7515_v22, %s5642_s29  ;;  %v7661_v61 = vld [vmem:[#allocation3 + $0x121] sm:$0xff]  ;;  %5283 = vmatprep.subr.bf16.mxu0 %v5430_v52 }
 0x39c   : > { %v2526_v39 = vld [vmem:[#allocation3 + $0x120] sm:$0xff]  ;;  %4250 = vmatmul.mubr.bf16.gmra.mrb[28].mxu1 %v3955_v7  ;;  %v7665_v26 = vld [vmem:[#allocation3 + $0x108] sm:$0xff]  ;;  %3199 = vst.msk [vmem:[#allocation5 + $0x218] sm:$0xff] %vm2413_vm12, %v7661_v61  ;;  %v2840_v32 = vpop.permute.xlu0 %2839  ;;  %5284 = vmatpush3.bf16.msra.mxu0 %v5430_v52 }
 0x39d   : > { %v7667_v9 = vld [vmem:[#allocation3 + $0x109] sm:$0xff]  ;;  %2558 = vst.msk [vmem:[#allocation5 + $0x240] sm:$0xff] %vm2413_vm12, %v2526_v39  ;;  %v3485_v12 = vpop.permute.xlu1 %3484  ;;  %2556 = vst.msk [vmem:[#allocation5 + $0x210] sm:$0xff] %vm2413_vm12, %v7665_v26  ;;  %v7748_v59 = vld [vmem:[#allocation3 + $0x120] sm:$0xff] }
 0x39e   : > { %v7672_v18 = vld [vmem:[#allocation3 + $0x122] sm:$0xff]  ;;  %v7674_v54 = vld [vmem:[#allocation3 + $0x12a] sm:$0xff]  ;;  %3197 = vst.msk [vmem:[#allocation5 + $0x1e8] sm:$0xff] %vm2413_vm12, %v7667_v9  ;;  %3502 = vrot.lane.b32.xlu0 %v7665_v26, %s5643_s8 }
 0x39f   : > { %3571 = vst.msk [vmem:[#allocation5 + $0xe0] sm:$0xff] %vm2919_vm15, %v3485_v12  ;;  %v7681_v14 = vld [vmem:[#allocation3 + $0x10a] sm:$0xff]  ;;  %v7683_v15 = vld [vmem:[#allocation3 + $0x112] sm:$0xff]  ;;  %2928 = vst.msk [vmem:[#allocation5 + $0xc0] sm:$0xff] %vm2919_vm15, %v2840_v32  ;;  %2668 = vrot.lane.b32.xlu1 %v7543_v23, %s5642_s29 }
 0x3a0   : > { %3838 = vst.msk [vmem:[#allocation5 + $0x1f0] sm:$0xff] %vm2413_vm12, %v7672_v18  ;;  %3839 = vst.msk [vmem:[#allocation5 + $0x208] sm:$0xff] %vm2413_vm12, %v7674_v54  ;;  %v7696_v46 = vld [vmem:[#allocation3 + $0x111] sm:$0xff]  ;;  %v7698_v47 = vld [vmem:[#allocation3 + $0x129] sm:$0xff]  ;;  %v3675_v19 = vpop.permute.xlu0 %3674 }
 0x3a1   : > { %3836 = vst.msk [vmem:[#allocation5 + $0x1c0] sm:$0xff] %vm2413_vm12, %v7681_v14  ;;  %3837 = vst.msk [vmem:[#allocation5 + $0x1d8] sm:$0xff] %vm2413_vm12, %v7683_v15  ;;  %v2525_v16 = vld [vmem:[#allocation3 + $0x110] sm:$0xff]  ;;  %v2527_v23 = vld [vmem:[#allocation3 + $0x128] sm:$0xff]  ;;  %v2842_v62 = vpop.permute.xlu1 %2841 }
 0x3a2   : > { %3198 = vst.msk [vmem:[#allocation5 + $0x200] sm:$0xff] %vm2413_vm12, %v7696_v46  ;;  %3200 = vst.msk [vmem:[#allocation5 + $0x230] sm:$0xff] %vm2413_vm12, %v7698_v47  ;;  %v7709_v41 = vld [vmem:[#allocation3 + $0x110] sm:$0xff]  ;;  %2859 = vrot.lane.b32.xlu0 %v7524_v53, %s5643_s8 }
 0x3a3   : > { %2557 = vst.msk [vmem:[#allocation5 + $0x228] sm:$0xff] %vm2413_vm12, %v2525_v16  ;;  %2559 = vst.msk [vmem:[#allocation5 + $0x258] sm:$0xff] %vm2413_vm12, %v2527_v23  ;;  %3504 = vrot.lane.b32.xlu1 %v7709_v41, %s5643_s8  ;;  %v5431_v16 = vld [vmem:[#allocation13 + $0x8] sm:$0xff]  }
 0x3a4   : > { %2929 = vst.msk [vmem:[#allocation5 + $0xd8] sm:$0xff] %vm2919_vm15, %v2842_v62  ;;  %v3033_v30 = vpop.permute.xlu0 %3032  ;;  %5285 = vmatprep.subr.bf16.mxu0 %v5431_v16 }
 0x3a5   : > { %3762 = vst.msk [vmem:[#allocation5 + $0xc8] sm:$0xff] %vm3112_vm0, %v3675_v19  ;;  %v3677_v10 = vpop.permute.xlu1 %3676  ;;  %3121 = vst.msk [vmem:[#allocation5 + $0xc0] sm:$0xff] %vm3112_vm0, %v3033_v30  ;;  %5286 = vmatpush3.bf16.msra.mxu0 %v5431_v16 }
 0x3a6   : > { %3763 = vst.msk [vmem:[#allocation5 + $0xe0] sm:$0xff] %vm3112_vm0, %v3677_v10  ;;  %3694 = vrot.lane.b32.xlu0 %v7667_v9, %s5644_s30 }
 0x3a7   : > { %v3912_v27 = vld [vmem:[#allocation5 + $0x1f0] sm:$0xff]  ;;  %v3915_v38 = vld [vmem:[#allocation5 + $0x208] sm:$0xff]  ;;  %2861 = vrot.lane.b32.xlu1 %v7526_v28, %s5643_s8 }
 0x3a8   : > { %v3906_v36 = vld [vmem:[#allocation5 + $0x1c0] sm:$0xff]  ;;  %v3909_v44 = vld [vmem:[#allocation5 + $0x1d8] sm:$0xff]  ;;  %v3978_v42 = vpack.c.bf16 %v3915_v38, %v3912_v27  ;;  %v3294_v33 = vpop.permute.xlu0 %3293  ;;  %v3816_v28 = vld [vmem:[#allocation3 + $0x19a] sm:$0xff] }
 0x3a9   : > { %v3975_v31 = vpack.c.bf16 %v3909_v44, %v3906_v36  ;;  %v3035_v53 = vpop.permute.xlu1 %3034  ;;  %3379 = vst.msk [vmem:[#allocation5 + $0xf8] sm:$0xff] %vm2726_vm14, %v3294_v33 }
 0x3aa   : > { %3122 = vst.msk [vmem:[#allocation5 + $0xd8] sm:$0xff] %vm3112_vm0, %v3035_v53  ;;  %3052 = vrot.lane.b32.xlu0 %v7499_v34, %s5644_s30 }
 0x3ab   : > { %5268 = vmatmul.mubr.msk.bf16.gmra.mrb[32].mxu0 %vm2413_vm12, %v3975_v31  ;;  %3696 = vrot.lane.b32.xlu1 %v7696_v46, %s5644_s30  ;;  %3848 = vst.msk [vmem:[#allocation5 + $0x2e0] sm:$0xff] %vm2413_vm12, %v3816_v28 }
 0x3ac   : > { %5271 = vmatprep.mubr.msk.bf16.mxu0 %vm2413_vm12, %v3978_v42  ;;  %v3875_v8 = vld [vmem:[#allocation5 + $0xc8] sm:$0xff]  ;;  %v2651_v43 = vpop.permute.xlu0 %2650  ;;  %v3874_v0 = vld [vmem:[#allocation5 + $0xc0] sm:$0xff] }
 0x3ad   : > { %v3296_v20 = vpop.permute.xlu1 %3295  ;;  %v3878_v40 = vld [vmem:[#allocation5 + $0xe0] sm:$0xff]  ;;  %2737 = vst.msk [vmem:[#allocation5 + $0xf0] sm:$0xff] %vm2726_vm14, %v2651_v43 }
 0x3ae   : > { %3380 = vst.msk [vmem:[#allocation5 + $0x110] sm:$0xff] %vm2726_vm14, %v3296_v20  ;;  %v3959_v35 = vpack.c.bf16 %v3878_v40, %v3875_v8  ;;  %3313 = vrot.lane.b32.xlu0 %v7681_v14, %s5642_s29 }
 0x3af   : > { %3054 = vrot.lane.b32.xlu1 %v7517_v63, %s5644_s30 }
 0x3b0   : > { %4257 = vmatprep.mubr.bf16.mxu1 %v3959_v35  ;;  %v3487_v50 = vpop.permute.xlu0 %3486 }
 0x3b1   : > { %v2653_v34 = vpop.permute.xlu1 %2652  ;;  %v3877_v56 = vld [vmem:[#allocation5 + $0xd8] sm:$0xff]  ;;  %3572 = vst.msk [vmem:[#allocation5 + $0xf8] sm:$0xff] %vm2919_vm15, %v3487_v50 }
 0x3b2   : > { %2738 = vst.msk [vmem:[#allocation5 + $0x108] sm:$0xff] %vm2726_vm14, %v2653_v34  ;;  %v3958_v58 = vpack.c.bf16 %v3877_v56, %v3874_v0  ;;  %2670 = vrot.lane.b32.xlu0 %v7501_v24, %s5642_s29  ;;  %v7753_v24 = vld [vmem:[#allocation3 + $0x128] sm:$0xff] }
 0x3b3   : > { %3315 = vrot.lane.b32.xlu1 %v7683_v15, %s5642_s29 }
 0x3b4   : > { %4258 = vmatmul.mubr.bf16.gmra.mrb[32].mxu1 %v3958_v58  ;;  %v2844_v29 = vpop.permute.xlu0 %2843 }
 0x3b5   : > { %v3489_v63 = vpop.permute.xlu1 %3488  ;;  %2930 = vst.msk [vmem:[#allocation5 + $0xf0] sm:$0xff] %vm2919_vm15, %v2844_v29 }
 0x3b6   : > { %3573 = vst.msk [vmem:[#allocation5 + $0x110] sm:$0xff] %vm2919_vm15, %v3489_v63  ;;  %3506 = vrot.lane.b32.xlu0 %v7748_v59, %s5643_s8 }
 0x3b7   : > { %2672 = vrot.lane.b32.xlu1 %v7545_v21, %s5642_s29 }
 0x3b8   : > { %v3679_v13 = vpop.permute.xlu0 %3678 }
 0x3b9   : > { %v2846_v60 = vpop.permute.xlu1 %2845  ;;  %3764 = vst.msk [vmem:[#allocation5 + $0xf8] sm:$0xff] %vm3112_vm0, %v3679_v13 }
 0x3ba   : > { %2931 = vst.msk [vmem:[#allocation5 + $0x108] sm:$0xff] %vm2919_vm15, %v2846_v60  ;;  %2863 = vrot.lane.b32.xlu0 %v7513_v45, %s5643_s8 }
 0x3bb   : > { %3508 = vrot.lane.b32.xlu1 %v7753_v24, %s5643_s8 }
 0x3bc   : > { %v3037_v1 = vpop.permute.xlu0 %3036 }
 0x3bd   : > { %v3681_v2 = vpop.permute.xlu1 %3680  ;;  %3123 = vst.msk [vmem:[#allocation5 + $0xf0] sm:$0xff] %vm3112_vm0, %v3037_v1 }
 0x3be   : > { %v7758_v55 = vpop.f32.mrb[20].mxu0  ;;  %3765 = vst.msk [vmem:[#allocation5 + $0x110] sm:$0xff] %vm3112_vm0, %v3681_v2  ;;  %3698 = vrot.lane.b32.xlu0 %v7661_v61, %s5644_s30 }
 0x3bf   : > { %v7762_v21 = vpop.f32.mrb[21].mxu0  ;;  %2865 = vrot.lane.b32.xlu1 %v7515_v22, %s5643_s8 }
 0x3c0   : > { %v7765_v4 = vpop.f32.mrb[22].mxu0  ;;  %v3298_v45 = vpop.permute.xlu0 %3297  ;;  %v3881_v57 = vld [vmem:[#allocation5 + $0xf8] sm:$0xff] }
 0x3c1   : > { %v7768_v51 = vpop.f32.mrb[23].mxu0  ;;  %v3039_v37 = vpop.permute.xlu1 %3038  ;;  %3381 = vst.msk [vmem:[#allocation5 + $0x128] sm:$0xff] %vm2726_vm14, %v3298_v45 }
 0x3c2   : > { %3124 = vst.msk [vmem:[#allocation5 + $0x108] sm:$0xff] %vm3112_vm0, %v3039_v37  ;;  %3056 = vrot.lane.b32.xlu0 %v7665_v26, %s5644_s30 }
 0x3c3   : > { %3700 = vrot.lane.b32.xlu1 %v7698_v47, %s5644_s30 }
 0x3c4   : > { %v2655_v22 = vpop.permute.xlu0 %2654  ;;  %v3880_v39 = vld [vmem:[#allocation5 + $0xf0] sm:$0xff] }
 0x3c5   : > { %v3300_v48 = vpop.permute.xlu1 %3299  ;;  %v3884_v5 = vld [vmem:[#allocation5 + $0x110] sm:$0xff]  ;;  %2739 = vst.msk [vmem:[#allocation5 + $0x120] sm:$0xff] %vm2726_vm14, %v2655_v22 }
 0x3c6   : > { %3382 = vst.msk [vmem:[#allocation5 + $0x140] sm:$0xff] %vm2726_vm14, %v3300_v48  ;;  %v3962_v6 = vpack.c.bf16 %v3884_v5, %v3881_v57  ;;  %3317 = vrot.lane.b32.xlu0 %v7672_v18, %s5642_s29 }
 0x3c7   : > { %3058 = vrot.lane.b32.xlu1 %v7709_v41, %s5644_s30  ;;  %v7796_v41 = vld [vmem:[#allocation8] ss:$0 sm:$0xff] }
 0x3c8   : > { %4265 = vmatprep.mubr.bf16.mxu1 %v3962_v6  ;;  %v3491_v12 = vpop.permute.xlu0 %3490 }
 0x3c9   : > { %v2657_v7 = vpop.permute.xlu1 %2656  ;;  %v3883_v26 = vld [vmem:[#allocation5 + $0x108] sm:$0xff]  ;;  %3574 = vst.msk [vmem:[#allocation5 + $0x128] sm:$0xff] %vm2919_vm15, %v3491_v12 }
 0x3ca   : > { %2740 = vst.msk [vmem:[#allocation5 + $0x138] sm:$0xff] %vm2726_vm14, %v2657_v7  ;;  %v3961_v32 = vpack.c.bf16 %v3883_v26, %v3880_v39  ;;  %2674 = vrot.lane.b32.xlu0 %v7667_v9, %s5642_s29 }
 0x3cb   : > { %3319 = vrot.lane.b32.xlu1 %v7674_v54, %s5642_s29 }
 0x3cc   : > { %4266 = vmatmul.mubr.bf16.gmra.mrb[36].mxu1 %v3961_v32  ;;  %v2848_v62 = vpop.permute.xlu0 %2847 }
 0x3cd   : > { %v3493_v23 = vpop.permute.xlu1 %3492  ;;  %2932 = vst.msk [vmem:[#allocation5 + $0x120] sm:$0xff] %vm2919_vm15, %v2848_v62 }
 0x3ce   : > { %3575 = vst.msk [vmem:[#allocation5 + $0x140] sm:$0xff] %vm2919_vm15, %v3493_v23 }
 0x3cf   : > { %v5241_v19 = vpop.f32.mrb[8].mxu1  ;;  %2676 = vrot.lane.b32.xlu1 %v7696_v46, %s5642_s29 }
 0x3d0   : > { %v2359_v10 = vadd.f32 %v7796_v41, %v5241_v19  ;;  %v2350_v27 = vpop.f32.mrb[9].mxu1  ;;  %v3683_v42 = vpop.permute.xlu0 %3682 }
 0x3d1   : > { %v2351_v9 = vadd.f32 %v7796_v41, %v2350_v27  ;;  %v5242_v38 = vpop.f32.mrb[10].mxu1  ;;  %v2850_v30 = vpop.permute.xlu1 %2849  ;;  %3766 = vst.msk [vmem:[#allocation5 + $0x128] sm:$0xff] %vm3112_vm0, %v3683_v42 }
 0x3d2   : > { %v2407_v36 = vmax.f32 %v2359_v10, 0.0  ;;  %v2362_v44 = vadd.f32 %v7796_v41, %v5242_v38  ;;  %2933 = vst.msk [vmem:[#allocation5 + $0x138] sm:$0xff] %vm2919_vm15, %v2850_v30  ;;  %v2353_v31 = vpop.f32.mrb[11].mxu1 }
 0x3d3   : > { %v2405_v53 = vmax.f32 %v2351_v9, 0.0  ;;  %v2354_v33 = vadd.f32 %v7796_v41, %v2353_v31 }
 0x3d4   : > { %2496 = vst.msk [vmem:[#allocation3 + $0x151] sm:$0xff] %vm2413_vm12, %v2407_v36  ;;  %v2408_v46 = vmax.f32 %v2362_v44, 0.0  ;;  %v3041_v20 = vpop.permute.xlu0 %3040 }
 0x3d5   : > { %2494 = vst.msk [vmem:[#allocation3 + $0x139] sm:$0xff] %vm2413_vm12, %v2405_v53  ;;  %v2406_v28 = vmax.f32 %v2354_v33, 0.0  ;;  %v3685_v11 = vpop.permute.xlu1 %3684 }
 0x3d6   : > { %2497 = vst.msk [vmem:[#allocation3 + $0x159] sm:$0xff] %vm2413_vm12, %v2408_v46 }
 0x3d7   : > { %3767 = vst.msk [vmem:[#allocation5 + $0x140] sm:$0xff] %vm3112_vm0, %v3685_v11  ;;  %3125 = vst.msk [vmem:[#allocation5 + $0x120] sm:$0xff] %vm3112_vm0, %v3041_v20 }
 0x3d8   : > { %2495 = vst.msk [vmem:[#allocation3 + $0x141] sm:$0xff] %vm2413_vm12, %v2406_v28  ;;  %v3302_v40 = vpop.permute.xlu0 %3301  ;;  %v3887_v0 = vld [vmem:[#allocation5 + $0x128] sm:$0xff] }
 0x3d9   : > { %v3043_v8 = vpop.permute.xlu1 %3042  ;;  %3383 = vst.msk [vmem:[#allocation5 + $0x158] sm:$0xff] %vm2726_vm14, %v3302_v40 }
 0x3da   : > { %3126 = vst.msk [vmem:[#allocation5 + $0x138] sm:$0xff] %vm3112_vm0, %v3043_v8 }
 0x3db   : > { %v7812_v43 = vld [vmem:[#allocation3 + $0x150] sm:$0xff] }
 0x3dc   : > { %v7814_v35 = vld [vmem:[#allocation3 + $0x151] sm:$0xff]  ;;  %v7818_v56 = vld [vmem:[#allocation3 + $0x139] sm:$0xff]  ;;  %2562 = vst.msk [vmem:[#allocation5 + $0x2a0] sm:$0xff] %vm2413_vm12, %v7812_v43  ;;  %v2659_v60 = vpop.permute.xlu0 %2658 }
 0x3dd   : > { %v7816_v34 = vld [vmem:[#allocation3 + $0x138] sm:$0xff]  ;;  %3203 = vst.msk [vmem:[#allocation5 + $0x278] sm:$0xff] %vm2413_vm12, %v7814_v35  ;;  %v3304_v50 = vpop.permute.xlu1 %3303  ;;  %3201 = vst.msk [vmem:[#allocation5 + $0x248] sm:$0xff] %vm2413_vm12, %v7818_v56 }
 0x3de   : > { %3510 = vrot.lane.b32.xlu0 %v7816_v34, %s5643_s8  ;;  %v3890_v58 = vld [vmem:[#allocation5 + $0x140] sm:$0xff]  ;;  %v7828_v29 = vld [vmem:[#allocation3 + $0x15a] sm:$0xff]  ;;  %2560 = vst.msk [vmem:[#allocation5 + $0x270] sm:$0xff] %vm2413_vm12, %v7816_v34 }
 0x3df   : > { %v7826_v63 = vld [vmem:[#allocation3 + $0x152] sm:$0xff]  ;;  %3384 = vst.msk [vmem:[#allocation5 + $0x170] sm:$0xff] %vm2726_vm14, %v3304_v50  ;;  %v7835_v13 = vld [vmem:[#allocation3 + $0x140] sm:$0xff]  ;;  %v3965_v2 = vpack.c.bf16 %v3890_v58, %v3887_v0  ;;  %2741 = vst.msk [vmem:[#allocation5 + $0x150] sm:$0xff] %vm2726_vm14, %v2659_v60 }
 0x3e0   : > { %v7837_v1 = vld [vmem:[#allocation3 + $0x141] sm:$0xff]  ;;  %3842 = vst.msk [vmem:[#allocation5 + $0x250] sm:$0xff] %vm2413_vm12, %v7826_v63  ;;  %3843 = vst.msk [vmem:[#allocation5 + $0x268] sm:$0xff] %vm2413_vm12, %v7828_v29  ;;  %3512 = vrot.lane.b32.xlu1 %v7835_v13, %s5643_s8  ;;  %v7850_v48 = vld [vmem:[#allocation3 + $0x158] sm:$0xff]  ;;  %v3495_v52 = vpop.permute.xlu0 %3494 }
 0x3e1   : > { %v7846_v37 = vld [vmem:[#allocation3 + $0x13a] sm:$0xff]  ;;  %v7848_v45 = vld [vmem:[#allocation3 + $0x142] sm:$0xff]  ;;  %3202 = vst.msk [vmem:[#allocation5 + $0x260] sm:$0xff] %vm2413_vm12, %v7837_v1  ;;  %2561 = vst.msk [vmem:[#allocation5 + $0x288] sm:$0xff] %vm2413_vm12, %v7835_v13  ;;  %4273 = vmatprep.mubr.bf16.mxu1 %v3965_v2  ;;  %v2661_v5 = vpop.permute.xlu1 %2660 }
 0x3e2   : > { %3840 = vst.msk [vmem:[#allocation5 + $0x220] sm:$0xff] %vm2413_vm12, %v7846_v37  ;;  %3841 = vst.msk [vmem:[#allocation5 + $0x238] sm:$0xff] %vm2413_vm12, %v7848_v45  ;;  %v7860_v57 = vld [vmem:[#allocation3 + $0x159] sm:$0xff]  ;;  %2867 = vrot.lane.b32.xlu0 %v7681_v14, %s5643_s8  ;;  %v3886_v22 = vld [vmem:[#allocation5 + $0x120] sm:$0xff] }
 0x3e3   : > { %2563 = vst.msk [vmem:[#allocation5 + $0x2b8] sm:$0xff] %vm2413_vm12, %v7850_v48  ;;  %v3889_v6 = vld [vmem:[#allocation5 + $0x138] sm:$0xff]  ;;  %3204 = vst.msk [vmem:[#allocation5 + $0x290] sm:$0xff] %vm2413_vm12, %v7860_v57 }
 0x3e4   : > { %2742 = vst.msk [vmem:[#allocation5 + $0x168] sm:$0xff] %vm2726_vm14, %v2661_v5  ;;  %v3964_v7 = vpack.c.bf16 %v3889_v6, %v3886_v22  ;;  %2869 = vrot.lane.b32.xlu1 %v7683_v15, %s5643_s8  ;;  %v2852_v14 = vpop.permute.xlu0 %2851 }
 0x3e5   : > { %3576 = vst.msk [vmem:[#allocation5 + $0x158] sm:$0xff] %vm2919_vm15, %v3495_v52  ;;  %v3497_v39 = vpop.permute.xlu1 %3496  ;;  %2934 = vst.msk [vmem:[#allocation5 + $0x150] sm:$0xff] %vm2919_vm15, %v2852_v14 }
 0x3e6   : > { %4274 = vmatmul.mubr.bf16.gmra.mrb[40].mxu1 %v3964_v7  ;;  %3702 = vrot.lane.b32.xlu0 %v7818_v56, %s5644_s30  ;;  %3577 = vst.msk [vmem:[#allocation5 + $0x170] sm:$0xff] %vm2919_vm15, %v3497_v39 }
 0x3e7   : > { %v3924_v26 = vld [vmem:[#allocation5 + $0x250] sm:$0xff]  ;;  %v3927_v12 = vld [vmem:[#allocation5 + $0x268] sm:$0xff] }
 0x3e8   : > { %3704 = vrot.lane.b32.xlu1 %v7837_v1, %s5644_s30  ;;  %v3984_v15 = vpack.c.bf16 %v3927_v12, %v3924_v26  ;;  %v3687_v19 = vpop.permute.xlu0 %3686 }
 0x3e9   : > { %v3918_v32 = vld [vmem:[#allocation5 + $0x220] sm:$0xff]  ;;  %v3921_v16 = vld [vmem:[#allocation5 + $0x238] sm:$0xff]  ;;  %v2854_v62 = vpop.permute.xlu1 %2853  ;;  %3768 = vst.msk [vmem:[#allocation5 + $0x158] sm:$0xff] %vm3112_vm0, %v3687_v19 }
 0x3ea   : > { %v3981_v23 = vpack.c.bf16 %v3921_v16, %v3918_v32  ;;  %3060 = vrot.lane.b32.xlu0 %v7748_v59, %s5644_s30  ;;  %2935 = vst.msk [vmem:[#allocation5 + $0x168] sm:$0xff] %vm2919_vm15, %v2854_v62 }
 0x3ec   : > { %5272 = vmatmul.mubr.msk.bf16.gmra.mrb[36].mxu0 %vm2413_vm12, %v3981_v23  ;;  %3062 = vrot.lane.b32.xlu1 %v7753_v24, %s5644_s30  ;;  %v3045_v59 = vpop.permute.xlu0 %3044 }
 0x3ed   : > { %5275 = vmatprep.mubr.msk.bf16.mxu0 %vm2413_vm12, %v3984_v15  ;;  %v3689_v10 = vpop.permute.xlu1 %3688  ;;  %3127 = vst.msk [vmem:[#allocation5 + $0x150] sm:$0xff] %vm3112_vm0, %v3045_v59 }
 0x3ee   : > { %3321 = vrot.lane.b32.xlu0 %v7846_v37, %s5642_s29  ;;  %3769 = vst.msk [vmem:[#allocation5 + $0x170] sm:$0xff] %vm3112_vm0, %v3689_v10 }
 0x3f0   : > { %3323 = vrot.lane.b32.xlu1 %v7848_v45, %s5642_s29  ;;  %v3306_v9 = vpop.permute.xlu0 %3305  ;;  %v3893_v38 = vld [vmem:[#allocation5 + $0x158] sm:$0xff] }
 0x3f1   : > { %v3047_v27 = vpop.permute.xlu1 %3046  ;;  %3385 = vst.msk [vmem:[#allocation5 + $0x188] sm:$0xff] %vm2726_vm14, %v3306_v9 }
 0x3f2   : > { %2678 = vrot.lane.b32.xlu0 %v7661_v61, %s5642_s29  ;;  %3128 = vst.msk [vmem:[#allocation5 + $0x168] sm:$0xff] %vm3112_vm0, %v3047_v27 }
 0x3f4   : > { %2680 = vrot.lane.b32.xlu1 %v7698_v47, %s5642_s29  ;;  %v2663_v36 = vpop.permute.xlu0 %2662  ;;  %v3892_v47 = vld [vmem:[#allocation5 + $0x150] sm:$0xff] }
 0x3f5   : > { %v3308_v24 = vpop.permute.xlu1 %3307  ;;  %v3896_v30 = vld [vmem:[#allocation5 + $0x170] sm:$0xff]  ;;  %2743 = vst.msk [vmem:[#allocation5 + $0x180] sm:$0xff] %vm2726_vm14, %v2663_v36 }
 0x3f6   : > { %3514 = vrot.lane.b32.xlu0 %v7812_v43, %s5643_s8  ;;  %3386 = vst.msk [vmem:[#allocation5 + $0x1a0] sm:$0xff] %vm2726_vm14, %v3308_v24  ;;  %v3968_v44 = vpack.c.bf16 %v3896_v30, %v3893_v38 }
 0x3f8   : > { %3516 = vrot.lane.b32.xlu1 %v7850_v48, %s5643_s8  ;;  %4281 = vmatprep.mubr.bf16.mxu1 %v3968_v44  ;;  %v3499_v42 = vpop.permute.xlu0 %3498 }
 0x3f9   : > { %v2665_v61 = vpop.permute.xlu1 %2664  ;;  %v3895_v31 = vld [vmem:[#allocation5 + $0x168] sm:$0xff]  ;;  %3578 = vst.msk [vmem:[#allocation5 + $0x188] sm:$0xff] %vm2919_vm15, %v3499_v42 }
 0x3fa   : > { %2871 = vrot.lane.b32.xlu0 %v7672_v18, %s5643_s8  ;;  %2744 = vst.msk [vmem:[#allocation5 + $0x198] sm:$0xff] %vm2726_vm14, %v2665_v61  ;;  %v3967_v53 = vpack.c.bf16 %v3895_v31, %v3892_v47 }
 0x3fc   : > { %2873 = vrot.lane.b32.xlu1 %v7674_v54, %s5643_s8  ;;  %4282 = vmatmul.mubr.bf16.gmra.mrb[44].mxu1 %v3967_v53  ;;  %v2856_v11 = vpop.permute.xlu0 %2855 }
 0x3fd   : > { %v3501_v28 = vpop.permute.xlu1 %3500  ;;  %2936 = vst.msk [vmem:[#allocation5 + $0x180] sm:$0xff] %vm2919_vm15, %v2856_v11 }
 0x3fe   : > { %3706 = vrot.lane.b32.xlu0 %v7814_v35, %s5644_s30  ;;  %3579 = vst.msk [vmem:[#allocation5 + $0x1a0] sm:$0xff] %vm2919_vm15, %v3501_v28 }
 0x3ff   : > { %v7910_v33 = vpop.f32.mrb[24].mxu0 }
 0x400   : > { %v7912_v46 = vpop.f32.mrb[25].mxu0  ;;  %3708 = vrot.lane.b32.xlu1 %v7860_v57, %s5644_s30  ;;  %v3691_v8 = vpop.permute.xlu0 %3690 }
 0x401   : > { %v7917_v18 = vpop.f32.mrb[26].mxu0  ;;  %v2858_v54 = vpop.permute.xlu1 %2857  ;;  %3770 = vst.msk [vmem:[#allocation5 + $0x188] sm:$0xff] %vm3112_vm0, %v3691_v8 }
 0x402   : > { %v7920_v20 = vpop.f32.mrb[27].mxu0  ;;  %3064 = vrot.lane.b32.xlu0 %v7816_v34, %s5644_s30  ;;  %2937 = vst.msk [vmem:[#allocation5 + $0x198] sm:$0xff] %vm2919_vm15, %v2858_v54 }
 0x404   : > { %3066 = vrot.lane.b32.xlu1 %v7835_v13, %s5644_s30  ;;  %v3049_v0 = vpop.permute.xlu0 %3048 }
 0x405   : > { %v3693_v40 = vpop.permute.xlu1 %3692  ;;  %3129 = vst.msk [vmem:[#allocation5 + $0x180] sm:$0xff] %vm3112_vm0, %v3049_v0 }
 0x406   : > { %3325 = vrot.lane.b32.xlu0 %v7826_v63, %s5642_s29  ;;  %3771 = vst.msk [vmem:[#allocation5 + $0x1a0] sm:$0xff] %vm3112_vm0, %v3693_v40 }
 0x408   : > { %3327 = vrot.lane.b32.xlu1 %v7828_v29, %s5642_s29  ;;  %v3310_v50 = vpop.permute.xlu0 %3309  ;;  %v3899_v60 = vld [vmem:[#allocation5 + $0x188] sm:$0xff] }
 0x409   : > { %v3051_v34 = vpop.permute.xlu1 %3050  ;;  %3387 = vst.msk [vmem:[#allocation5 + $0x1b8] sm:$0xff] %vm2726_vm14, %v3310_v50 }
 0x40a   : > { %2682 = vrot.lane.b32.xlu0 %v7818_v56, %s5642_s29  ;;  %3130 = vst.msk [vmem:[#allocation5 + $0x198] sm:$0xff] %vm3112_vm0, %v3051_v34 }
 0x40c   : > { %2684 = vrot.lane.b32.xlu1 %v7837_v1, %s5642_s29  ;;  %v2667_v2 = vpop.permute.xlu0 %2666  ;;  %v3898_v14 = vld [vmem:[#allocation5 + $0x180] sm:$0xff] }
 0x40d   : > { %v3312_v58 = vpop.permute.xlu1 %3311  ;;  %v3902_v13 = vld [vmem:[#allocation5 + $0x1a0] sm:$0xff]  ;;  %2745 = vst.msk [vmem:[#allocation5 + $0x1b0] sm:$0xff] %vm2726_vm14, %v2667_v2 }
 0x40e   : > { %3388 = vst.msk [vmem:[#allocation5 + $0x1d0] sm:$0xff] %vm2726_vm14, %v3312_v58  ;;  %v3971_v5 = vpack.c.bf16 %v3902_v13, %v3899_v60 }
 0x40f   : > { %v5245_v22 = vpop.f32.mrb[12].mxu1 }
 0x410   : > { %v2375_v56 = vadd.f32 %v7796_v41, %v5245_v22  ;;  %v2366_v6 = vpop.f32.mrb[13].mxu1  ;;  %4289 = vmatprep.mubr.bf16.mxu1 %v3971_v5  ;;  %v3503_v16 = vpop.permute.xlu0 %3502  ;;  %v8016_v5 = vld [vmem:[#allocation11] ss:$0 sm:$0xff] }
 0x411   : > { %v2367_v52 = vadd.f32 %v7796_v41, %v2366_v6  ;;  %v5246_v7 = vpop.f32.mrb[14].mxu1  ;;  %v2669_v39 = vpop.permute.xlu1 %2668  ;;  %v3901_v1 = vld [vmem:[#allocation5 + $0x198] sm:$0xff]  ;;  %3580 = vst.msk [vmem:[#allocation5 + $0x1b8] sm:$0xff] %vm2919_vm15, %v3503_v16 }
 0x412   : > { %v2411_v26 = vmax.f32 %v2375_v56, 0.0  ;;  %v2378_v12 = vadd.f32 %v7796_v41, %v5246_v7  ;;  %2746 = vst.msk [vmem:[#allocation5 + $0x1c8] sm:$0xff] %vm2726_vm14, %v2669_v39  ;;  %v2369_v32 = vpop.f32.mrb[15].mxu1  ;;  %v3970_v23 = vpack.c.bf16 %v3901_v1, %v3898_v14 }
 0x413   : > { %v2409_v62 = vmax.f32 %v2367_v52, 0.0  ;;  %v2370_v15 = vadd.f32 %v7796_v41, %v2369_v32 }
 0x414   : > { %2500 = vst.msk [vmem:[#allocation3 + $0x181] sm:$0xff] %vm2413_vm12, %v2411_v26  ;;  %v2412_v19 = vmax.f32 %v2378_v12, 0.0  ;;  %4290 = vmatmul.mubr.bf16.gmra.mrb[48].mxu1 %v3970_v23  ;;  %v2860_v27 = vpop.permute.xlu0 %2859 }
 0x415   : > { %2498 = vst.msk [vmem:[#allocation3 + $0x169] sm:$0xff] %vm2413_vm12, %v2409_v62  ;;  %v2410_v10 = vmax.f32 %v2370_v15, 0.0  ;;  %v3505_v59 = vpop.permute.xlu1 %3504  ;;  %v3945_v62 = vld [vmem:[#allocation5 + $0x2f8] sm:$0xff] }
 0x416   : > { %2501 = vst.msk [vmem:[#allocation3 + $0x189] sm:$0xff] %vm2413_vm12, %v2412_v19 }
 0x417   : > { %3581 = vst.msk [vmem:[#allocation5 + $0x1d0] sm:$0xff] %vm2919_vm15, %v3505_v59  ;;  %2938 = vst.msk [vmem:[#allocation5 + $0x1b0] sm:$0xff] %vm2919_vm15, %v2860_v27 }
 0x418   : > { %2499 = vst.msk [vmem:[#allocation3 + $0x171] sm:$0xff] %vm2413_vm12, %v2410_v10  ;;  %v3695_v9 = vpop.permute.xlu0 %3694 }
 0x419   : > { %v2862_v41 = vpop.permute.xlu1 %2861  ;;  %3772 = vst.msk [vmem:[#allocation5 + $0x1b8] sm:$0xff] %vm3112_vm0, %v3695_v9 }
 0x41a   : > { %2939 = vst.msk [vmem:[#allocation5 + $0x1c8] sm:$0xff] %vm2919_vm15, %v2862_v41 }
 0x41b   : > { %v7958_v24 = vld [vmem:[#allocation3 + $0x181] sm:$0xff] }
 0x41c   : > { %v7960_v38 = vld [vmem:[#allocation3 + $0x168] sm:$0xff]  ;;  %3207 = vst.msk [vmem:[#allocation5 + $0x2d8] sm:$0xff] %vm2413_vm12, %v7958_v24  ;;  %v3053_v47 = vpop.permute.xlu0 %3052 }
 0x41d   : > { %v7962_v30 = vld [vmem:[#allocation3 + $0x169] sm:$0xff]  ;;  %v3697_v36 = vpop.permute.xlu1 %3696  ;;  %3518 = vrot.lane.b32.xlu0 %v7960_v38, %s5643_s8  ;;  %2564 = vst.msk [vmem:[#allocation5 + $0x2d0] sm:$0xff] %vm2413_vm12, %v7960_v38 }
 0x41e   : > { %v7968_v44 = vld [vmem:[#allocation3 + $0x182] sm:$0xff]  ;;  %v7970_v61 = vld [vmem:[#allocation3 + $0x18a] sm:$0xff]  ;;  %3205 = vst.msk [vmem:[#allocation5 + $0x2a8] sm:$0xff] %vm2413_vm12, %v7962_v30 }
 0x41f   : > { %3773 = vst.msk [vmem:[#allocation5 + $0x1d0] sm:$0xff] %vm3112_vm0, %v3697_v36  ;;  %v7977_v31 = vld [vmem:[#allocation3 + $0x170] sm:$0xff]  ;;  %3131 = vst.msk [vmem:[#allocation5 + $0x1b0] sm:$0xff] %vm3112_vm0, %v3053_v47 }
 0x420   : > { %v7979_v42 = vld [vmem:[#allocation3 + $0x171] sm:$0xff]  ;;  %3846 = vst.msk [vmem:[#allocation5 + $0x2b0] sm:$0xff] %vm2413_vm12, %v7968_v44  ;;  %3847 = vst.msk [vmem:[#allocation5 + $0x2c8] sm:$0xff] %vm2413_vm12, %v7970_v61  ;;  %3520 = vrot.lane.b32.xlu1 %v7977_v31, %s5643_s8  ;;  %v7994_v11 = vld [vmem:[#allocation3 + $0x189] sm:$0xff]  ;;  %v3314_v8 = vpop.permute.xlu0 %3313 }
 0x421   : > { %v7981_v53 = vld [vmem:[#allocation3 + $0x16a] sm:$0xff]  ;;  %v7990_v28 = vld [vmem:[#allocation3 + $0x172] sm:$0xff]  ;;  %3206 = vst.msk [vmem:[#allocation5 + $0x2c0] sm:$0xff] %vm2413_vm12, %v7979_v42  ;;  %2565 = vst.msk [vmem:[#allocation5 + $0x2e8] sm:$0xff] %vm2413_vm12, %v7977_v31  ;;  %v3055_v54 = vpop.permute.xlu1 %3054  ;;  %2875 = vrot.lane.b32.xlu0 %v7846_v37, %s5643_s8 }
 0x422   : > { %3844 = vst.msk [vmem:[#allocation5 + $0x280] sm:$0xff] %vm2413_vm12, %v7981_v53  ;;  %3845 = vst.msk [vmem:[#allocation5 + $0x298] sm:$0xff] %vm2413_vm12, %v7990_v28  ;;  %v3905_v0 = vld [vmem:[#allocation5 + $0x1b8] sm:$0xff] }
 0x423   : > { %3208 = vst.msk [vmem:[#allocation5 + $0x2f0] sm:$0xff] %vm2413_vm12, %v7994_v11 }
 0x424   : > { %3132 = vst.msk [vmem:[#allocation5 + $0x1c8] sm:$0xff] %vm3112_vm0, %v3055_v54  ;;  %2877 = vrot.lane.b32.xlu1 %v7848_v45, %s5643_s8  ;;  %v2671_v50 = vpop.permute.xlu0 %2670 }
 0x425   : > { %3389 = vst.msk [vmem:[#allocation5 + $0x1e8] sm:$0xff] %vm2726_vm14, %v3314_v8  ;;  %v3316_v40 = vpop.permute.xlu1 %3315  ;;  %3710 = vrot.lane.b32.xlu0 %v7962_v30, %s5644_s30  ;;  %2747 = vst.msk [vmem:[#allocation5 + $0x1e0] sm:$0xff] %vm2726_vm14, %v2671_v50  ;;  %v8049_v8 = vld [vmem:[#allocation3 + $0x188] sm:$0xff] }
 0x426   : > { %v3908_v34 = vld [vmem:[#allocation5 + $0x1d0] sm:$0xff]  ;;  %3390 = vst.msk [vmem:[#allocation5 + $0x200] sm:$0xff] %vm2726_vm14, %v3316_v40 }
 0x427   : > { %v3974_v58 = vpack.c.bf16 %v3908_v34, %v3905_v0  ;;  %v3936_v37 = vld [vmem:[#allocation5 + $0x2b0] sm:$0xff]  ;;  %v3939_v13 = vld [vmem:[#allocation5 + $0x2c8] sm:$0xff]  ;;  %v5077_v2 = vpop.f32.mrb[16].mxu1 }
 0x428   : > { %3712 = vrot.lane.b32.xlu1 %v7979_v42, %s5644_s30  ;;  %v5078_v22 = vpop.f32.mrb[17].mxu1  ;;  %v3990_v39 = vpack.c.bf16 %v3939_v13, %v3936_v37  ;;  %v3904_v14 = vld [vmem:[#allocation5 + $0x1b0] sm:$0xff]  ;;  %v3507_v12 = vpop.permute.xlu0 %3506 }
 0x429   : > { %v3930_v60 = vld [vmem:[#allocation5 + $0x280] sm:$0xff]  ;;  %v3933_v45 = vld [vmem:[#allocation5 + $0x298] sm:$0xff]  ;;  %4297 = vmatprep.mubr.bf16.mxu1 %v3974_v58  ;;  %v5079_v6 = vadd.f32 %v5078_v22, %v5077_v2  ;;  %v2673_v52 = vpop.permute.xlu1 %2672  ;;  %v5080_v7 = vpop.f32.mrb[18].mxu1  ;;  %3068 = vrot.lane.b32.xlu0 %v7812_v43, %s5644_s30  ;;  %3582 = vst.msk [vmem:[#allocation5 + $0x1e8] sm:$0xff] %vm2919_vm15, %v3507_v12 }
 0x42a   : > { %v3987_v56 = vpack.c.bf16 %v3933_v45, %v3930_v60  ;;  %2748 = vst.msk [vmem:[#allocation5 + $0x1f8] sm:$0xff] %vm2726_vm14, %v2673_v52  ;;  %v5081_v26 = vpop.f32.mrb[19].mxu1  ;;  %v3942_v43 = vld [vmem:[#allocation5 + $0x2e0] sm:$0xff] }
 0x42b   : > { %v3907_v1 = vld [vmem:[#allocation5 + $0x1c8] sm:$0xff]  ;;  %v4228_v16 = vadd.f32 %v5079_v6, %v8016_v5  ;;  %v5082_v23 = vadd.f32 %v5081_v26, %v5080_v7  ;;  %v3993_v27 = vpack.c.bf16 %v3945_v62, %v3942_v43 }
 0x42c   : > { %5276 = vmatmul.mubr.msk.bf16.gmra.mrb[40].mxu0 %vm2413_vm12, %v3987_v56  ;;  %v3973_v32 = vpack.c.bf16 %v3907_v1, %v3904_v14  ;;  %3070 = vrot.lane.b32.xlu1 %v7850_v48, %s5644_s30  ;;  %v2864_v59 = vpop.permute.xlu0 %2863 }
 0x42d   : > { %5279 = vmatprep.mubr.msk.bf16.mxu0 %vm2413_vm12, %v3990_v39  ;;  %v4389_v15 = vadd.f32 %v7601_v49, %v4228_v16  ;;  %v4231_v19 = vadd.f32 %v5082_v23, %v8016_v5  ;;  %v3509_v10 = vpop.permute.xlu1 %3508  ;;  %3329 = vrot.lane.b32.xlu0 %v7981_v53, %s5642_s29  ;;  %2940 = vst.msk [vmem:[#allocation5 + $0x1e0] sm:$0xff] %vm2919_vm15, %v2864_v59  ;;  %v3432_v16 = vld [vmem:[#allocation3 + $0x198] sm:$0xff] }
 0x42e   : > { %4298 = vmatmul.mubr.bf16.gmra.mrb[52].mxu1 %v3973_v32  ;;  %3583 = vst.msk [vmem:[#allocation5 + $0x200] sm:$0xff] %vm2919_vm15, %v3509_v10 }
 0x42f   : > { %v4392_v41 = vadd.f32 %v7607_v25, %v4231_v19  ;;  %v4515_v48 = vmax.f32 %v4389_v15, 0.0  ;;  %v8043_v25 = vld [vmem:[#allocation3 + $0x180] sm:$0xff] }
 0x430   : > { %3331 = vrot.lane.b32.xlu1 %v7990_v28, %s5642_s29  ;;  %v3699_v36 = vpop.permute.xlu0 %3698 }
 0x431   : > { %v4516_v9 = vmax.f32 %v4392_v41, 0.0  ;;  %v2866_v49 = vpop.permute.xlu1 %2865  ;;  %2686 = vrot.lane.b32.xlu0 %v7814_v35, %s5642_s29  ;;  %3774 = vst.msk [vmem:[#allocation5 + $0x1e8] sm:$0xff] %vm3112_vm0, %v3699_v36 }
 0x432   : > { %2941 = vst.msk [vmem:[#allocation5 + $0x1f8] sm:$0xff] %vm2919_vm15, %v2866_v49 }
 0x433   : > { %v4547_v47 = vpack.c.bf16 %v4516_v9, %v4515_v48 }
 0x434   : > { %5280 = vmatmul.mubr.msk.bf16.gmra.mrb[44].mxu0 %vm2413_vm12, %v3993_v27  ;;  %2688 = vrot.lane.b32.xlu1 %v7860_v57, %s5642_s29  ;;  %v3057_v35 = vpop.permute.xlu0 %3056 }
 0x435   : > { %v3701_v54 = vpop.permute.xlu1 %3700  ;;  %5287 = vmatprep.mubr.msk.bf16.mxu0 %vm2413_vm12, %v4547_v47  ;;  %3522 = vrot.lane.b32.xlu0 %v8043_v25, %s5643_s8  ;;  %3133 = vst.msk [vmem:[#allocation5 + $0x1e0] sm:$0xff] %vm3112_vm0, %v3057_v35 }
 0x436   : > { %3775 = vst.msk [vmem:[#allocation5 + $0x200] sm:$0xff] %vm3112_vm0, %v3701_v54 }
 0x438   : > { %3524 = vrot.lane.b32.xlu1 %v8049_v8, %s5643_s8  ;;  %v3318_v57 = vpop.permute.xlu0 %3317  ;;  %v3911_v58 = vld [vmem:[#allocation5 + $0x1e8] sm:$0xff] }
 0x439   : > { %v3059_v40 = vpop.permute.xlu1 %3058  ;;  %2879 = vrot.lane.b32.xlu0 %v7826_v63, %s5643_s8  ;;  %3391 = vst.msk [vmem:[#allocation5 + $0x218] sm:$0xff] %vm2726_vm14, %v3318_v57 }
 0x43a   : > { %3134 = vst.msk [vmem:[#allocation5 + $0x1f8] sm:$0xff] %vm3112_vm0, %v3059_v40 }
 0x43c   : > { %2881 = vrot.lane.b32.xlu1 %v7828_v29, %s5643_s8  ;;  %v2675_v37 = vpop.permute.xlu0 %2674  ;;  %v3910_v6 = vld [vmem:[#allocation5 + $0x1e0] sm:$0xff] }
 0x43d   : > { %v3320_v50 = vpop.permute.xlu1 %3319  ;;  %3714 = vrot.lane.b32.xlu0 %v7958_v24, %s5644_s30  ;;  %v3914_v60 = vld [vmem:[#allocation5 + $0x200] sm:$0xff]  ;;  %2749 = vst.msk [vmem:[#allocation5 + $0x210] sm:$0xff] %vm2726_vm14, %v2675_v37 }
 0x43e   : > { %3392 = vst.msk [vmem:[#allocation5 + $0x230] sm:$0xff] %vm2726_vm14, %v3320_v50  ;;  %v3977_v13 = vpack.c.bf16 %v3914_v60, %v3911_v58 }
 0x43f   : > { %v8060_v0 = vpop.f32.mrb[28].mxu0 }
 0x440   : > { %v8062_v34 = vpop.f32.mrb[29].mxu0  ;;  %3716 = vrot.lane.b32.xlu1 %v7994_v11, %s5644_s30  ;;  %4305 = vmatprep.mubr.bf16.mxu1 %v3977_v13 }
 0x441   : > { %v8067_v63 = vpop.f32.mrb[30].mxu0  ;;  %v5083_v29 = vpop.f32.mrb[20].mxu1  ;;  %3072 = vrot.lane.b32.xlu0 %v7960_v38, %s5644_s30  ;;  %v3913_v52 = vld [vmem:[#allocation5 + $0x1f8] sm:$0xff] }
 0x442   : > { %v8070_v2 = vpop.f32.mrb[31].mxu0  ;;  %v5084_v45 = vpop.f32.mrb[21].mxu1  ;;  %v3976_v39 = vpack.c.bf16 %v3913_v52, %v3910_v6 }
 0x443   : > { %v5085_v22 = vadd.f32 %v5084_v45, %v5083_v29  ;;  %v2677_v24 = vpop.permute.xlu1 %2676  ;;  %v5086_v56 = vpop.f32.mrb[22].mxu1 }
 0x444   : > { %2750 = vst.msk [vmem:[#allocation5 + $0x228] sm:$0xff] %vm2726_vm14, %v2677_v24  ;;  %v5087_v7 = vpop.f32.mrb[23].mxu1  ;;  %3074 = vrot.lane.b32.xlu1 %v7977_v31, %s5644_s30  ;;  %4306 = vmatmul.mubr.bf16.gmra.mrb[56].mxu1 %v3976_v39 }
 0x445   : > { %v4236_v14 = vadd.f32 %v5085_v22, %v8016_v5  ;;  %v5088_v1 = vadd.f32 %v5087_v7, %v5086_v56  ;;  %3333 = vrot.lane.b32.xlu0 %v7968_v44, %s5642_s29 }
 0x447   : > { %v4397_v11 = vadd.f32 %v7597_v3, %v4236_v14  ;;  %v4239_v26 = vadd.f32 %v5088_v1, %v8016_v5  ;;  %v3433_v3 = vld [vmem:[#allocation3 + $0x1a0] sm:$0xff] }
 0x448   : > { %3335 = vrot.lane.b32.xlu1 %v7970_v61, %s5642_s29 }
 0x449   : > { %v4400_v38 = vadd.f32 %v7604_v17, %v4239_v26  ;;  %v4517_v12 = vmax.f32 %v4397_v11, 0.0  ;;  %2690 = vrot.lane.b32.xlu0 %v7962_v30, %s5642_s29  ;;  %v3624_v30 = vld [vmem:[#allocation3 + $0x199] sm:$0xff] }
 0x44b   : > { %v4518_v32 = vmax.f32 %v4400_v38, 0.0 }
 0x44c   : > { %2692 = vrot.lane.b32.xlu1 %v7979_v42, %s5642_s29  ;;  %v3625_v42 = vld [vmem:[#allocation3 + $0x1a1] sm:$0xff] }
 0x44d   : > { %v4548_v31 = vpack.c.bf16 %v4518_v32, %v4517_v12  ;;  %3526 = vrot.lane.b32.xlu0 %v3432_v16, %s5643_s8 }
 0x44f   : > { %5288 = vmatmul.mubr.msk.bf16.vlgmr.msra.gmra.mrb[48].mxu0 %vm2413_vm12, %v4548_v31 }
 0x450   : > { %3528 = vrot.lane.b32.xlu1 %v3433_v3, %s5643_s8  ;;  %v3511_v17 = vpop.permute.xlu0 %3510 }
 0x451   : > { %3584 = vst.msk [vmem:[#allocation5 + $0x218] sm:$0xff] %vm2919_vm15, %v3511_v17  ;;  %2883 = vrot.lane.b32.xlu0 %v7981_v53, %s5643_s8 }
 0x452   : > { %v3513_v44 = vpop.permute.xlu1 %3512 }
 0x453   : > { %3585 = vst.msk [vmem:[#allocation5 + $0x230] sm:$0xff] %vm2919_vm15, %v3513_v44 }
 0x454   : > { %2885 = vrot.lane.b32.xlu1 %v7990_v28, %s5643_s8  ;;  %v2868_v61 = vpop.permute.xlu0 %2867 }
 0x455   : > { %2942 = vst.msk [vmem:[#allocation5 + $0x210] sm:$0xff] %vm2919_vm15, %v2868_v61  ;;  %3718 = vrot.lane.b32.xlu0 %v3624_v30, %s5644_s30 }
 0x456   : > { %v2870_v23 = vpop.permute.xlu1 %2869 }
 0x457   : > { %2943 = vst.msk [vmem:[#allocation5 + $0x228] sm:$0xff] %vm2919_vm15, %v2870_v23  ;;  %v5089_v62 = vpop.f32.mrb[24].mxu1 }
 0x458   : > { %3720 = vrot.lane.b32.xlu1 %v3625_v42, %s5644_s30  ;;  %v3703_v43 = vpop.permute.xlu0 %3702  ;;  %v5090_v53 = vpop.f32.mrb[25].mxu1 }
 0x459   : > { %3776 = vst.msk [vmem:[#allocation5 + $0x218] sm:$0xff] %vm3112_vm0, %v3703_v43  ;;  %v5091_v15 = vadd.f32 %v5090_v53, %v5089_v62  ;;  %3076 = vrot.lane.b32.xlu0 %v8043_v25, %s5644_s30  ;;  %v5092_v28 = vpop.f32.mrb[26].mxu1 }
 0x45a   : > { %v3705_v19 = vpop.permute.xlu1 %3704  ;;  %v5093_v10 = vpop.f32.mrb[27].mxu1 }
 0x45b   : > { %3777 = vst.msk [vmem:[#allocation5 + $0x230] sm:$0xff] %vm3112_vm0, %v3705_v19  ;;  %v4244_v59 = vadd.f32 %v5091_v15, %v8016_v5  ;;  %v5094_v27 = vadd.f32 %v5093_v10, %v5092_v28 }
 0x45c   : > { %3078 = vrot.lane.b32.xlu1 %v8049_v8, %s5644_s30  ;;  %v3061_v41 = vpop.permute.xlu0 %3060 }
 0x45d   : > { %3135 = vst.msk [vmem:[#allocation5 + $0x210] sm:$0xff] %vm3112_vm0, %v3061_v41  ;;  %v4405_v48 = vadd.f32 %v7762_v21, %v4244_v59  ;;  %v4247_v9 = vadd.f32 %v5094_v27, %v8016_v5 }
 0x45e   : > { %v3063_v49 = vpop.permute.xlu1 %3062 }
 0x45f   : > { %3136 = vst.msk [vmem:[#allocation5 + $0x228] sm:$0xff] %vm3112_vm0, %v3063_v49  ;;  %v4408_v36 = vadd.f32 %v7768_v51, %v4247_v9  ;;  %v4519_v25 = vmax.f32 %v4405_v48, 0.0 }
 0x460   : > { %v3322_v47 = vpop.permute.xlu0 %3321  ;;  %v3917_v40 = vld [vmem:[#allocation5 + $0x218] sm:$0xff] }
 0x461   : > { %3393 = vst.msk [vmem:[#allocation5 + $0x248] sm:$0xff] %vm2726_vm14, %v3322_v47  ;;  %v4520_v54 = vmax.f32 %v4408_v36, 0.0 }
 0x462   : > { %v3324_v35 = vpop.permute.xlu1 %3323  ;;  %v3920_v8 = vld [vmem:[#allocation5 + $0x230] sm:$0xff] }
 0x463   : > { %3394 = vst.msk [vmem:[#allocation5 + $0x260] sm:$0xff] %vm2726_vm14, %v3324_v35  ;;  %v3980_v57 = vpack.c.bf16 %v3920_v8, %v3917_v40  ;;  %v4549_v50 = vpack.c.bf16 %v4520_v54, %v4519_v25 }
 0x464   : > { %v2679_v21 = vpop.permute.xlu0 %2678  ;;  %v3916_v51 = vld [vmem:[#allocation5 + $0x210] sm:$0xff] }
 0x465   : > { %2751 = vst.msk [vmem:[#allocation5 + $0x240] sm:$0xff] %vm2726_vm14, %v2679_v21  ;;  %4313 = vmatprep.mubr.bf16.mxu1 %v3980_v57  ;;  %5291 = vmatprep.mubr.msk.bf16.mxu0 %vm2413_vm12, %v4549_v50 }
 0x466   : > { %v2681_v58 = vpop.permute.xlu1 %2680  ;;  %v3919_v60 = vld [vmem:[#allocation5 + $0x228] sm:$0xff] }
 0x467   : > { %2752 = vst.msk [vmem:[#allocation5 + $0x258] sm:$0xff] %vm2726_vm14, %v2681_v58  ;;  %v3979_v37 = vpack.c.bf16 %v3919_v60, %v3916_v51 }
 0x468   : > { %v3515_v13 = vpop.permute.xlu0 %3514 }
 0x469   : > { %3586 = vst.msk [vmem:[#allocation5 + $0x248] sm:$0xff] %vm2919_vm15, %v3515_v13  ;;  %4314 = vmatmul.mubr.bf16.gmra.mrb[60].mxu1 %v3979_v37 }
 0x46a   : > { %v3517_v29 = vpop.permute.xlu1 %3516 }
 0x46b   : > { %3587 = vst.msk [vmem:[#allocation5 + $0x260] sm:$0xff] %vm2919_vm15, %v3517_v29 }
 0x46c   : > { %v2872_v45 = vpop.permute.xlu0 %2871 }
 0x46d   : > { %2944 = vst.msk [vmem:[#allocation5 + $0x240] sm:$0xff] %vm2919_vm15, %v2872_v45 }
 0x46e   : > { %v2874_v22 = vpop.permute.xlu1 %2873 }
 0x46f   : > { %2945 = vst.msk [vmem:[#allocation5 + $0x258] sm:$0xff] %vm2919_vm15, %v2874_v22  ;;  %v5095_v56 = vpop.f32.mrb[28].mxu1 }
 0x470   : > { %v3707_v24 = vpop.permute.xlu0 %3706  ;;  %v5096_v6 = vpop.f32.mrb[29].mxu1 }
 0x471   : > { %3778 = vst.msk [vmem:[#allocation5 + $0x248] sm:$0xff] %vm3112_vm0, %v3707_v24  ;;  %v5097_v52 = vadd.f32 %v5096_v6, %v5095_v56  ;;  %v5098_v39 = vpop.f32.mrb[30].mxu1 }
 0x472   : > { %v3709_v7 = vpop.permute.xlu1 %3708  ;;  %v5099_v14 = vpop.f32.mrb[31].mxu1 }
 0x473   : > { %3779 = vst.msk [vmem:[#allocation5 + $0x260] sm:$0xff] %vm3112_vm0, %v3709_v7  ;;  %v4252_v1 = vadd.f32 %v5097_v52, %v8016_v5  ;;  %v5100_v11 = vadd.f32 %v5099_v14, %v5098_v39 }
 0x474   : > { %v3065_v26 = vpop.permute.xlu0 %3064 }
 0x475   : > { %3137 = vst.msk [vmem:[#allocation5 + $0x240] sm:$0xff] %vm3112_vm0, %v3065_v26  ;;  %v4413_v38 = vadd.f32 %v7758_v55, %v4252_v1  ;;  %v4255_v12 = vadd.f32 %v5100_v11, %v8016_v5 }
 0x476   : > { %v3067_v32 = vpop.permute.xlu1 %3066 }
 0x477   : > { %3138 = vst.msk [vmem:[#allocation5 + $0x258] sm:$0xff] %vm3112_vm0, %v3067_v32  ;;  %v4416_v16 = vadd.f32 %v7765_v4, %v4255_v12  ;;  %v4521_v3 = vmax.f32 %v4413_v38, 0.0 }
 0x478   : > { %v3326_v31 = vpop.permute.xlu0 %3325  ;;  %v3923_v30 = vld [vmem:[#allocation5 + $0x248] sm:$0xff] }
 0x479   : > { %3395 = vst.msk [vmem:[#allocation5 + $0x278] sm:$0xff] %vm2726_vm14, %v3326_v31  ;;  %v4522_v17 = vmax.f32 %v4416_v16, 0.0 }
 0x47a   : > { %v3328_v44 = vpop.permute.xlu1 %3327  ;;  %v3926_v61 = vld [vmem:[#allocation5 + $0x260] sm:$0xff] }
 0x47b   : > { %3396 = vst.msk [vmem:[#allocation5 + $0x290] sm:$0xff] %vm2726_vm14, %v3328_v44  ;;  %v3983_v42 = vpack.c.bf16 %v3926_v61, %v3923_v30  ;;  %v4550_v23 = vpack.c.bf16 %v4522_v17, %v4521_v3 }
 0x47c   : > { %v2683_v55 = vpop.permute.xlu0 %2682  ;;  %v3922_v53 = vld [vmem:[#allocation5 + $0x240] sm:$0xff] }
 0x47d   : > { %2753 = vst.msk [vmem:[#allocation5 + $0x270] sm:$0xff] %vm2726_vm14, %v2683_v55  ;;  %4321 = vmatprep.mubr.bf16.mxu1 %v3983_v42  ;;  %5292 = vmatmul.mubr.msk.bf16.gmra.mrb[52].mxu0 %vm2413_vm12, %v4550_v23 }
 0x47e   : > { %v8136_v43 = vpop.f32.mrb[32].mxu0  ;;  %v2685_v4 = vpop.permute.xlu1 %2684  ;;  %v3925_v15 = vld [vmem:[#allocation5 + $0x258] sm:$0xff] }
 0x47f   : > { %v8138_v62 = vpop.f32.mrb[33].mxu0  ;;  %2754 = vst.msk [vmem:[#allocation5 + $0x288] sm:$0xff] %vm2726_vm14, %v2685_v4  ;;  %v3982_v28 = vpack.c.bf16 %v3925_v15, %v3922_v53 }
 0x480   : > { %v8142_v19 = vpop.f32.mrb[34].mxu0 }
 0x481   : > { %v8144_v10 = vpop.f32.mrb[35].mxu0  ;;  %4322 = vmatmul.mubr.bf16.gmra.mrb[64].mxu1 %v3982_v28 }
 0x487   : > { %v5101_v59 = vpop.f32.mrb[32].mxu1 }
 0x488   : > { %v5102_v27 = vpop.f32.mrb[33].mxu1 }
 0x489   : > { %v5103_v41 = vadd.f32 %v5102_v27, %v5101_v59  ;;  %v5104_v48 = vpop.f32.mrb[34].mxu1 }
 0x48a   : > { %v5105_v9 = vpop.f32.mrb[35].mxu1 }
 0x48b   : > { %v4260_v49 = vadd.f32 %v5103_v41, %v8016_v5  ;;  %v5106_v36 = vadd.f32 %v5105_v9, %v5104_v48 }
 0x48d   : > { %v4421_v47 = vadd.f32 %v7912_v46, %v4260_v49  ;;  %v4263_v25 = vadd.f32 %v5106_v36, %v8016_v5 }
 0x48f   : > { %v4424_v54 = vadd.f32 %v7920_v20, %v4263_v25  ;;  %v3519_v35 = vpop.permute.xlu0 %3518  ;;  %v4523_v40 = vmax.f32 %v4421_v47, 0.0 }
 0x490   : > { %3588 = vst.msk [vmem:[#allocation5 + $0x278] sm:$0xff] %vm2919_vm15, %v3519_v35 }
 0x491   : > { %v4524_v8 = vmax.f32 %v4424_v54, 0.0 }
 0x492   : > { %v3521_v57 = vpop.permute.xlu1 %3520 }
 0x493   : > { %3589 = vst.msk [vmem:[#allocation5 + $0x290] sm:$0xff] %vm2919_vm15, %v3521_v57  ;;  %v4551_v50 = vpack.c.bf16 %v4524_v8, %v4523_v40  ;;  %v2876_v21 = vpop.permute.xlu0 %2875 }
 0x494   : > { %2946 = vst.msk [vmem:[#allocation5 + $0x270] sm:$0xff] %vm2919_vm15, %v2876_v21 }
 0x495   : > { %5295 = vmatprep.mubr.msk.bf16.mxu0 %vm2413_vm12, %v4551_v50 }
 0x496   : > { %v2878_v58 = vpop.permute.xlu1 %2877 }
 0x497   : > { %2947 = vst.msk [vmem:[#allocation5 + $0x288] sm:$0xff] %vm2919_vm15, %v2878_v58  ;;  %v3711_v46 = vpop.permute.xlu0 %3710 }
 0x498   : > { %3780 = vst.msk [vmem:[#allocation5 + $0x278] sm:$0xff] %vm3112_vm0, %v3711_v46 }
 0x49a   : > { %v3713_v20 = vpop.permute.xlu1 %3712 }
 0x49b   : > { %3781 = vst.msk [vmem:[#allocation5 + $0x290] sm:$0xff] %vm3112_vm0, %v3713_v20  ;;  %v3069_v51 = vpop.permute.xlu0 %3068 }
 0x49c   : > { %3139 = vst.msk [vmem:[#allocation5 + $0x270] sm:$0xff] %vm3112_vm0, %v3069_v51 }
 0x49e   : > { %v3071_v60 = vpop.permute.xlu1 %3070 }
 0x49f   : > { %3140 = vst.msk [vmem:[#allocation5 + $0x288] sm:$0xff] %vm3112_vm0, %v3071_v60  ;;  %v3330_v37 = vpop.permute.xlu0 %3329  ;;  %v5107_v13 = vpop.f32.mrb[36].mxu1  ;;  %v3929_v56 = vld [vmem:[#allocation5 + $0x278] sm:$0xff] }
 0x4a0   : > { %3397 = vst.msk [vmem:[#allocation5 + $0x2a8] sm:$0xff] %vm2726_vm14, %v3330_v37  ;;  %v5108_v29 = vpop.f32.mrb[37].mxu1 }
 0x4a1   : > { %v5109_v45 = vadd.f32 %v5108_v29, %v5107_v13  ;;  %v5110_v24 = vpop.f32.mrb[38].mxu1 }
 0x4a2   : > { %v3332_v22 = vpop.permute.xlu1 %3331  ;;  %v3932_v6 = vld [vmem:[#allocation5 + $0x290] sm:$0xff]  ;;  %v5111_v52 = vpop.f32.mrb[39].mxu1 }
 0x4a3   : > { %3398 = vst.msk [vmem:[#allocation5 + $0x2c0] sm:$0xff] %vm2726_vm14, %v3332_v22  ;;  %v3986_v7 = vpack.c.bf16 %v3932_v6, %v3929_v56  ;;  %v4268_v39 = vadd.f32 %v5109_v45, %v8016_v5  ;;  %v5112_v14 = vadd.f32 %v5111_v52, %v5110_v24  ;;  %v2687_v1 = vpop.permute.xlu0 %2686  ;;  %v3928_v12 = vld [vmem:[#allocation5 + $0x270] sm:$0xff] }
 0x4a4   : > { %2755 = vst.msk [vmem:[#allocation5 + $0x2a0] sm:$0xff] %vm2726_vm14, %v2687_v1 }
 0x4a5   : > { %4329 = vmatprep.mubr.bf16.mxu1 %v3986_v7  ;;  %v4429_v11 = vadd.f32 %v7910_v33, %v4268_v39  ;;  %v4271_v26 = vadd.f32 %v5112_v14, %v8016_v5 }
 0x4a6   : > { %v2689_v38 = vpop.permute.xlu1 %2688  ;;  %v3931_v32 = vld [vmem:[#allocation5 + $0x288] sm:$0xff] }
 0x4a7   : > { %2756 = vst.msk [vmem:[#allocation5 + $0x2b8] sm:$0xff] %vm2726_vm14, %v2689_v38  ;;  %v3985_v16 = vpack.c.bf16 %v3931_v32, %v3928_v12  ;;  %v4432_v31 = vadd.f32 %v7917_v18, %v4271_v26  ;;  %v3523_v3 = vpop.permute.xlu0 %3522  ;;  %v4525_v17 = vmax.f32 %v4429_v11, 0.0 }
 0x4a8   : > { %3590 = vst.msk [vmem:[#allocation5 + $0x2a8] sm:$0xff] %vm2919_vm15, %v3523_v3 }
 0x4a9   : > { %4330 = vmatmul.mubr.bf16.gmra.mrb[68].mxu1 %v3985_v16  ;;  %v4526_v44 = vmax.f32 %v4432_v31, 0.0 }
 0x4aa   : > { %v3525_v30 = vpop.permute.xlu1 %3524 }
 0x4ab   : > { %3591 = vst.msk [vmem:[#allocation5 + $0x2c0] sm:$0xff] %vm2919_vm15, %v3525_v30  ;;  %v4552_v33 = vpack.c.bf16 %v4526_v44, %v4525_v17  ;;  %v2880_v61 = vpop.permute.xlu0 %2879 }
 0x4ac   : > { %2948 = vst.msk [vmem:[#allocation5 + $0x2a0] sm:$0xff] %vm2919_vm15, %v2880_v61 }
 0x4ad   : > { %5296 = vmatmul.mubr.msk.bf16.gmra.mrb[56].mxu0 %vm2413_vm12, %v4552_v33 }
 0x4ae   : > { %v2882_v42 = vpop.permute.xlu1 %2881 }
 0x4af   : > { %2949 = vst.msk [vmem:[#allocation5 + $0x2b8] sm:$0xff] %vm2919_vm15, %v2882_v42  ;;  %v3715_v23 = vpop.permute.xlu0 %3714 }
 0x4b0   : > { %3782 = vst.msk [vmem:[#allocation5 + $0x2a8] sm:$0xff] %vm3112_vm0, %v3715_v23 }
 0x4b2   : > { %v3717_v18 = vpop.permute.xlu1 %3716 }
 0x4b3   : > { %3783 = vst.msk [vmem:[#allocation5 + $0x2c0] sm:$0xff] %vm3112_vm0, %v3717_v18  ;;  %v3073_v55 = vpop.permute.xlu0 %3072 }
 0x4b4   : > { %3141 = vst.msk [vmem:[#allocation5 + $0x2a0] sm:$0xff] %vm3112_vm0, %v3073_v55 }
 0x4b6   : > { %v3075_v4 = vpop.permute.xlu1 %3074 }
 0x4b7   : > { %3142 = vst.msk [vmem:[#allocation5 + $0x2b8] sm:$0xff] %vm3112_vm0, %v3075_v4  ;;  %v3334_v53 = vpop.permute.xlu0 %3333  ;;  %v3935_v48 = vld [vmem:[#allocation5 + $0x2a8] sm:$0xff] }
 0x4b8   : > { %3399 = vst.msk [vmem:[#allocation5 + $0x2d8] sm:$0xff] %vm2726_vm14, %v3334_v53 }
 0x4b9   : > { %v5113_v15 = vpop.f32.mrb[40].mxu1 }
 0x4ba   : > { %v5114_v28 = vpop.f32.mrb[41].mxu1  ;;  %v3336_v27 = vpop.permute.xlu1 %3335  ;;  %v3938_v9 = vld [vmem:[#allocation5 + $0x2c0] sm:$0xff] }
 0x4bb   : > { %v5115_v59 = vadd.f32 %v5114_v28, %v5113_v15  ;;  %v5116_v41 = vpop.f32.mrb[42].mxu1  ;;  %3400 = vst.msk [vmem:[#allocation5 + $0x2f0] sm:$0xff] %vm2726_vm14, %v3336_v27  ;;  %v3989_v36 = vpack.c.bf16 %v3938_v9, %v3935_v48  ;;  %v2691_v54 = vpop.permute.xlu0 %2690  ;;  %v3934_v50 = vld [vmem:[#allocation5 + $0x2a0] sm:$0xff] }
 0x4bc   : > { %v5117_v49 = vpop.f32.mrb[43].mxu1  ;;  %2757 = vst.msk [vmem:[#allocation5 + $0x2d0] sm:$0xff] %vm2726_vm14, %v2691_v54 }
 0x4bd   : > { %v4276_v47 = vadd.f32 %v5115_v59, %v8016_v5  ;;  %v5118_v25 = vadd.f32 %v5117_v49, %v5116_v41  ;;  %4337 = vmatprep.mubr.bf16.mxu1 %v3989_v36 }
 0x4be   : > { %v2693_v57 = vpop.permute.xlu1 %2692  ;;  %v3937_v21 = vld [vmem:[#allocation5 + $0x2b8] sm:$0xff] }
 0x4bf   : > { %v4437_v35 = vadd.f32 %v8062_v34, %v4276_v47  ;;  %v4279_v40 = vadd.f32 %v5118_v25, %v8016_v5  ;;  %v8182_v8 = vpop.f32.mrb[36].mxu0  ;;  %2758 = vst.msk [vmem:[#allocation5 + $0x2e8] sm:$0xff] %vm2726_vm14, %v2693_v57  ;;  %v3988_v46 = vpack.c.bf16 %v3937_v21, %v3934_v50  ;;  %v3527_v60 = vpop.permute.xlu0 %3526 }
 0x4c0   : > { %v8184_v58 = vpop.f32.mrb[37].mxu0  ;;  %3592 = vst.msk [vmem:[#allocation5 + $0x2d8] sm:$0xff] %vm2919_vm15, %v3527_v60 }
 0x4c1   : > { %v4440_v20 = vadd.f32 %v8070_v2, %v4279_v40  ;;  %v8188_v51 = vpop.f32.mrb[38].mxu0  ;;  %4338 = vmatmul.mubr.bf16.gmra.mrb[72].mxu1 %v3988_v46  ;;  %v4527_v34 = vmax.f32 %v4437_v35, 0.0 }
 0x4c2   : > { %v8190_v37 = vpop.f32.mrb[39].mxu0  ;;  %v3529_v29 = vpop.permute.xlu1 %3528 }
 0x4c3   : > { %v4528_v13 = vmax.f32 %v4440_v20, 0.0  ;;  %3593 = vst.msk [vmem:[#allocation5 + $0x2f0] sm:$0xff] %vm2919_vm15, %v3529_v29  ;;  %v2884_v22 = vpop.permute.xlu0 %2883 }
 0x4c4   : > { %2950 = vst.msk [vmem:[#allocation5 + $0x2d0] sm:$0xff] %vm2919_vm15, %v2884_v22 }
 0x4c5   : > { %v4553_v45 = vpack.c.bf16 %v4528_v13, %v4527_v34 }
 0x4c6   : > { %v2886_v24 = vpop.permute.xlu1 %2885 }
 0x4c7   : > { %5299 = vmatprep.mubr.msk.bf16.mxu0 %vm2413_vm12, %v4553_v45  ;;  %2951 = vst.msk [vmem:[#allocation5 + $0x2e8] sm:$0xff] %vm2919_vm15, %v2886_v24  ;;  %v3719_v2 = vpop.permute.xlu0 %3718 }
 0x4c8   : > { %3784 = vst.msk [vmem:[#allocation5 + $0x2d8] sm:$0xff] %vm3112_vm0, %v3719_v2 }
 0x4ca   : > { %v3721_v56 = vpop.permute.xlu1 %3720 }
 0x4cb   : > { %3785 = vst.msk [vmem:[#allocation5 + $0x2f0] sm:$0xff] %vm3112_vm0, %v3721_v56  ;;  %v3077_v6 = vpop.permute.xlu0 %3076 }
 0x4cc   : > { %3143 = vst.msk [vmem:[#allocation5 + $0x2d0] sm:$0xff] %vm3112_vm0, %v3077_v6 }
 0x4ce   : > { %v3079_v52 = vpop.permute.xlu1 %3078 }
 0x4cf   : > { %3144 = vst.msk [vmem:[#allocation5 + $0x2e8] sm:$0xff] %vm3112_vm0, %v3079_v52  ;;  %v5119_v7 = vpop.f32.mrb[44].mxu1  ;;  %v3941_v39 = vld [vmem:[#allocation5 + $0x2d8] sm:$0xff] }
 0x4d0   : > { %v5120_v14 = vpop.f32.mrb[45].mxu1 }
 0x4d1   : > { %v5121_v1 = vadd.f32 %v5120_v14, %v5119_v7  ;;  %v5122_v11 = vpop.f32.mrb[46].mxu1 }
 0x4d2   : > { %v3944_v26 = vld [vmem:[#allocation5 + $0x2f0] sm:$0xff]  ;;  %v5123_v38 = vpop.f32.mrb[47].mxu1 }
 0x4d3   : > { %v3992_v12 = vpack.c.bf16 %v3944_v26, %v3941_v39  ;;  %v4284_v32 = vadd.f32 %v5121_v1, %v8016_v5  ;;  %v5124_v16 = vadd.f32 %v5123_v38, %v5122_v11  ;;  %v3940_v17 = vld [vmem:[#allocation5 + $0x2d0] sm:$0xff]  ;;  %v8235_v1 = vld [vmem:[#allocation14] ss:$0 sm:$0xff] }
 0x4d5   : > { %4345 = vmatprep.mubr.bf16.mxu1 %v3992_v12  ;;  %v4445_v31 = vadd.f32 %v8060_v0, %v4284_v32  ;;  %v4287_v3 = vadd.f32 %v5124_v16, %v8016_v5 }
 0x4d6   : > { %v3943_v44 = vld [vmem:[#allocation5 + $0x2e8] sm:$0xff] }
 0x4d7   : > { %v3991_v30 = vpack.c.bf16 %v3943_v44, %v3940_v17  ;;  %v4448_v33 = vadd.f32 %v8067_v63, %v4287_v3  ;;  %v4529_v61 = vmax.f32 %v4445_v31, 0.0 }
 0x4d9   : > { %4346 = vmatmul.mubr.bf16.gmra.mrb[76].mxu1 %v3991_v30  ;;  %v4530_v42 = vmax.f32 %v4448_v33, 0.0 }
 0x4db   : > { %v4554_v23 = vpack.c.bf16 %v4530_v42, %v4529_v61 }
 0x4dd   : > { %5300 = vmatmul.mubr.msk.bf16.gmra.mrb[60].mxu0 %vm2413_vm12, %v4554_v23 }
 0x4e7   : > { %v5125_v18 = vpop.f32.mrb[48].mxu1 }
 0x4e8   : > { %v5126_v55 = vpop.f32.mrb[49].mxu1 }
 0x4e9   : > { %v5127_v4 = vadd.f32 %v5126_v55, %v5125_v18  ;;  %v5128_v53 = vpop.f32.mrb[50].mxu1 }
 0x4ea   : > { %v5129_v15 = vpop.f32.mrb[51].mxu1 }
 0x4eb   : > { %v4292_v0 = vadd.f32 %v5127_v4, %v8016_v5  ;;  %v5130_v28 = vadd.f32 %v5129_v15, %v5128_v53 }
 0x4ed   : > { %v4453_v59 = vadd.f32 %v8138_v62, %v4292_v0  ;;  %v4295_v27 = vadd.f32 %v5130_v28, %v8016_v5 }
 0x4ef   : > { %v4456_v63 = vadd.f32 %v8144_v10, %v4295_v27  ;;  %v4531_v41 = vmax.f32 %v4453_v59, 0.0 }
 0x4f1   : > { %v4532_v48 = vmax.f32 %v4456_v63, 0.0 }
 0x4f3   : > { %v4555_v9 = vpack.c.bf16 %v4532_v48, %v4531_v41 }
 0x4f5   : > { %5303 = vmatprep.mubr.msk.bf16.mxu0 %vm2413_vm12, %v4555_v9 }
 0x4ff   : > { %v8211_v49 = vpop.f32.mrb[40].mxu0 }
 0x500   : > { %v8213_v36 = vpop.f32.mrb[41].mxu0 }
 0x501   : > { %v8215_v47 = vpop.f32.mrb[42].mxu0  ;;  %v5131_v25 = vpop.f32.mrb[52].mxu1 }
 0x502   : > { %v8217_v54 = vpop.f32.mrb[43].mxu0  ;;  %v5132_v35 = vpop.f32.mrb[53].mxu1 }
 0x503   : > { %v5133_v62 = vadd.f32 %v5132_v35, %v5131_v25  ;;  %v5134_v40 = vpop.f32.mrb[54].mxu1 }
 0x504   : > { %v5135_v57 = vpop.f32.mrb[55].mxu1 }
 0x505   : > { %v4300_v10 = vadd.f32 %v5133_v62, %v8016_v5  ;;  %v5136_v50 = vadd.f32 %v5135_v57, %v5134_v40 }
 0x507   : > { %v4461_v21 = vadd.f32 %v8136_v43, %v4300_v10  ;;  %v4303_v46 = vadd.f32 %v5136_v50, %v8016_v5  ;;  %v8222_v20 = vpop.f32.mrb[44].mxu0 }
 0x508   : > { %v8224_v60 = vpop.f32.mrb[45].mxu0 }
 0x509   : > { %v4464_v34 = vadd.f32 %v8142_v19, %v4303_v46  ;;  %v8227_v13 = vpop.f32.mrb[46].mxu0  ;;  %v4533_v45 = vmax.f32 %v4461_v21, 0.0 }
 0x50a   : > { %v8229_v29 = vpop.f32.mrb[47].mxu0 }
 0x50b   : > { %v4534_v22 = vmax.f32 %v4464_v34, 0.0 }
 0x50d   : > { %v4556_v24 = vpack.c.bf16 %v4534_v22, %v4533_v45 }
 0x50f   : > { %5304 = vmatmul.mubr.msk.bf16.gmra.mrb[64].mxu0 %vm2413_vm12, %v4556_v24 }
 0x517   : > { %v5137_v2 = vpop.f32.mrb[56].mxu1 }
 0x518   : > { %v5138_v43 = vpop.f32.mrb[57].mxu1 }
 0x519   : > { %v5139_v56 = vadd.f32 %v5138_v43, %v5137_v2  ;;  %v5140_v6 = vpop.f32.mrb[58].mxu1 }
 0x51a   : > { %v5141_v52 = vpop.f32.mrb[59].mxu1 }
 0x51b   : > { %v4308_v7 = vadd.f32 %v5139_v56, %v8016_v5  ;;  %v5142_v39 = vadd.f32 %v5141_v52, %v5140_v6 }
 0x51d   : > { %v4469_v19 = vadd.f32 %v8184_v58, %v4308_v7  ;;  %v4311_v14 = vadd.f32 %v5142_v39, %v8016_v5 }
 0x51f   : > { %v4472_v11 = vadd.f32 %v8190_v37, %v4311_v14  ;;  %v4535_v38 = vmax.f32 %v4469_v19, 0.0 }
 0x521   : > { %v4536_v58 = vmax.f32 %v4472_v11, 0.0 }
 0x522   : > { %v5289_v26 = vpop.f32.mrb[48].mxu0 }
 0x523   : > { %v4677_v12 = vadd.f32 %v5289_v26, %v8235_v1  ;;  %v4668_v32 = vpop.f32.mrb[49].mxu0  ;;  %v4557_v31 = vpack.c.bf16 %v4536_v58, %v4535_v38 }
 0x524   : > { %v4669_v16 = vadd.f32 %v8235_v1, %v4668_v32  ;;  %v5290_v37 = vpop.f32.mrb[50].mxu0 }
 0x525   : > { %4798 = vst.msk [vmem:[%s8243_s17 + $0x10] sm:$0xff] %vm4795_vm1, %v4677_v12  ;;  %v4680_v3 = vadd.f32 %v5290_v37, %v8235_v1  ;;  %v4671_v17 = vpop.f32.mrb[51].mxu0  ;;  %5307 = vmatprep.mubr.msk.bf16.mxu0 %vm2413_vm12, %v4557_v31 }
 0x526   : > { %4796 = vst.msk [vmem:[%s8243_s17] sm:$0xff] %vm4795_vm1, %v4669_v16  ;;  %v4672_v44 = vadd.f32 %v8235_v1, %v4671_v17 }
 0x527   : > { %4799 = vst.msk [vmem:[%s8243_s17 + $0x18] sm:$0xff] %vm4795_vm1, %v4680_v3 }
 0x528   : > { %4797 = vst.msk [vmem:[%s8243_s17 + $0x8] sm:$0xff] %vm4795_vm1, %v4672_v44 }
 0x53c   : > { %v5143_v30 = vpop.f32.mrb[60].mxu1 }
 0x53d   : > { %v5144_v33 = vpop.f32.mrb[61].mxu1 }
 0x53e   : > { %v5145_v61 = vadd.f32 %v5144_v33, %v5143_v30  ;;  %v5146_v42 = vpop.f32.mrb[62].mxu1 }
 0x53f   : > { %v5147_v23 = vpop.f32.mrb[63].mxu1 }
 0x540   : > { %v4316_v18 = vadd.f32 %v5145_v61, %v8016_v5  ;;  %v5148_v55 = vadd.f32 %v5147_v23, %v5146_v42 }
 0x542   : > { %v4477_v4 = vadd.f32 %v8182_v8, %v4316_v18  ;;  %v4319_v53 = vadd.f32 %v5148_v55, %v8016_v5 }
 0x544   : > { %v4480_v15 = vadd.f32 %v8188_v51, %v4319_v53  ;;  %v4537_v0 = vmax.f32 %v4477_v4, 0.0 }
 0x546   : > { %v4538_v28 = vmax.f32 %v4480_v15, 0.0 }
 0x548   : > { %v4558_v59 = vpack.c.bf16 %v4538_v28, %v4537_v0 }
 0x54a   : > { %5308 = vmatmul.mubr.msk.bf16.gmra.mrb[68].mxu0 %vm2413_vm12, %v4558_v59 }
 0x550   : > { %v5293_v27 = vpop.f32.mrb[52].mxu0 }
 0x551   : > { %v4693_v63 = vadd.f32 %v5293_v27, %v8235_v1  ;;  %v4684_v41 = vpop.f32.mrb[53].mxu0 }
 0x552   : > { %v4685_v48 = vadd.f32 %v8235_v1, %v4684_v41  ;;  %v5294_v9 = vpop.f32.mrb[54].mxu0 }
 0x553   : > { %4802 = vst.msk [vmem:[%s8243_s17 + $0x30] sm:$0xff] %vm4795_vm1, %v4693_v63  ;;  %v4696_v8 = vadd.f32 %v5294_v9, %v8235_v1  ;;  %v4687_v51 = vpop.f32.mrb[55].mxu0 }
 0x554   : > { %v5149_v25 = vpop.f32.mrb[64].mxu1  ;;  %4800 = vst.msk [vmem:[%s8243_s17 + $0x20] sm:$0xff] %vm4795_vm1, %v4685_v48  ;;  %v4688_v35 = vadd.f32 %v8235_v1, %v4687_v51 }
 0x555   : > { %v5150_v62 = vpop.f32.mrb[65].mxu1  ;;  %4803 = vst.msk [vmem:[%s8243_s17 + $0x38] sm:$0xff] %vm4795_vm1, %v4696_v8 }
 0x556   : > { %v5151_v40 = vadd.f32 %v5150_v62, %v5149_v25  ;;  %v5152_v57 = vpop.f32.mrb[66].mxu1  ;;  %4801 = vst.msk [vmem:[%s8243_s17 + $0x28] sm:$0xff] %vm4795_vm1, %v4688_v35 }
 0x557   : > { %v5153_v10 = vpop.f32.mrb[67].mxu1 }
 0x558   : > { %v4324_v50 = vadd.f32 %v5151_v40, %v8016_v5  ;;  %v5154_v21 = vadd.f32 %v5153_v10, %v5152_v57 }
 0x55a   : > { %v4485_v46 = vadd.f32 %v8213_v36, %v4324_v50  ;;  %v4327_v34 = vadd.f32 %v5154_v21, %v8016_v5 }
 0x55c   : > { %v4488_v45 = vadd.f32 %v8217_v54, %v4327_v34  ;;  %v4539_v22 = vmax.f32 %v4485_v46, 0.0 }
 0x55e   : > { %v4540_v24 = vmax.f32 %v4488_v45, 0.0 }
 0x560   : > { %v4559_v2 = vpack.c.bf16 %v4540_v24, %v4539_v22 }
 0x562   : > { %5311 = vmatprep.mubr.msk.bf16.mxu0 %vm2413_vm12, %v4559_v2 }
 0x57c   : > { %v5155_v43 = vpop.f32.mrb[68].mxu1 }
 0x57d   : > { %v5156_v56 = vpop.f32.mrb[69].mxu1 }
 0x57e   : > { %v5157_v6 = vadd.f32 %v5156_v56, %v5155_v43  ;;  %v5158_v52 = vpop.f32.mrb[70].mxu1 }
 0x57f   : > { %v5159_v7 = vpop.f32.mrb[71].mxu1 }
 0x580   : > { %v4332_v39 = vadd.f32 %v5157_v6, %v8016_v5  ;;  %v5160_v19 = vadd.f32 %v5159_v7, %v5158_v52  ;;  %v5297_v36 = vpop.f32.mrb[56].mxu0 }
 0x581   : > { %v4709_v11 = vadd.f32 %v5297_v36, %v8235_v1  ;;  %v4700_v26 = vpop.f32.mrb[57].mxu0 }
 0x582   : > { %v4493_v54 = vadd.f32 %v8211_v49, %v4332_v39  ;;  %v4335_v14 = vadd.f32 %v5160_v19, %v8016_v5  ;;  %v4701_v38 = vadd.f32 %v8235_v1, %v4700_v26  ;;  %v5298_v58 = vpop.f32.mrb[58].mxu0 }
 0x583   : > { %4806 = vst.msk [vmem:[%s8243_s17 + $0x50] sm:$0xff] %vm4795_vm1, %v4709_v11  ;;  %v4712_v32 = vadd.f32 %v5298_v58, %v8235_v1  ;;  %v4703_v16 = vpop.f32.mrb[59].mxu0 }
 0x584   : > { %v4496_v12 = vadd.f32 %v8215_v47, %v4335_v14  ;;  %4804 = vst.msk [vmem:[%s8243_s17 + $0x40] sm:$0xff] %vm4795_vm1, %v4701_v38  ;;  %v4704_v37 = vadd.f32 %v8235_v1, %v4703_v16  ;;  %v4541_v49 = vmax.f32 %v4493_v54, 0.0 }
 0x585   : > { %4807 = vst.msk [vmem:[%s8243_s17 + $0x58] sm:$0xff] %vm4795_vm1, %v4712_v32 }
 0x586   : > { %v4542_v31 = vmax.f32 %v4496_v12, 0.0  ;;  %4805 = vst.msk [vmem:[%s8243_s17 + $0x48] sm:$0xff] %vm4795_vm1, %v4704_v37 }
 0x588   : > { %v4560_v3 = vpack.c.bf16 %v4542_v31, %v4541_v49 }
 0x58a   : > { %5312 = vmatmul.mubr.msk.bf16.gmra.mrb[72].mxu0 %vm2413_vm12, %v4560_v3 }
 0x594   : > { %v5161_v17 = vpop.f32.mrb[72].mxu1 }
 0x595   : > { %v5162_v47 = vpop.f32.mrb[73].mxu1 }
 0x596   : > { %v5163_v44 = vadd.f32 %v5162_v47, %v5161_v17  ;;  %v5164_v30 = vpop.f32.mrb[74].mxu1 }
 0x597   : > { %v5165_v33 = vpop.f32.mrb[75].mxu1 }
 0x598   : > { %v4340_v61 = vadd.f32 %v5163_v44, %v8016_v5  ;;  %v5166_v42 = vadd.f32 %v5165_v33, %v5164_v30 }
 0x59a   : > { %v4501_v23 = vadd.f32 %v8224_v60, %v4340_v61  ;;  %v4343_v18 = vadd.f32 %v5166_v42, %v8016_v5 }
 0x59c   : > { %v4504_v55 = vadd.f32 %v8229_v29, %v4343_v18  ;;  %v4543_v4 = vmax.f32 %v4501_v23, 0.0 }
 0x59e   : > { %v4544_v53 = vmax.f32 %v4504_v55, 0.0 }
 0x5a0   : > { %v4561_v15 = vpack.c.bf16 %v4544_v53, %v4543_v4 }
 0x5a2   : > { %5315 = vmatprep.mubr.msk.bf16.mxu0 %vm2413_vm12, %v4561_v15 }
 0x5ac   : > { %v5167_v0 = vpop.f32.mrb[76].mxu1 }
 0x5ad   : > { %v5168_v28 = vpop.f32.mrb[77].mxu1 }
 0x5ae   : > { %v5169_v59 = vadd.f32 %v5168_v28, %v5167_v0  ;;  %v5170_v27 = vpop.f32.mrb[78].mxu1 }
 0x5af   : > { %v5171_v63 = vpop.f32.mrb[79].mxu1 }
 0x5b0   : > { %v4348_v41 = vadd.f32 %v5169_v59, %v8016_v5  ;;  %v5172_v48 = vadd.f32 %v5171_v63, %v5170_v27  ;;  %v5301_v60 = vpop.f32.mrb[60].mxu0 }
 0x5b1   : > { %v4725_v8 = vadd.f32 %v5301_v60, %v8235_v1  ;;  %v4716_v25 = vpop.f32.mrb[61].mxu0 }
 0x5b2   : > { %v4509_v29 = vadd.f32 %v8222_v20, %v4348_v41  ;;  %v4351_v9 = vadd.f32 %v5172_v48, %v8016_v5  ;;  %v4717_v51 = vadd.f32 %v8235_v1, %v4716_v25  ;;  %v5302_v35 = vpop.f32.mrb[62].mxu0 }
 0x5b3   : > { %4810 = vst.msk [vmem:[%s8243_s17 + $0x70] sm:$0xff] %vm4795_vm1, %v4725_v8  ;;  %v4728_v40 = vadd.f32 %v5302_v35, %v8235_v1  ;;  %v4719_v57 = vpop.f32.mrb[63].mxu0 }
 0x5b4   : > { %v4512_v62 = vadd.f32 %v8227_v13, %v4351_v9  ;;  %4808 = vst.msk [vmem:[%s8243_s17 + $0x60] sm:$0xff] %vm4795_vm1, %v4717_v51  ;;  %v4720_v20 = vadd.f32 %v8235_v1, %v4719_v57  ;;  %v4545_v5 = vmax.f32 %v4509_v29, 0.0 }
 0x5b5   : > { %4811 = vst.msk [vmem:[%s8243_s17 + $0x78] sm:$0xff] %vm4795_vm1, %v4728_v40 }
 0x5b6   : > { %v4546_v10 = vmax.f32 %v4512_v62, 0.0  ;;  %4809 = vst.msk [vmem:[%s8243_s17 + $0x68] sm:$0xff] %vm4795_vm1, %v4720_v20 }
 0x5b8   : > { %v4562_v13 = vpack.c.bf16 %v4546_v10, %v4545_v5 }
 0x5ba   : > { %5316 = vmatmul.mubr.msk.bf16.gmra.mrb[76].mxu0 %vm2413_vm12, %v4562_v13 }
 0x5e2   : > { %v5305_v50 = vpop.f32.mrb[64].mxu0 }
 0x5e3   : > { %v4741_v21 = vadd.f32 %v5305_v50, %v8235_v1  ;;  %v4732_v46 = vpop.f32.mrb[65].mxu0 }
 0x5e4   : > { %v4733_v34 = vadd.f32 %v8235_v1, %v4732_v46  ;;  %v5306_v45 = vpop.f32.mrb[66].mxu0 }
 0x5e5   : > { %4814 = vst.msk [vmem:[%s8243_s17 + $0x90] sm:$0xff] %vm4795_vm1, %v4741_v21  ;;  %v4744_v22 = vadd.f32 %v5306_v45, %v8235_v1  ;;  %v4735_v24 = vpop.f32.mrb[67].mxu0 }
 0x5e6   : > { %4812 = vst.msk [vmem:[%s8243_s17 + $0x80] sm:$0xff] %vm4795_vm1, %v4733_v34  ;;  %v4736_v2 = vadd.f32 %v8235_v1, %v4735_v24 }
 0x5e7   : > { %4815 = vst.msk [vmem:[%s8243_s17 + $0x98] sm:$0xff] %vm4795_vm1, %v4744_v22 }
 0x5e8   : > { %4813 = vst.msk [vmem:[%s8243_s17 + $0x88] sm:$0xff] %vm4795_vm1, %v4736_v2 }
 0x61d   : > { %v5309_v43 = vpop.f32.mrb[68].mxu0 }
 0x61e   : > { %v4757_v56 = vadd.f32 %v5309_v43, %v8235_v1  ;;  %v4748_v6 = vpop.f32.mrb[69].mxu0 }
 0x61f   : > { %v4749_v52 = vadd.f32 %v8235_v1, %v4748_v6  ;;  %v5310_v7 = vpop.f32.mrb[70].mxu0 }
 0x620   : > { %4818 = vst.msk [vmem:[%s8243_s17 + $0xb0] sm:$0xff] %vm4795_vm1, %v4757_v56  ;;  %v4760_v39 = vadd.f32 %v5310_v7, %v8235_v1  ;;  %v4751_v19 = vpop.f32.mrb[71].mxu0 }
 0x621   : > { %4816 = vst.msk [vmem:[%s8243_s17 + $0xa0] sm:$0xff] %vm4795_vm1, %v4749_v52  ;;  %v4752_v36 = vadd.f32 %v8235_v1, %v4751_v19 }
 0x622   : > { %4819 = vst.msk [vmem:[%s8243_s17 + $0xb8] sm:$0xff] %vm4795_vm1, %v4760_v39 }
 0x623   : > { %4817 = vst.msk [vmem:[%s8243_s17 + $0xa8] sm:$0xff] %vm4795_vm1, %v4752_v36 }
 0x65d   : > { %v5313_v54 = vpop.f32.mrb[72].mxu0 }
 0x65e   : > { %v4773_v14 = vadd.f32 %v5313_v54, %v8235_v1  ;;  %v4764_v11 = vpop.f32.mrb[73].mxu0 }
 0x65f   : > { %v4765_v26 = vadd.f32 %v8235_v1, %v4764_v11  ;;  %v5314_v38 = vpop.f32.mrb[74].mxu0 }
 0x660   : > { %4822 = vst.msk [vmem:[%s8243_s17 + $0xd0] sm:$0xff] %vm4795_vm1, %v4773_v14  ;;  %v4776_v58 = vadd.f32 %v5314_v38, %v8235_v1  ;;  %v4767_v12 = vpop.f32.mrb[75].mxu0 }
 0x661   : > { %4820 = vst.msk [vmem:[%s8243_s17 + $0xc0] sm:$0xff] %vm4795_vm1, %v4765_v26  ;;  %v4768_v32 = vadd.f32 %v8235_v1, %v4767_v12 }
 0x662   : > { %4823 = vst.msk [vmem:[%s8243_s17 + $0xd8] sm:$0xff] %vm4795_vm1, %v4776_v58 }
 0x663   : > { %4821 = vst.msk [vmem:[%s8243_s17 + $0xc8] sm:$0xff] %vm4795_vm1, %v4768_v32 }
 0x68d   : > { %v5317_v16 = vpop.f32.mrb[76].mxu0 }
 0x68e   : > { %v4789_v37 = vadd.f32 %v5317_v16, %v8235_v1  ;;  %v4780_v49 = vpop.f32.mrb[77].mxu0 }
 0x68f   : > { %v4781_v31 = vadd.f32 %v8235_v1, %v4780_v49  ;;  %v5318_v3 = vpop.f32.mrb[78].mxu0 }
 0x690   : > { %4826 = vst.msk [vmem:[%s8243_s17 + $0xf0] sm:$0xff] %vm4795_vm1, %v4789_v37  ;;  %v4792_v17 = vadd.f32 %v5318_v3, %v8235_v1  ;;  %v4783_v47 = vpop.f32.mrb[79].mxu0 }
 0x691   : > { %4824 = vst.msk [vmem:[%s8243_s17 + $0xe0] sm:$0xff] %vm4795_vm1, %v4781_v31  ;;  %v4784_v44 = vadd.f32 %v8235_v1, %v4783_v47 }
 0x692   : > { %4827 = vst.msk [vmem:[%s8243_s17 + $0xf8] sm:$0xff] %vm4795_vm1, %v4792_v17 }
 0x693   : > { %4825 = vst.msk [vmem:[%s8243_s17 + $0xe8] sm:$0xff] %vm4795_vm1, %v4784_v44 }
 0x694 PF: > { %s21_s24 = sadd.s32 1, %s5624_s24  }
 0x695   : > { %p18_p9 = scmp.ge.s32.totalorder %s21_s24, 6  }
 0x697   :  { %20 = sbr.rel (!%p18_p9) target bundleno = 4 (0x4), region = 107 }
 0x69e   :  { %4849 = vsyncpa [#allocation7], 1 }
 0x69f   :  { %4851 = vsyncpa [#allocation7 + $0x1], 1 }
 0x6a0   :  { %4852 = vsyncpa [#allocation9], 1 }
 0x6a1   :  { %4853 = vsyncpa [#allocation12], 1 }
 0x6a2   :  { %4854 = vsyncpa [#allocation15], 1 }

</bundles_post_ra>
